<compile_context>
chip_gen: v7x
topology: tpu7x:2x2x1
jax: 0.10.0
libtpu: 0.0.40
codegen_flags: <defaults>
</compile_context>

<pallas_src>
import functools

import jax
import jax.numpy as jnp
from jax.experimental import pallas as pl
from jax.experimental.pallas import tpu as pltpu


# ---------------------------------------------------------------------------
# Fused kernel: BiGRU -> fc1_concept -> concept attention -> conv banks ->
#               relu -> max-pool -> tanh -> fc1 -> softmax.
# ---------------------------------------------------------------------------
def _make_kernel(*, L, B, D, H, K, filters, filter_nums, n_layers):
    H3, H6 = 3 * H, 6 * H
    F2 = 2 * H + D            # per-token concat width (== 2*D since 2H == D)
    n_filt = len(filters)

    def kernel(*refs):
        (x_ref, conc_ref, wi_ref, wh_ref, bi_ref, bh_ref,
         w1_ref, b1_ref) = refs[0:8]
        conv_w_refs = refs[8:8 + n_filt]
        conv_b_refs = refs[8 + n_filt:8 + 2 * n_filt]
        wf_ref = refs[8 + 2 * n_filt]
        bf_ref = refs[9 + 2 * n_filt]
        out_ref = refs[10 + 2 * n_filt]
        scr_f = refs[11 + 2 * n_filt]      # (L, B, H) fwd outputs
        scr_b = refs[12 + 2 * n_filt]      # (L, B, H) bwd outputs

        # ------------------ bidirectional GRU (stacked layers) --------------
        h_in = x_ref[...]                                   # (L, B, D)
        for l in range(n_layers):
            # Hoisted input projection, both directions + all gates fused:
            # columns [0:3H] = fwd (r|z|n), [3H:6H] = bwd (r|z|n).
            xp = jnp.dot(h_in.reshape(L * B, D), wi_ref[l],
                         preferred_element_type=jnp.float32) + bi_ref[l]
            xp = xp.reshape(L, B, H6)
            wh_l = wh_ref[l]                                # (H, 6H)
            bh_l = bh_ref[l]                                # (1, 6H)

            h_f = jnp.zeros((B, H), jnp.float32)
            h_b = jnp.zeros((B, H), jnp.float32)
            for t in range(L):                              # fully unrolled
                tb = L - 1 - t
                # one hidden-state matmul feeds both directions
                hc = jnp.concatenate([h_f, h_b], axis=0)    # (2B, H)
                gh = jnp.dot(hc, wh_l,
                             preferred_element_type=jnp.float32) + bh_l
                gh_f = gh[:B, :H3]                          # (B, 3H)
                gh_b = gh[B:, H3:]                          # (B, 3H)
                gi_f = xp[t, :, :H3]                        # (B, 3H)
                gi_b = xp[tb, :, H3:]                       # (B, 3H)

                r = jax.nn.sigmoid(gi_f[:, :H] + gh_f[:, :H])
                z = jax.nn.sigmoid(gi_f[:, H:2 * H] + gh_f[:, H:2 * H])
                n = jnp.tanh(gi_f[:, 2 * H:] + r * gh_f[:, 2 * H:])
                h_f = (1.0 - z) * n + z * h_f

                r = jax.nn.sigmoid(gi_b[:, :H] + gh_b[:, :H])
                z = jax.nn.sigmoid(gi_b[:, H:2 * H] + gh_b[:, H:2 * H])
                n = jnp.tanh(gi_b[:, 2 * H:] + r * gh_b[:, 2 * H:])
                h_b = (1.0 - z) * n + z * h_b

                scr_f[t] = h_f
                scr_b[tb] = h_b
            h_in = jnp.concatenate([scr_f[...], scr_b[...]], axis=-1)  # (L,B,2H)

        gru2 = h_in.reshape(L * B, 2 * H)                   # row = t*B + b

        # ------------------ fc1_concept: per-token context ------------------
        ctx = jnp.dot(gru2, w1_ref[...],
                      preferred_element_type=jnp.float32) + b1_ref[...]   # (L*B, D)

        # ------- get_concept: softmax over the K concepts of each token -----
        conc = conc_ref[...].reshape(L * B, K, D)
        scores = jnp.sum(conc * ctx[:, None, :], axis=-1)   # (L*B, K)
        m = jnp.max(scores, axis=-1, keepdims=True)
        e = jnp.exp(scores - m)
        cattn = e / jnp.sum(e, axis=-1, keepdims=True)
        concept = jnp.sum(cattn[:, :, None] * conc, axis=1)  # (L*B, D)

        # per-token concat -> (L*B, 2H + D)
        cat = jnp.concatenate([gru2, concept], axis=-1)

        # --- Conv1d banks as position-split matmuls + ReLU + global max-pool
        # torch Conv1d(1, nf, kernel=2D*f, stride=2D) over the flattened
        # sentence == windows of f consecutive tokens of the (L, 2D) features.
        feats = []
        for i, f in enumerate(filters):
            nf = filter_nums[i]
            P = L - f + 1
            bc = conv_b_refs[i][...]                        # (1, nf)
            acc = None
            for j in range(f):
                wcj = conv_w_refs[i][j * F2:(j + 1) * F2, :]          # (F2, nf)
                pj = jnp.dot(cat, wcj,
                             preferred_element_type=jnp.float32)      # (L*B, nf)
                contrib = pj.reshape(L, B, nf)[j:j + P]               # (P, B, nf)
                acc = contrib if acc is None else acc + contrib
            co = jnp.maximum(acc + bc, 0.0)                 # ReLU, (P, B, nf)
            feats.append(jnp.max(co, axis=0))               # MaxPool1d -> (B, nf)

        feat = jnp.tanh(jnp.concatenate(feats, axis=-1))    # (B, sum(nf))
        # dropout: identity at inference time.

        # ------------------ fc1 + softmax over classes ----------------------
        logits = jnp.dot(feat, wf_ref[...],
                         preferred_element_type=jnp.float32) + bf_ref[...]
        lm = jnp.max(logits, axis=-1, keepdims=True)
        le = jnp.exp(logits - lm)
        out_ref[...] = le / jnp.sum(le, axis=-1, keepdims=True)

    return kernel


# ---------------------------------------------------------------------------
# Parameter construction (deterministic) + forward glue.
# ---------------------------------------------------------------------------
def init_params(key, *, vocab, word_dim, hidden, num_layers, n_concepts,
                n_classes, filters, filter_nums):
    # The reference conv/view arithmetic only closes when 2*hidden == WORD_DIM.
    assert 2 * hidden == word_dim
    keys = iter(jax.random.split(key, 64))

    def uni(shape, scale):
        return jax.random.uniform(next(keys), shape, jnp.float32, -scale, scale)

    pad_idx = vocab + 1
    emb = uni((vocab + 2, word_dim), 0.5).at[pad_idx].set(0.0)
    concept_table = uni((vocab + 2, n_concepts, word_dim), 0.5).at[pad_idx].set(0.0)

    s = 1.0 / float(hidden) ** 0.5
    sh = 1.0 / float(2 * hidden) ** 0.5
    F2 = 2 * hidden + word_dim
    sf = 1.0 / float(sum(filter_nums)) ** 0.5

    return dict(
        embedding=emb,
        concept_table=concept_table,
        # GRU weights: gate-fused (r|z|n), direction-fused ([fwd|bwd]),
        # pre-transposed to (in, out).  All layers have D_in == D == 2H.
        wi=uni((num_layers, word_dim, 6 * hidden), s),
        wh=uni((num_layers, hidden, 6 * hidden), s),
        bi=uni((num_layers, 1, 6 * hidden), s),
        bh=uni((num_layers, 1, 6 * hidden), s),
        w1=uni((2 * hidden, word_dim), sh),      # fc1_concept (transposed)
        b1=uni((1, word_dim), sh),
        conv_w=[uni((f * F2, nf), 1.0 / float(f * F2) ** 0.5)
                for f, nf in zip(filters, filter_nums)],
        conv_b=[uni((1, nf), 1.0 / float(f * F2) ** 0.5)
                for f, nf in zip(filters, filter_nums)],
        wf=uni((sum(filter_nums), n_classes), sf),   # fc1 (transposed)
        bf=uni((1, n_classes), sf),
    )


def forward(inp, params, filters):
    # inp: (B, L) int32 token indices.
    inp_t = inp.T                                   # tiny int transpose only
    x = params["embedding"][inp_t]                  # (L, B, D)   time-major
    conc = params["concept_table"][inp_t]           # (L, B, K, D)

    L, B, D = x.shape
    K = conc.shape[2]
    n_layers, _, H6 = params["wi"].shape
    H = H6 // 6
    filter_nums = [w.shape[-1] for w in params["conv_w"]]
    C = params["wf"].shape[-1]

    kernel = _make_kernel(L=L, B=B, D=D, H=H, K=K, filters=tuple(filters),
                          filter_nums=tuple(filter_nums), n_layers=n_layers)

    args = [x, conc, params["wi"], params["wh"], params["bi"], params["bh"],
            params["w1"], params["b1"], *params["conv_w"], *params["conv_b"],
            params["wf"], params["bf"]]

    # Advisory cost hint for XLA scheduling.
    flops = 2 * (
        n_layers * (L * B * D * 6 * H + L * 2 * B * H * 6 * H)
        + L * B * 2 * H * D
        + 2 * L * B * K * D
        + sum(f * L * B * (2 * H + D) * nf for f, nf in zip(filters, filter_nums))
        + B * sum(filter_nums) * C)
    bytes_accessed = sum(int(a.size) * a.dtype.itemsize for a in args) + B * C * 4
    transcendentals = n_layers * L * 2 * B * 3 * H + L * B * K + B * (sum(filter_nums) + C)

    vmem = pl.BlockSpec(memory_space=pltpu.MemorySpace.VMEM)
    out = pl.pallas_call(
        kernel,
        out_shape=jax.ShapeDtypeStruct((B, C), jnp.float32),
        in_specs=[vmem] * len(args),
        out_specs=vmem,
        scratch_shapes=[pltpu.VMEM((L, B, H), jnp.float32),
                        pltpu.VMEM((L, B, H), jnp.float32)],
        cost_estimate=pl.CostEstimate(flops=flops,
                                      transcendentals=transcendentals,
                                      bytes_accessed=bytes_accessed),
    )(*args)
    return out


if __name__ == "__main__":
    B, L = 2, 8            # batch, MAX_SENT_LEN
    D = 32                 # WORD_DIM
    H = 16                 # hidden_size (2H == D, required by reference conv/view)
    VOCAB = 20             # VOCAB_SIZE
    K = 4                  # concepts per word (dense concept-table model)
    C = 3                  # number of classes
    NUM_LAYERS = 1
    FILTERS = (2, 3)       # filter_size
    FILTER_NUM = (8, 8)    # number_of_filters

    key = jax.random.PRNGKey(0)
    k_inp, k_par = jax.random.split(key)

    params = init_params(k_par, vocab=VOCAB, word_dim=D, hidden=H,
                         num_layers=NUM_LAYERS, n_concepts=K, n_classes=C,
                         filters=FILTERS, filter_nums=FILTER_NUM)

    # token ids in [0, VOCAB+1]; VOCAB+1 is the padding index
    inp = jax.random.randint(k_inp, (B, L), 0, VOCAB + 2, dtype=jnp.int32)

    out = forward(inp, params, FILTERS)
    out = jax.block_until_ready(out)

    assert out.shape == (B, C)
    assert bool(jnp.all(jnp.isfinite(out)))
    # rows are softmax outputs -> sum to 1
    assert bool(jnp.allclose(jnp.sum(out, axis=-1), 1.0, atol=1e-5))
    print("KERNEL_OK")
</pallas_src>

<mosaic_0001>
module attributes {stable_mosaic.version = 11 : i64} {
  func.func @kernel(%arg0: memref<8x2x32xf32, #tpu.memory_space<vmem>>, %arg1: memref<8x2x4x32xf32, #tpu.memory_space<vmem>>, %arg2: memref<1x32x96xf32, #tpu.memory_space<vmem>>, %arg3: memref<1x16x96xf32, #tpu.memory_space<vmem>>, %arg4: memref<1x1x96xf32, #tpu.memory_space<vmem>>, %arg5: memref<1x1x96xf32, #tpu.memory_space<vmem>>, %arg6: memref<32x32xf32, #tpu.memory_space<vmem>>, %arg7: memref<1x32xf32, #tpu.memory_space<vmem>>, %arg8: memref<128x8xf32, #tpu.memory_space<vmem>>, %arg9: memref<192x8xf32, #tpu.memory_space<vmem>>, %arg10: memref<1x8xf32, #tpu.memory_space<vmem>>, %arg11: memref<1x8xf32, #tpu.memory_space<vmem>>, %arg12: memref<16x3xf32, #tpu.memory_space<vmem>>, %arg13: memref<1x3xf32, #tpu.memory_space<vmem>>, %arg14: memref<2x3xf32, #tpu.memory_space<vmem>>, %arg15: memref<8x2x16xf32, #tpu.memory_space<vmem>>, %arg16: memref<8x2x16xf32, #tpu.memory_space<vmem>>) attributes {dimension_semantics = [], scalar_prefetch = 0 : i64, scratch_operands = 2 : i64, tpu.core_type = #tpu.core_type<tc>} {
    %c0 = arith.constant 0 : index
    %c0_0 = arith.constant 0 : index
    %c0_1 = arith.constant 0 : index
    %0 = vector.load %arg0[%c0, %c0_0, %c0_1] : memref<8x2x32xf32, #tpu.memory_space<vmem>>, vector<8x2x32xf32>
    %1 = vector.shape_cast %0 : vector<8x2x32xf32> to vector<16x32xf32>
    %c0_2 = arith.constant 0 : index
    %c0_3 = arith.constant 0 : index
    %c0_4 = arith.constant 0 : index
    %2 = vector.load %arg2[%c0_2, %c0_3, %c0_4] : memref<1x32x96xf32, #tpu.memory_space<vmem>>, vector<1x32x96xf32>
    %3 = vector.shape_cast %2 : vector<1x32x96xf32> to vector<32x96xf32>
    %cst = arith.constant dense<0.000000e+00> : vector<16x96xf32>
    %4 = tpu.matmul %1, %3, %cst {dimension_numbers = #tpu.dot_dimension_numbers<[1], [0], [0], [1], [0, 0, 1, 1], [], []>} : vector<16x32xf32>, vector<32x96xf32>, vector<16x96xf32> -> vector<16x96xf32>
    %c0_5 = arith.constant 0 : index
    %c0_6 = arith.constant 0 : index
    %c0_7 = arith.constant 0 : index
    %5 = vector.load %arg4[%c0_5, %c0_6, %c0_7] : memref<1x1x96xf32, #tpu.memory_space<vmem>>, vector<1x1x96xf32>
    %6 = vector.shape_cast %5 : vector<1x1x96xf32> to vector<1x96xf32>
    %7 = vector.broadcast %6 : vector<1x96xf32> to vector<16x96xf32>
    %8 = arith.addf %4, %7 : vector<16x96xf32>
    %9 = vector.shape_cast %8 : vector<16x96xf32> to vector<8x2x96xf32>
    %c0_8 = arith.constant 0 : index
    %c0_9 = arith.constant 0 : index
    %c0_10 = arith.constant 0 : index
    %10 = vector.load %arg3[%c0_8, %c0_9, %c0_10] : memref<1x16x96xf32, #tpu.memory_space<vmem>>, vector<1x16x96xf32>
    %11 = vector.shape_cast %10 : vector<1x16x96xf32> to vector<16x96xf32>
    %c0_11 = arith.constant 0 : index
    %c0_12 = arith.constant 0 : index
    %c0_13 = arith.constant 0 : index
    %12 = vector.load %arg5[%c0_11, %c0_12, %c0_13] : memref<1x1x96xf32, #tpu.memory_space<vmem>>, vector<1x1x96xf32>
    %13 = vector.shape_cast %12 : vector<1x1x96xf32> to vector<1x96xf32>
    %cst_14 = arith.constant 0.000000e+00 : f32
    %14 = vector.broadcast %cst_14 : f32 to vector<2x16xf32>
    %cst_15 = arith.constant 0.000000e+00 : f32
    %15 = vector.broadcast %cst_15 : f32 to vector<2x16xf32>
    %16 = tpu.concatenate %14, %15 in 0 : vector<2x16xf32>, vector<2x16xf32> -> vector<4x16xf32>
    %cst_16 = arith.constant dense<0.000000e+00> : vector<4x96xf32>
    %17 = tpu.matmul %16, %11, %cst_16 {dimension_numbers = #tpu.dot_dimension_numbers<[1], [0], [0], [1], [0, 0, 1, 1], [], []>} : vector<4x16xf32>, vector<16x96xf32>, vector<4x96xf32> -> vector<4x96xf32>
    %18 = vector.broadcast %13 : vector<1x96xf32> to vector<4x96xf32>
    %19 = arith.addf %17, %18 : vector<4x96xf32>
    %20 = vector.extract_strided_slice %19 {offsets = [0, 0], sizes = [2, 48], strides = [1, 1]} : vector<4x96xf32> to vector<2x48xf32>
    %21 = vector.extract_strided_slice %19 {offsets = [2, 48], sizes = [2, 48], strides = [1, 1]} : vector<4x96xf32> to vector<2x48xf32>
    %22 = vector.extract_strided_slice %9 {offsets = [0, 0, 0], sizes = [1, 2, 48], strides = [1, 1, 1]} : vector<8x2x96xf32> to vector<1x2x48xf32>
    %23 = vector.shape_cast %22 : vector<1x2x48xf32> to vector<2x48xf32>
    %24 = vector.extract_strided_slice %9 {offsets = [7, 0, 48], sizes = [1, 2, 48], strides = [1, 1, 1]} : vector<8x2x96xf32> to vector<1x2x48xf32>
    %25 = vector.shape_cast %24 : vector<1x2x48xf32> to vector<2x48xf32>
    %26 = vector.extract_strided_slice %23 {offsets = [0, 0], sizes = [2, 16], strides = [1, 1]} : vector<2x48xf32> to vector<2x16xf32>
    %27 = vector.extract_strided_slice %20 {offsets = [0, 0], sizes = [2, 16], strides = [1, 1]} : vector<2x48xf32> to vector<2x16xf32>
    %28 = arith.addf %26, %27 : vector<2x16xf32>
    %29 = arith.negf %28 : vector<2x16xf32>
    %30 = math.exp %29 : vector<2x16xf32>
    %cst_17 = arith.constant 1.000000e+00 : f32
    %31 = vector.broadcast %cst_17 : f32 to vector<2x16xf32>
    %32 = arith.addf %31, %30 : vector<2x16xf32>
    %33 = arith.divf %31, %32 : vector<2x16xf32>
    %34 = vector.extract_strided_slice %23 {offsets = [0, 16], sizes = [2, 16], strides = [1, 1]} : vector<2x48xf32> to vector<2x16xf32>
    %35 = vector.extract_strided_slice %20 {offsets = [0, 16], sizes = [2, 16], strides = [1, 1]} : vector<2x48xf32> to vector<2x16xf32>
    %36 = arith.addf %34, %35 : vector<2x16xf32>
    %37 = arith.negf %36 : vector<2x16xf32>
    %38 = math.exp %37 : vector<2x16xf32>
    %cst_18 = arith.constant 1.000000e+00 : f32
    %39 = vector.broadcast %cst_18 : f32 to vector<2x16xf32>
    %40 = arith.addf %39, %38 : vector<2x16xf32>
    %41 = arith.divf %39, %40 : vector<2x16xf32>
    %42 = vector.extract_strided_slice %23 {offsets = [0, 32], sizes = [2, 16], strides = [1, 1]} : vector<2x48xf32> to vector<2x16xf32>
    %43 = vector.extract_strided_slice %20 {offsets = [0, 32], sizes = [2, 16], strides = [1, 1]} : vector<2x48xf32> to vector<2x16xf32>
    %44 = arith.mulf %33, %43 : vector<2x16xf32>
    %45 = arith.addf %42, %44 : vector<2x16xf32>
    %46 = math.tanh %45 : vector<2x16xf32>
    %cst_19 = arith.constant 1.000000e+00 : f32
    %47 = vector.broadcast %cst_19 : f32 to vector<2x16xf32>
    %48 = arith.subf %47, %41 : vector<2x16xf32>
    %49 = arith.mulf %48, %46 : vector<2x16xf32>
    %50 = arith.mulf %41, %14 : vector<2x16xf32>
    %51 = arith.addf %49, %50 : vector<2x16xf32>
    %52 = vector.extract_strided_slice %25 {offsets = [0, 0], sizes = [2, 16], strides = [1, 1]} : vector<2x48xf32> to vector<2x16xf32>
    %53 = vector.extract_strided_slice %21 {offsets = [0, 0], sizes = [2, 16], strides = [1, 1]} : vector<2x48xf32> to vector<2x16xf32>
    %54 = arith.addf %52, %53 : vector<2x16xf32>
    %55 = arith.negf %54 : vector<2x16xf32>
    %56 = math.exp %55 : vector<2x16xf32>
    %cst_20 = arith.constant 1.000000e+00 : f32
    %57 = vector.broadcast %cst_20 : f32 to vector<2x16xf32>
    %58 = arith.addf %57, %56 : vector<2x16xf32>
    %59 = arith.divf %57, %58 : vector<2x16xf32>
    %60 = vector.extract_strided_slice %25 {offsets = [0, 16], sizes = [2, 16], strides = [1, 1]} : vector<2x48xf32> to vector<2x16xf32>
    %61 = vector.extract_strided_slice %21 {offsets = [0, 16], sizes = [2, 16], strides = [1, 1]} : vector<2x48xf32> to vector<2x16xf32>
    %62 = arith.addf %60, %61 : vector<2x16xf32>
    %63 = arith.negf %62 : vector<2x16xf32>
    %64 = math.exp %63 : vector<2x16xf32>
    %cst_21 = arith.constant 1.000000e+00 : f32
    %65 = vector.broadcast %cst_21 : f32 to vector<2x16xf32>
    %66 = arith.addf %65, %64 : vector<2x16xf32>
    %67 = arith.divf %65, %66 : vector<2x16xf32>
    %68 = vector.extract_strided_slice %25 {offsets = [0, 32], sizes = [2, 16], strides = [1, 1]} : vector<2x48xf32> to vector<2x16xf32>
    %69 = vector.extract_strided_slice %21 {offsets = [0, 32], sizes = [2, 16], strides = [1, 1]} : vector<2x48xf32> to vector<2x16xf32>
    %70 = arith.mulf %59, %69 : vector<2x16xf32>
    %71 = arith.addf %68, %70 : vector<2x16xf32>
    %72 = math.tanh %71 : vector<2x16xf32>
    %cst_22 = arith.constant 1.000000e+00 : f32
    %73 = vector.broadcast %cst_22 : f32 to vector<2x16xf32>
    %74 = arith.subf %73, %67 : vector<2x16xf32>
    %75 = arith.mulf %74, %72 : vector<2x16xf32>
    %76 = arith.mulf %67, %15 : vector<2x16xf32>
    %77 = arith.addf %75, %76 : vector<2x16xf32>
    %c0_23 = arith.constant 0 : index
    %c0_24 = arith.constant 0 : index
    %c0_25 = arith.constant 0 : index
    %78 = vector.load %arg15[%c0_23, %c0_24, %c0_25] : memref<8x2x16xf32, #tpu.memory_space<vmem>>, vector<1x2x16xf32>
    %79 = vector.shape_cast %78 : vector<1x2x16xf32> to vector<2x16xf32>
    %80 = vector.shape_cast %51 : vector<2x16xf32> to vector<1x2x16xf32>
    tpu.vector_store %arg15[%c0_23, %c0_24, %c0_25], %80 {strides = array<i32>} : memref<8x2x16xf32, #tpu.memory_space<vmem>>, vector<1x2x16xf32>,
    %c7 = arith.constant 7 : index
    %c0_26 = arith.constant 0 : index
    %c0_27 = arith.constant 0 : index
    %81 = vector.load %arg16[%c7, %c0_26, %c0_27] : memref<8x2x16xf32, #tpu.memory_space<vmem>>, vector<1x2x16xf32>
    %82 = vector.shape_cast %81 : vector<1x2x16xf32> to vector<2x16xf32>
    %83 = vector.shape_cast %77 : vector<2x16xf32> to vector<1x2x16xf32>
    tpu.vector_store %arg16[%c7, %c0_26, %c0_27], %83 {strides = array<i32>} : memref<8x2x16xf32, #tpu.memory_space<vmem>>, vector<1x2x16xf32>,
    %84 = tpu.concatenate %51, %77 in 0 : vector<2x16xf32>, vector<2x16xf32> -> vector<4x16xf32>
    %cst_28 = arith.constant dense<0.000000e+00> : vector<4x96xf32>
    %85 = tpu.matmul %84, %11, %cst_28 {dimension_numbers = #tpu.dot_dimension_numbers<[1], [0], [0], [1], [0, 0, 1, 1], [], []>} : vector<4x16xf32>, vector<16x96xf32>, vector<4x96xf32> -> vector<4x96xf32>
    %86 = vector.broadcast %13 : vector<1x96xf32> to vector<4x96xf32>
    %87 = arith.addf %85, %86 : vector<4x96xf32>
    %88 = vector.extract_strided_slice %87 {offsets = [0, 0], sizes = [2, 48], strides = [1, 1]} : vector<4x96xf32> to vector<2x48xf32>
    %89 = vector.extract_strided_slice %87 {offsets = [2, 48], sizes = [2, 48], strides = [1, 1]} : vector<4x96xf32> to vector<2x48xf32>
    %90 = vector.extract_strided_slice %9 {offsets = [1, 0, 0], sizes = [1, 2, 48], strides = [1, 1, 1]} : vector<8x2x96xf32> to vector<1x2x48xf32>
    %91 = vector.shape_cast %90 : vector<1x2x48xf32> to vector<2x48xf32>
    %92 = vector.extract_strided_slice %9 {offsets = [6, 0, 48], sizes = [1, 2, 48], strides = [1, 1, 1]} : vector<8x2x96xf32> to vector<1x2x48xf32>
    %93 = vector.shape_cast %92 : vector<1x2x48xf32> to vector<2x48xf32>
    %94 = vector.extract_strided_slice %91 {offsets = [0, 0], sizes = [2, 16], strides = [1, 1]} : vector<2x48xf32> to vector<2x16xf32>
    %95 = vector.extract_strided_slice %88 {offsets = [0, 0], sizes = [2, 16], strides = [1, 1]} : vector<2x48xf32> to vector<2x16xf32>
    %96 = arith.addf %94, %95 : vector<2x16xf32>
    %97 = arith.negf %96 : vector<2x16xf32>
    %98 = math.exp %97 : vector<2x16xf32>
    %cst_29 = arith.constant 1.000000e+00 : f32
    %99 = vector.broadcast %cst_29 : f32 to vector<2x16xf32>
    %100 = arith.addf %99, %98 : vector<2x16xf32>
    %101 = arith.divf %99, %100 : vector<2x16xf32>
    %102 = vector.extract_strided_slice %91 {offsets = [0, 16], sizes = [2, 16], strides = [1, 1]} : vector<2x48xf32> to vector<2x16xf32>
    %103 = vector.extract_strided_slice %88 {offsets = [0, 16], sizes = [2, 16], strides = [1, 1]} : vector<2x48xf32> to vector<2x16xf32>
    %104 = arith.addf %102, %103 : vector<2x16xf32>
    %105 = arith.negf %104 : vector<2x16xf32>
    %106 = math.exp %105 : vector<2x16xf32>
    %cst_30 = arith.constant 1.000000e+00 : f32
    %107 = vector.broadcast %cst_30 : f32 to vector<2x16xf32>
    %108 = arith.addf %107, %106 : vector<2x16xf32>
    %109 = arith.divf %107, %108 : vector<2x16xf32>
    %110 = vector.extract_strided_slice %91 {offsets = [0, 32], sizes = [2, 16], strides = [1, 1]} : vector<2x48xf32> to vector<2x16xf32>
    %111 = vector.extract_strided_slice %88 {offsets = [0, 32], sizes = [2, 16], strides = [1, 1]} : vector<2x48xf32> to vector<2x16xf32>
    %112 = arith.mulf %101, %111 : vector<2x16xf32>
    %113 = arith.addf %110, %112 : vector<2x16xf32>
    %114 = math.tanh %113 : vector<2x16xf32>
    %cst_31 = arith.constant 1.000000e+00 : f32
    %115 = vector.broadcast %cst_31 : f32 to vector<2x16xf32>
    %116 = arith.subf %115, %109 : vector<2x16xf32>
    %117 = arith.mulf %116, %114 : vector<2x16xf32>
    %118 = arith.mulf %109, %51 : vector<2x16xf32>
    %119 = arith.addf %117, %118 : vector<2x16xf32>
    %120 = vector.extract_strided_slice %93 {offsets = [0, 0], sizes = [2, 16], strides = [1, 1]} : vector<2x48xf32> to vector<2x16xf32>
    %121 = vector.extract_strided_slice %89 {offsets = [0, 0], sizes = [2, 16], strides = [1, 1]} : vector<2x48xf32> to vector<2x16xf32>
    %122 = arith.addf %120, %121 : vector<2x16xf32>
    %123 = arith.negf %122 : vector<2x16xf32>
    %124 = math.exp %123 : vector<2x16xf32>
    %cst_32 = arith.constant 1.000000e+00 : f32
    %125 = vector.broadcast %cst_32 : f32 to vector<2x16xf32>
    %126 = arith.addf %125, %124 : vector<2x16xf32>
    %127 = arith.divf %125, %126 : vector<2x16xf32>
    %128 = vector.extract_strided_slice %93 {offsets = [0, 16], sizes = [2, 16], strides = [1, 1]} : vector<2x48xf32> to vector<2x16xf32>
    %129 = vector.extract_strided_slice %89 {offsets = [0, 16], sizes = [2, 16], strides = [1, 1]} : vector<2x48xf32> to vector<2x16xf32>
    %130 = arith.addf %128, %129 : vector<2x16xf32>
    %131 = arith.negf %130 : vector<2x16xf32>
    %132 = math.exp %131 : vector<2x16xf32>
    %cst_33 = arith.constant 1.000000e+00 : f32
    %133 = vector.broadcast %cst_33 : f32 to vector<2x16xf32>
    %134 = arith.addf %133, %132 : vector<2x16xf32>
    %135 = arith.divf %133, %134 : vector<2x16xf32>
    %136 = vector.extract_strided_slice %93 {offsets = [0, 32], sizes = [2, 16], strides = [1, 1]} : vector<2x48xf32> to vector<2x16xf32>
    %137 = vector.extract_strided_slice %89 {offsets = [0, 32], sizes = [2, 16], strides = [1, 1]} : vector<2x48xf32> to vector<2x16xf32>
    %138 = arith.mulf %127, %137 : vector<2x16xf32>
    %139 = arith.addf %136, %138 : vector<2x16xf32>
    %140 = math.tanh %139 : vector<2x16xf32>
    %cst_34 = arith.constant 1.000000e+00 : f32
    %141 = vector.broadcast %cst_34 : f32 to vector<2x16xf32>
    %142 = arith.subf %141, %135 : vector<2x16xf32>
    %143 = arith.mulf %142, %140 : vector<2x16xf32>
    %144 = arith.mulf %135, %77 : vector<2x16xf32>
    %145 = arith.addf %143, %144 : vector<2x16xf32>
    %c1 = arith.constant 1 : index
    %c0_35 = arith.constant 0 : index
    %c0_36 = arith.constant 0 : index
    %146 = vector.load %arg15[%c1, %c0_35, %c0_36] : memref<8x2x16xf32, #tpu.memory_space<vmem>>, vector<1x2x16xf32>
    %147 = vector.shape_cast %146 : vector<1x2x16xf32> to vector<2x16xf32>
    %148 = vector.shape_cast %119 : vector<2x16xf32> to vector<1x2x16xf32>
    tpu.vector_store %arg15[%c1, %c0_35, %c0_36], %148 {strides = array<i32>} : memref<8x2x16xf32, #tpu.memory_space<vmem>>, vector<1x2x16xf32>,
    %c6 = arith.constant 6 : index
    %c0_37 = arith.constant 0 : index
    %c0_38 = arith.constant 0 : index
    %149 = vector.load %arg16[%c6, %c0_37, %c0_38] : memref<8x2x16xf32, #tpu.memory_space<vmem>>, vector<1x2x16xf32>
    %150 = vector.shape_cast %149 : vector<1x2x16xf32> to vector<2x16xf32>
    %151 = vector.shape_cast %145 : vector<2x16xf32> to vector<1x2x16xf32>
    tpu.vector_store %arg16[%c6, %c0_37, %c0_38], %151 {strides = array<i32>} : memref<8x2x16xf32, #tpu.memory_space<vmem>>, vector<1x2x16xf32>,
    %152 = tpu.concatenate %119, %145 in 0 : vector<2x16xf32>, vector<2x16xf32> -> vector<4x16xf32>
    %cst_39 = arith.constant dense<0.000000e+00> : vector<4x96xf32>
    %153 = tpu.matmul %152, %11, %cst_39 {dimension_numbers = #tpu.dot_dimension_numbers<[1], [0], [0], [1], [0, 0, 1, 1], [], []>} : vector<4x16xf32>, vector<16x96xf32>, vector<4x96xf32> -> vector<4x96xf32>
    %154 = vector.broadcast %13 : vector<1x96xf32> to vector<4x96xf32>
    %155 = arith.addf %153, %154 : vector<4x96xf32>
    %156 = vector.extract_strided_slice %155 {offsets = [0, 0], sizes = [2, 48], strides = [1, 1]} : vector<4x96xf32> to vector<2x48xf32>
    %157 = vector.extract_strided_slice %155 {offsets = [2, 48], sizes = [2, 48], strides = [1, 1]} : vector<4x96xf32> to vector<2x48xf32>
    %158 = vector.extract_strided_slice %9 {offsets = [2, 0, 0], sizes = [1, 2, 48], strides = [1, 1, 1]} : vector<8x2x96xf32> to vector<1x2x48xf32>
    %159 = vector.shape_cast %158 : vector<1x2x48xf32> to vector<2x48xf32>
    %160 = vector.extract_strided_slice %9 {offsets = [5, 0, 48], sizes = [1, 2, 48], strides = [1, 1, 1]} : vector<8x2x96xf32> to vector<1x2x48xf32>
    %161 = vector.shape_cast %160 : vector<1x2x48xf32> to vector<2x48xf32>
    %162 = vector.extract_strided_slice %159 {offsets = [0, 0], sizes = [2, 16], strides = [1, 1]} : vector<2x48xf32> to vector<2x16xf32>
    %163 = vector.extract_strided_slice %156 {offsets = [0, 0], sizes = [2, 16], strides = [1, 1]} : vector<2x48xf32> to vector<2x16xf32>
    %164 = arith.addf %162, %163 : vector<2x16xf32>
    %165 = arith.negf %164 : vector<2x16xf32>
    %166 = math.exp %165 : vector<2x16xf32>
    %cst_40 = arith.constant 1.000000e+00 : f32
    %167 = vector.broadcast %cst_40 : f32 to vector<2x16xf32>
    %168 = arith.addf %167, %166 : vector<2x16xf32>
    %169 = arith.divf %167, %168 : vector<2x16xf32>
    %170 = vector.extract_strided_slice %159 {offsets = [0, 16], sizes = [2, 16], strides = [1, 1]} : vector<2x48xf32> to vector<2x16xf32>
    %171 = vector.extract_strided_slice %156 {offsets = [0, 16], sizes = [2, 16], strides = [1, 1]} : vector<2x48xf32> to vector<2x16xf32>
    %172 = arith.addf %170, %171 : vector<2x16xf32>
    %173 = arith.negf %172 : vector<2x16xf32>
    %174 = math.exp %173 : vector<2x16xf32>
    %cst_41 = arith.constant 1.000000e+00 : f32
    %175 = vector.broadcast %cst_41 : f32 to vector<2x16xf32>
    %176 = arith.addf %175, %174 : vector<2x16xf32>
    %177 = arith.divf %175, %176 : vector<2x16xf32>
    %178 = vector.extract_strided_slice %159 {offsets = [0, 32], sizes = [2, 16], strides = [1, 1]} : vector<2x48xf32> to vector<2x16xf32>
    %179 = vector.extract_strided_slice %156 {offsets = [0, 32], sizes = [2, 16], strides = [1, 1]} : vector<2x48xf32> to vector<2x16xf32>
    %180 = arith.mulf %169, %179 : vector<2x16xf32>
    %181 = arith.addf %178, %180 : vector<2x16xf32>
    %182 = math.tanh %181 : vector<2x16xf32>
    %cst_42 = arith.constant 1.000000e+00 : f32
    %183 = vector.broadcast %cst_42 : f32 to vector<2x16xf32>
    %184 = arith.subf %183, %177 : vector<2x16xf32>
    %185 = arith.mulf %184, %182 : vector<2x16xf32>
    %186 = arith.mulf %177, %119 : vector<2x16xf32>
    %187 = arith.addf %185, %186 : vector<2x16xf32>
    %188 = vector.extract_strided_slice %161 {offsets = [0, 0], sizes = [2, 16], strides = [1, 1]} : vector<2x48xf32> to vector<2x16xf32>
    %189 = vector.extract_strided_slice %157 {offsets = [0, 0], sizes = [2, 16], strides = [1, 1]} : vector<2x48xf32> to vector<2x16xf32>
    %190 = arith.addf %188, %189 : vector<2x16xf32>
    %191 = arith.negf %190 : vector<2x16xf32>
    %192 = math.exp %191 : vector<2x16xf32>
    %cst_43 = arith.constant 1.000000e+00 : f32
    %193 = vector.broadcast %cst_43 : f32 to vector<2x16xf32>
    %194 = arith.addf %193, %192 : vector<2x16xf32>
    %195 = arith.divf %193, %194 : vector<2x16xf32>
    %196 = vector.extract_strided_slice %161 {offsets = [0, 16], sizes = [2, 16], strides = [1, 1]} : vector<2x48xf32> to vector<2x16xf32>
    %197 = vector.extract_strided_slice %157 {offsets = [0, 16], sizes = [2, 16], strides = [1, 1]} : vector<2x48xf32> to vector<2x16xf32>
    %198 = arith.addf %196, %197 : vector<2x16xf32>
    %199 = arith.negf %198 : vector<2x16xf32>
    %200 = math.exp %199 : vector<2x16xf32>
    %cst_44 = arith.constant 1.000000e+00 : f32
    %201 = vector.broadcast %cst_44 : f32 to vector<2x16xf32>
    %202 = arith.addf %201, %200 : vector<2x16xf32>
    %203 = arith.divf %201, %202 : vector<2x16xf32>
    %204 = vector.extract_strided_slice %161 {offsets = [0, 32], sizes = [2, 16], strides = [1, 1]} : vector<2x48xf32> to vector<2x16xf32>
    %205 = vector.extract_strided_slice %157 {offsets = [0, 32], sizes = [2, 16], strides = [1, 1]} : vector<2x48xf32> to vector<2x16xf32>
    %206 = arith.mulf %195, %205 : vector<2x16xf32>
    %207 = arith.addf %204, %206 : vector<2x16xf32>
    %208 = math.tanh %207 : vector<2x16xf32>
    %cst_45 = arith.constant 1.000000e+00 : f32
    %209 = vector.broadcast %cst_45 : f32 to vector<2x16xf32>
    %210 = arith.subf %209, %203 : vector<2x16xf32>
    %211 = arith.mulf %210, %208 : vector<2x16xf32>
    %212 = arith.mulf %203, %145 : vector<2x16xf32>
    %213 = arith.addf %211, %212 : vector<2x16xf32>
    %c2 = arith.constant 2 : index
    %c0_46 = arith.constant 0 : index
    %c0_47 = arith.constant 0 : index
    %214 = vector.load %arg15[%c2, %c0_46, %c0_47] : memref<8x2x16xf32, #tpu.memory_space<vmem>>, vector<1x2x16xf32>
    %215 = vector.shape_cast %214 : vector<1x2x16xf32> to vector<2x16xf32>
    %216 = vector.shape_cast %187 : vector<2x16xf32> to vector<1x2x16xf32>
    tpu.vector_store %arg15[%c2, %c0_46, %c0_47], %216 {strides = array<i32>} : memref<8x2x16xf32, #tpu.memory_space<vmem>>, vector<1x2x16xf32>,
    %c5 = arith.constant 5 : index
    %c0_48 = arith.constant 0 : index
    %c0_49 = arith.constant 0 : index
    %217 = vector.load %arg16[%c5, %c0_48, %c0_49] : memref<8x2x16xf32, #tpu.memory_space<vmem>>, vector<1x2x16xf32>
    %218 = vector.shape_cast %217 : vector<1x2x16xf32> to vector<2x16xf32>
    %219 = vector.shape_cast %213 : vector<2x16xf32> to vector<1x2x16xf32>
    tpu.vector_store %arg16[%c5, %c0_48, %c0_49], %219 {strides = array<i32>} : memref<8x2x16xf32, #tpu.memory_space<vmem>>, vector<1x2x16xf32>,
    %220 = tpu.concatenate %187, %213 in 0 : vector<2x16xf32>, vector<2x16xf32> -> vector<4x16xf32>
    %cst_50 = arith.constant dense<0.000000e+00> : vector<4x96xf32>
    %221 = tpu.matmul %220, %11, %cst_50 {dimension_numbers = #tpu.dot_dimension_numbers<[1], [0], [0], [1], [0, 0, 1, 1], [], []>} : vector<4x16xf32>, vector<16x96xf32>, vector<4x96xf32> -> vector<4x96xf32>
    %222 = vector.broadcast %13 : vector<1x96xf32> to vector<4x96xf32>
    %223 = arith.addf %221, %222 : vector<4x96xf32>
    %224 = vector.extract_strided_slice %223 {offsets = [0, 0], sizes = [2, 48], strides = [1, 1]} : vector<4x96xf32> to vector<2x48xf32>
    %225 = vector.extract_strided_slice %223 {offsets = [2, 48], sizes = [2, 48], strides = [1, 1]} : vector<4x96xf32> to vector<2x48xf32>
    %226 = vector.extract_strided_slice %9 {offsets = [3, 0, 0], sizes = [1, 2, 48], strides = [1, 1, 1]} : vector<8x2x96xf32> to vector<1x2x48xf32>
    %227 = vector.shape_cast %226 : vector<1x2x48xf32> to vector<2x48xf32>
    %228 = vector.extract_strided_slice %9 {offsets = [4, 0, 48], sizes = [1, 2, 48], strides = [1, 1, 1]} : vector<8x2x96xf32> to vector<1x2x48xf32>
    %229 = vector.shape_cast %228 : vector<1x2x48xf32> to vector<2x48xf32>
    %230 = vector.extract_strided_slice %227 {offsets = [0, 0], sizes = [2, 16], strides = [1, 1]} : vector<2x48xf32> to vector<2x16xf32>
    %231 = vector.extract_strided_slice %224 {offsets = [0, 0], sizes = [2, 16], strides = [1, 1]} : vector<2x48xf32> to vector<2x16xf32>
    %232 = arith.addf %230, %231 : vector<2x16xf32>
    %233 = arith.negf %232 : vector<2x16xf32>
    %234 = math.exp %233 : vector<2x16xf32>
    %cst_51 = arith.constant 1.000000e+00 : f32
    %235 = vector.broadcast %cst_51 : f32 to vector<2x16xf32>
    %236 = arith.addf %235, %234 : vector<2x16xf32>
    %237 = arith.divf %235, %236 : vector<2x16xf32>
    %238 = vector.extract_strided_slice %227 {offsets = [0, 16], sizes = [2, 16], strides = [1, 1]} : vector<2x48xf32> to vector<2x16xf32>
    %239 = vector.extract_strided_slice %224 {offsets = [0, 16], sizes = [2, 16], strides = [1, 1]} : vector<2x48xf32> to vector<2x16xf32>
    %240 = arith.addf %238, %239 : vector<2x16xf32>
    %241 = arith.negf %240 : vector<2x16xf32>
    %242 = math.exp %241 : vector<2x16xf32>
    %cst_52 = arith.constant 1.000000e+00 : f32
    %243 = vector.broadcast %cst_52 : f32 to vector<2x16xf32>
    %244 = arith.addf %243, %242 : vector<2x16xf32>
    %245 = arith.divf %243, %244 : vector<2x16xf32>
    %246 = vector.extract_strided_slice %227 {offsets = [0, 32], sizes = [2, 16], strides = [1, 1]} : vector<2x48xf32> to vector<2x16xf32>
    %247 = vector.extract_strided_slice %224 {offsets = [0, 32], sizes = [2, 16], strides = [1, 1]} : vector<2x48xf32> to vector<2x16xf32>
    %248 = arith.mulf %237, %247 : vector<2x16xf32>
    %249 = arith.addf %246, %248 : vector<2x16xf32>
    %250 = math.tanh %249 : vector<2x16xf32>
    %cst_53 = arith.constant 1.000000e+00 : f32
    %251 = vector.broadcast %cst_53 : f32 to vector<2x16xf32>
    %252 = arith.subf %251, %245 : vector<2x16xf32>
    %253 = arith.mulf %252, %250 : vector<2x16xf32>
    %254 = arith.mulf %245, %187 : vector<2x16xf32>
    %255 = arith.addf %253, %254 : vector<2x16xf32>
    %256 = vector.extract_strided_slice %229 {offsets = [0, 0], sizes = [2, 16], strides = [1, 1]} : vector<2x48xf32> to vector<2x16xf32>
    %257 = vector.extract_strided_slice %225 {offsets = [0, 0], sizes = [2, 16], strides = [1, 1]} : vector<2x48xf32> to vector<2x16xf32>
    %258 = arith.addf %256, %257 : vector<2x16xf32>
    %259 = arith.negf %258 : vector<2x16xf32>
    %260 = math.exp %259 : vector<2x16xf32>
    %cst_54 = arith.constant 1.000000e+00 : f32
    %261 = vector.broadcast %cst_54 : f32 to vector<2x16xf32>
    %262 = arith.addf %261, %260 : vector<2x16xf32>
    %263 = arith.divf %261, %262 : vector<2x16xf32>
    %264 = vector.extract_strided_slice %229 {offsets = [0, 16], sizes = [2, 16], strides = [1, 1]} : vector<2x48xf32> to vector<2x16xf32>
    %265 = vector.extract_strided_slice %225 {offsets = [0, 16], sizes = [2, 16], strides = [1, 1]} : vector<2x48xf32> to vector<2x16xf32>
    %266 = arith.addf %264, %265 : vector<2x16xf32>
    %267 = arith.negf %266 : vector<2x16xf32>
    %268 = math.exp %267 : vector<2x16xf32>
    %cst_55 = arith.constant 1.000000e+00 : f32
    %269 = vector.broadcast %cst_55 : f32 to vector<2x16xf32>
    %270 = arith.addf %269, %268 : vector<2x16xf32>
    %271 = arith.divf %269, %270 : vector<2x16xf32>
    %272 = vector.extract_strided_slice %229 {offsets = [0, 32], sizes = [2, 16], strides = [1, 1]} : vector<2x48xf32> to vector<2x16xf32>
    %273 = vector.extract_strided_slice %225 {offsets = [0, 32], sizes = [2, 16], strides = [1, 1]} : vector<2x48xf32> to vector<2x16xf32>
    %274 = arith.mulf %263, %273 : vector<2x16xf32>
    %275 = arith.addf %272, %274 : vector<2x16xf32>
    %276 = math.tanh %275 : vector<2x16xf32>
    %cst_56 = arith.constant 1.000000e+00 : f32
    %277 = vector.broadcast %cst_56 : f32 to vector<2x16xf32>
    %278 = arith.subf %277, %271 : vector<2x16xf32>
    %279 = arith.mulf %278, %276 : vector<2x16xf32>
    %280 = arith.mulf %271, %213 : vector<2x16xf32>
    %281 = arith.addf %279, %280 : vector<2x16xf32>
    %c3 = arith.constant 3 : index
    %c0_57 = arith.constant 0 : index
    %c0_58 = arith.constant 0 : index
    %282 = vector.load %arg15[%c3, %c0_57, %c0_58] : memref<8x2x16xf32, #tpu.memory_space<vmem>>, vector<1x2x16xf32>
    %283 = vector.shape_cast %282 : vector<1x2x16xf32> to vector<2x16xf32>
    %284 = vector.shape_cast %255 : vector<2x16xf32> to vector<1x2x16xf32>
    tpu.vector_store %arg15[%c3, %c0_57, %c0_58], %284 {strides = array<i32>} : memref<8x2x16xf32, #tpu.memory_space<vmem>>, vector<1x2x16xf32>,
    %c4 = arith.constant 4 : index
    %c0_59 = arith.constant 0 : index
    %c0_60 = arith.constant 0 : index
    %285 = vector.load %arg16[%c4, %c0_59, %c0_60] : memref<8x2x16xf32, #tpu.memory_space<vmem>>, vector<1x2x16xf32>
    %286 = vector.shape_cast %285 : vector<1x2x16xf32> to vector<2x16xf32>
    %287 = vector.shape_cast %281 : vector<2x16xf32> to vector<1x2x16xf32>
    tpu.vector_store %arg16[%c4, %c0_59, %c0_60], %287 {strides = array<i32>} : memref<8x2x16xf32, #tpu.memory_space<vmem>>, vector<1x2x16xf32>,
    %288 = tpu.concatenate %255, %281 in 0 : vector<2x16xf32>, vector<2x16xf32> -> vector<4x16xf32>
    %cst_61 = arith.constant dense<0.000000e+00> : vector<4x96xf32>
    %289 = tpu.matmul %288, %11, %cst_61 {dimension_numbers = #tpu.dot_dimension_numbers<[1], [0], [0], [1], [0, 0, 1, 1], [], []>} : vector<4x16xf32>, vector<16x96xf32>, vector<4x96xf32> -> vector<4x96xf32>
    %290 = vector.broadcast %13 : vector<1x96xf32> to vector<4x96xf32>
    %291 = arith.addf %289, %290 : vector<4x96xf32>
    %292 = vector.extract_strided_slice %291 {offsets = [0, 0], sizes = [2, 48], strides = [1, 1]} : vector<4x96xf32> to vector<2x48xf32>
    %293 = vector.extract_strided_slice %291 {offsets = [2, 48], sizes = [2, 48], strides = [1, 1]} : vector<4x96xf32> to vector<2x48xf32>
    %294 = vector.extract_strided_slice %9 {offsets = [4, 0, 0], sizes = [1, 2, 48], strides = [1, 1, 1]} : vector<8x2x96xf32> to vector<1x2x48xf32>
    %295 = vector.shape_cast %294 : vector<1x2x48xf32> to vector<2x48xf32>
    %296 = vector.extract_strided_slice %9 {offsets = [3, 0, 48], sizes = [1, 2, 48], strides = [1, 1, 1]} : vector<8x2x96xf32> to vector<1x2x48xf32>
    %297 = vector.shape_cast %296 : vector<1x2x48xf32> to vector<2x48xf32>
    %298 = vector.extract_strided_slice %295 {offsets = [0, 0], sizes = [2, 16], strides = [1, 1]} : vector<2x48xf32> to vector<2x16xf32>
    %299 = vector.extract_strided_slice %292 {offsets = [0, 0], sizes = [2, 16], strides = [1, 1]} : vector<2x48xf32> to vector<2x16xf32>
    %300 = arith.addf %298, %299 : vector<2x16xf32>
    %301 = arith.negf %300 : vector<2x16xf32>
    %302 = math.exp %301 : vector<2x16xf32>
    %cst_62 = arith.constant 1.000000e+00 : f32
    %303 = vector.broadcast %cst_62 : f32 to vector<2x16xf32>
    %304 = arith.addf %303, %302 : vector<2x16xf32>
    %305 = arith.divf %303, %304 : vector<2x16xf32>
    %306 = vector.extract_strided_slice %295 {offsets = [0, 16], sizes = [2, 16], strides = [1, 1]} : vector<2x48xf32> to vector<2x16xf32>
    %307 = vector.extract_strided_slice %292 {offsets = [0, 16], sizes = [2, 16], strides = [1, 1]} : vector<2x48xf32> to vector<2x16xf32>
    %308 = arith.addf %306, %307 : vector<2x16xf32>
    %309 = arith.negf %308 : vector<2x16xf32>
    %310 = math.exp %309 : vector<2x16xf32>
    %cst_63 = arith.constant 1.000000e+00 : f32
    %311 = vector.broadcast %cst_63 : f32 to vector<2x16xf32>
    %312 = arith.addf %311, %310 : vector<2x16xf32>
    %313 = arith.divf %311, %312 : vector<2x16xf32>
    %314 = vector.extract_strided_slice %295 {offsets = [0, 32], sizes = [2, 16], strides = [1, 1]} : vector<2x48xf32> to vector<2x16xf32>
    %315 = vector.extract_strided_slice %292 {offsets = [0, 32], sizes = [2, 16], strides = [1, 1]} : vector<2x48xf32> to vector<2x16xf32>
    %316 = arith.mulf %305, %315 : vector<2x16xf32>
    %317 = arith.addf %314, %316 : vector<2x16xf32>
    %318 = math.tanh %317 : vector<2x16xf32>
    %cst_64 = arith.constant 1.000000e+00 : f32
    %319 = vector.broadcast %cst_64 : f32 to vector<2x16xf32>
    %320 = arith.subf %319, %313 : vector<2x16xf32>
    %321 = arith.mulf %320, %318 : vector<2x16xf32>
    %322 = arith.mulf %313, %255 : vector<2x16xf32>
    %323 = arith.addf %321, %322 : vector<2x16xf32>
    %324 = vector.extract_strided_slice %297 {offsets = [0, 0], sizes = [2, 16], strides = [1, 1]} : vector<2x48xf32> to vector<2x16xf32>
    %325 = vector.extract_strided_slice %293 {offsets = [0, 0], sizes = [2, 16], strides = [1, 1]} : vector<2x48xf32> to vector<2x16xf32>
    %326 = arith.addf %324, %325 : vector<2x16xf32>
    %327 = arith.negf %326 : vector<2x16xf32>
    %328 = math.exp %327 : vector<2x16xf32>
    %cst_65 = arith.constant 1.000000e+00 : f32
    %329 = vector.broadcast %cst_65 : f32 to vector<2x16xf32>
    %330 = arith.addf %329, %328 : vector<2x16xf32>
    %331 = arith.divf %329, %330 : vector<2x16xf32>
    %332 = vector.extract_strided_slice %297 {offsets = [0, 16], sizes = [2, 16], strides = [1, 1]} : vector<2x48xf32> to vector<2x16xf32>
    %333 = vector.extract_strided_slice %293 {offsets = [0, 16], sizes = [2, 16], strides = [1, 1]} : vector<2x48xf32> to vector<2x16xf32>
    %334 = arith.addf %332, %333 : vector<2x16xf32>
    %335 = arith.negf %334 : vector<2x16xf32>
    %336 = math.exp %335 : vector<2x16xf32>
    %cst_66 = arith.constant 1.000000e+00 : f32
    %337 = vector.broadcast %cst_66 : f32 to vector<2x16xf32>
    %338 = arith.addf %337, %336 : vector<2x16xf32>
    %339 = arith.divf %337, %338 : vector<2x16xf32>
    %340 = vector.extract_strided_slice %297 {offsets = [0, 32], sizes = [2, 16], strides = [1, 1]} : vector<2x48xf32> to vector<2x16xf32>
    %341 = vector.extract_strided_slice %293 {offsets = [0, 32], sizes = [2, 16], strides = [1, 1]} : vector<2x48xf32> to vector<2x16xf32>
    %342 = arith.mulf %331, %341 : vector<2x16xf32>
    %343 = arith.addf %340, %342 : vector<2x16xf32>
    %344 = math.tanh %343 : vector<2x16xf32>
    %cst_67 = arith.constant 1.000000e+00 : f32
    %345 = vector.broadcast %cst_67 : f32 to vector<2x16xf32>
    %346 = arith.subf %345, %339 : vector<2x16xf32>
    %347 = arith.mulf %346, %344 : vector<2x16xf32>
    %348 = arith.mulf %339, %281 : vector<2x16xf32>
    %349 = arith.addf %347, %348 : vector<2x16xf32>
    %c4_68 = arith.constant 4 : index
    %c0_69 = arith.constant 0 : index
    %c0_70 = arith.constant 0 : index
    %350 = vector.load %arg15[%c4_68, %c0_69, %c0_70] : memref<8x2x16xf32, #tpu.memory_space<vmem>>, vector<1x2x16xf32>
    %351 = vector.shape_cast %350 : vector<1x2x16xf32> to vector<2x16xf32>
    %352 = vector.shape_cast %323 : vector<2x16xf32> to vector<1x2x16xf32>
    tpu.vector_store %arg15[%c4_68, %c0_69, %c0_70], %352 {strides = array<i32>} : memref<8x2x16xf32, #tpu.memory_space<vmem>>, vector<1x2x16xf32>,
    %c3_71 = arith.constant 3 : index
    %c0_72 = arith.constant 0 : index
    %c0_73 = arith.constant 0 : index
    %353 = vector.load %arg16[%c3_71, %c0_72, %c0_73] : memref<8x2x16xf32, #tpu.memory_space<vmem>>, vector<1x2x16xf32>
    %354 = vector.shape_cast %353 : vector<1x2x16xf32> to vector<2x16xf32>
    %355 = vector.shape_cast %349 : vector<2x16xf32> to vector<1x2x16xf32>
    tpu.vector_store %arg16[%c3_71, %c0_72, %c0_73], %355 {strides = array<i32>} : memref<8x2x16xf32, #tpu.memory_space<vmem>>, vector<1x2x16xf32>,
    %356 = tpu.concatenate %323, %349 in 0 : vector<2x16xf32>, vector<2x16xf32> -> vector<4x16xf32>
    %cst_74 = arith.constant dense<0.000000e+00> : vector<4x96xf32>
    %357 = tpu.matmul %356, %11, %cst_74 {dimension_numbers = #tpu.dot_dimension_numbers<[1], [0], [0], [1], [0, 0, 1, 1], [], []>} : vector<4x16xf32>, vector<16x96xf32>, vector<4x96xf32> -> vector<4x96xf32>
    %358 = vector.broadcast %13 : vector<1x96xf32> to vector<4x96xf32>
    %359 = arith.addf %357, %358 : vector<4x96xf32>
    %360 = vector.extract_strided_slice %359 {offsets = [0, 0], sizes = [2, 48], strides = [1, 1]} : vector<4x96xf32> to vector<2x48xf32>
    %361 = vector.extract_strided_slice %359 {offsets = [2, 48], sizes = [2, 48], strides = [1, 1]} : vector<4x96xf32> to vector<2x48xf32>
    %362 = vector.extract_strided_slice %9 {offsets = [5, 0, 0], sizes = [1, 2, 48], strides = [1, 1, 1]} : vector<8x2x96xf32> to vector<1x2x48xf32>
    %363 = vector.shape_cast %362 : vector<1x2x48xf32> to vector<2x48xf32>
    %364 = vector.extract_strided_slice %9 {offsets = [2, 0, 48], sizes = [1, 2, 48], strides = [1, 1, 1]} : vector<8x2x96xf32> to vector<1x2x48xf32>
    %365 = vector.shape_cast %364 : vector<1x2x48xf32> to vector<2x48xf32>
    %366 = vector.extract_strided_slice %363 {offsets = [0, 0], sizes = [2, 16], strides = [1, 1]} : vector<2x48xf32> to vector<2x16xf32>
    %367 = vector.extract_strided_slice %360 {offsets = [0, 0], sizes = [2, 16], strides = [1, 1]} : vector<2x48xf32> to vector<2x16xf32>
    %368 = arith.addf %366, %367 : vector<2x16xf32>
    %369 = arith.negf %368 : vector<2x16xf32>
    %370 = math.exp %369 : vector<2x16xf32>
    %cst_75 = arith.constant 1.000000e+00 : f32
    %371 = vector.broadcast %cst_75 : f32 to vector<2x16xf32>
    %372 = arith.addf %371, %370 : vector<2x16xf32>
    %373 = arith.divf %371, %372 : vector<2x16xf32>
    %374 = vector.extract_strided_slice %363 {offsets = [0, 16], sizes = [2, 16], strides = [1, 1]} : vector<2x48xf32> to vector<2x16xf32>
    %375 = vector.extract_strided_slice %360 {offsets = [0, 16], sizes = [2, 16], strides = [1, 1]} : vector<2x48xf32> to vector<2x16xf32>
    %376 = arith.addf %374, %375 : vector<2x16xf32>
    %377 = arith.negf %376 : vector<2x16xf32>
    %378 = math.exp %377 : vector<2x16xf32>
    %cst_76 = arith.constant 1.000000e+00 : f32
    %379 = vector.broadcast %cst_76 : f32 to vector<2x16xf32>
    %380 = arith.addf %379, %378 : vector<2x16xf32>
    %381 = arith.divf %379, %380 : vector<2x16xf32>
    %382 = vector.extract_strided_slice %363 {offsets = [0, 32], sizes = [2, 16], strides = [1, 1]} : vector<2x48xf32> to vector<2x16xf32>
    %383 = vector.extract_strided_slice %360 {offsets = [0, 32], sizes = [2, 16], strides = [1, 1]} : vector<2x48xf32> to vector<2x16xf32>
    %384 = arith.mulf %373, %383 : vector<2x16xf32>
    %385 = arith.addf %382, %384 : vector<2x16xf32>
    %386 = math.tanh %385 : vector<2x16xf32>
    %cst_77 = arith.constant 1.000000e+00 : f32
    %387 = vector.broadcast %cst_77 : f32 to vector<2x16xf32>
    %388 = arith.subf %387, %381 : vector<2x16xf32>
    %389 = arith.mulf %388, %386 : vector<2x16xf32>
    %390 = arith.mulf %381, %323 : vector<2x16xf32>
    %391 = arith.addf %389, %390 : vector<2x16xf32>
    %392 = vector.extract_strided_slice %365 {offsets = [0, 0], sizes = [2, 16], strides = [1, 1]} : vector<2x48xf32> to vector<2x16xf32>
    %393 = vector.extract_strided_slice %361 {offsets = [0, 0], sizes = [2, 16], strides = [1, 1]} : vector<2x48xf32> to vector<2x16xf32>
    %394 = arith.addf %392, %393 : vector<2x16xf32>
    %395 = arith.negf %394 : vector<2x16xf32>
    %396 = math.exp %395 : vector<2x16xf32>
    %cst_78 = arith.constant 1.000000e+00 : f32
    %397 = vector.broadcast %cst_78 : f32 to vector<2x16xf32>
    %398 = arith.addf %397, %396 : vector<2x16xf32>
    %399 = arith.divf %397, %398 : vector<2x16xf32>
    %400 = vector.extract_strided_slice %365 {offsets = [0, 16], sizes = [2, 16], strides = [1, 1]} : vector<2x48xf32> to vector<2x16xf32>
    %401 = vector.extract_strided_slice %361 {offsets = [0, 16], sizes = [2, 16], strides = [1, 1]} : vector<2x48xf32> to vector<2x16xf32>
    %402 = arith.addf %400, %401 : vector<2x16xf32>
    %403 = arith.negf %402 : vector<2x16xf32>
    %404 = math.exp %403 : vector<2x16xf32>
    %cst_79 = arith.constant 1.000000e+00 : f32
    %405 = vector.broadcast %cst_79 : f32 to vector<2x16xf32>
    %406 = arith.addf %405, %404 : vector<2x16xf32>
    %407 = arith.divf %405, %406 : vector<2x16xf32>
    %408 = vector.extract_strided_slice %365 {offsets = [0, 32], sizes = [2, 16], strides = [1, 1]} : vector<2x48xf32> to vector<2x16xf32>
    %409 = vector.extract_strided_slice %361 {offsets = [0, 32], sizes = [2, 16], strides = [1, 1]} : vector<2x48xf32> to vector<2x16xf32>
    %410 = arith.mulf %399, %409 : vector<2x16xf32>
    %411 = arith.addf %408, %410 : vector<2x16xf32>
    %412 = math.tanh %411 : vector<2x16xf32>
    %cst_80 = arith.constant 1.000000e+00 : f32
    %413 = vector.broadcast %cst_80 : f32 to vector<2x16xf32>
    %414 = arith.subf %413, %407 : vector<2x16xf32>
    %415 = arith.mulf %414, %412 : vector<2x16xf32>
    %416 = arith.mulf %407, %349 : vector<2x16xf32>
    %417 = arith.addf %415, %416 : vector<2x16xf32>
    %c5_81 = arith.constant 5 : index
    %c0_82 = arith.constant 0 : index
    %c0_83 = arith.constant 0 : index
    %418 = vector.load %arg15[%c5_81, %c0_82, %c0_83] : memref<8x2x16xf32, #tpu.memory_space<vmem>>, vector<1x2x16xf32>
    %419 = vector.shape_cast %418 : vector<1x2x16xf32> to vector<2x16xf32>
    %420 = vector.shape_cast %391 : vector<2x16xf32> to vector<1x2x16xf32>
    tpu.vector_store %arg15[%c5_81, %c0_82, %c0_83], %420 {strides = array<i32>} : memref<8x2x16xf32, #tpu.memory_space<vmem>>, vector<1x2x16xf32>,
    %c2_84 = arith.constant 2 : index
    %c0_85 = arith.constant 0 : index
    %c0_86 = arith.constant 0 : index
    %421 = vector.load %arg16[%c2_84, %c0_85, %c0_86] : memref<8x2x16xf32, #tpu.memory_space<vmem>>, vector<1x2x16xf32>
    %422 = vector.shape_cast %421 : vector<1x2x16xf32> to vector<2x16xf32>
    %423 = vector.shape_cast %417 : vector<2x16xf32> to vector<1x2x16xf32>
    tpu.vector_store %arg16[%c2_84, %c0_85, %c0_86], %423 {strides = array<i32>} : memref<8x2x16xf32, #tpu.memory_space<vmem>>, vector<1x2x16xf32>,
    %424 = tpu.concatenate %391, %417 in 0 : vector<2x16xf32>, vector<2x16xf32> -> vector<4x16xf32>
    %cst_87 = arith.constant dense<0.000000e+00> : vector<4x96xf32>
    %425 = tpu.matmul %424, %11, %cst_87 {dimension_numbers = #tpu.dot_dimension_numbers<[1], [0], [0], [1], [0, 0, 1, 1], [], []>} : vector<4x16xf32>, vector<16x96xf32>, vector<4x96xf32> -> vector<4x96xf32>
    %426 = vector.broadcast %13 : vector<1x96xf32> to vector<4x96xf32>
    %427 = arith.addf %425, %426 : vector<4x96xf32>
    %428 = vector.extract_strided_slice %427 {offsets = [0, 0], sizes = [2, 48], strides = [1, 1]} : vector<4x96xf32> to vector<2x48xf32>
    %429 = vector.extract_strided_slice %427 {offsets = [2, 48], sizes = [2, 48], strides = [1, 1]} : vector<4x96xf32> to vector<2x48xf32>
    %430 = vector.extract_strided_slice %9 {offsets = [6, 0, 0], sizes = [1, 2, 48], strides = [1, 1, 1]} : vector<8x2x96xf32> to vector<1x2x48xf32>
    %431 = vector.shape_cast %430 : vector<1x2x48xf32> to vector<2x48xf32>
    %432 = vector.extract_strided_slice %9 {offsets = [1, 0, 48], sizes = [1, 2, 48], strides = [1, 1, 1]} : vector<8x2x96xf32> to vector<1x2x48xf32>
    %433 = vector.shape_cast %432 : vector<1x2x48xf32> to vector<2x48xf32>
    %434 = vector.extract_strided_slice %431 {offsets = [0, 0], sizes = [2, 16], strides = [1, 1]} : vector<2x48xf32> to vector<2x16xf32>
    %435 = vector.extract_strided_slice %428 {offsets = [0, 0], sizes = [2, 16], strides = [1, 1]} : vector<2x48xf32> to vector<2x16xf32>
    %436 = arith.addf %434, %435 : vector<2x16xf32>
    %437 = arith.negf %436 : vector<2x16xf32>
    %438 = math.exp %437 : vector<2x16xf32>
    %cst_88 = arith.constant 1.000000e+00 : f32
    %439 = vector.broadcast %cst_88 : f32 to vector<2x16xf32>
    %440 = arith.addf %439, %438 : vector<2x16xf32>
    %441 = arith.divf %439, %440 : vector<2x16xf32>
    %442 = vector.extract_strided_slice %431 {offsets = [0, 16], sizes = [2, 16], strides = [1, 1]} : vector<2x48xf32> to vector<2x16xf32>
    %443 = vector.extract_strided_slice %428 {offsets = [0, 16], sizes = [2, 16], strides = [1, 1]} : vector<2x48xf32> to vector<2x16xf32>
    %444 = arith.addf %442, %443 : vector<2x16xf32>
    %445 = arith.negf %444 : vector<2x16xf32>
    %446 = math.exp %445 : vector<2x16xf32>
    %cst_89 = arith.constant 1.000000e+00 : f32
    %447 = vector.broadcast %cst_89 : f32 to vector<2x16xf32>
    %448 = arith.addf %447, %446 : vector<2x16xf32>
    %449 = arith.divf %447, %448 : vector<2x16xf32>
    %450 = vector.extract_strided_slice %431 {offsets = [0, 32], sizes = [2, 16], strides = [1, 1]} : vector<2x48xf32> to vector<2x16xf32>
    %451 = vector.extract_strided_slice %428 {offsets = [0, 32], sizes = [2, 16], strides = [1, 1]} : vector<2x48xf32> to vector<2x16xf32>
    %452 = arith.mulf %441, %451 : vector<2x16xf32>
    %453 = arith.addf %450, %452 : vector<2x16xf32>
    %454 = math.tanh %453 : vector<2x16xf32>
    %cst_90 = arith.constant 1.000000e+00 : f32
    %455 = vector.broadcast %cst_90 : f32 to vector<2x16xf32>
    %456 = arith.subf %455, %449 : vector<2x16xf32>
    %457 = arith.mulf %456, %454 : vector<2x16xf32>
    %458 = arith.mulf %449, %391 : vector<2x16xf32>
    %459 = arith.addf %457, %458 : vector<2x16xf32>
    %460 = vector.extract_strided_slice %433 {offsets = [0, 0], sizes = [2, 16], strides = [1, 1]} : vector<2x48xf32> to vector<2x16xf32>
    %461 = vector.extract_strided_slice %429 {offsets = [0, 0], sizes = [2, 16], strides = [1, 1]} : vector<2x48xf32> to vector<2x16xf32>
    %462 = arith.addf %460, %461 : vector<2x16xf32>
    %463 = arith.negf %462 : vector<2x16xf32>
    %464 = math.exp %463 : vector<2x16xf32>
    %cst_91 = arith.constant 1.000000e+00 : f32
    %465 = vector.broadcast %cst_91 : f32 to vector<2x16xf32>
    %466 = arith.addf %465, %464 : vector<2x16xf32>
    %467 = arith.divf %465, %466 : vector<2x16xf32>
    %468 = vector.extract_strided_slice %433 {offsets = [0, 16], sizes = [2, 16], strides = [1, 1]} : vector<2x48xf32> to vector<2x16xf32>
    %469 = vector.extract_strided_slice %429 {offsets = [0, 16], sizes = [2, 16], strides = [1, 1]} : vector<2x48xf32> to vector<2x16xf32>
    %470 = arith.addf %468, %469 : vector<2x16xf32>
    %471 = arith.negf %470 : vector<2x16xf32>
    %472 = math.exp %471 : vector<2x16xf32>
    %cst_92 = arith.constant 1.000000e+00 : f32
    %473 = vector.broadcast %cst_92 : f32 to vector<2x16xf32>
    %474 = arith.addf %473, %472 : vector<2x16xf32>
    %475 = arith.divf %473, %474 : vector<2x16xf32>
    %476 = vector.extract_strided_slice %433 {offsets = [0, 32], sizes = [2, 16], strides = [1, 1]} : vector<2x48xf32> to vector<2x16xf32>
    %477 = vector.extract_strided_slice %429 {offsets = [0, 32], sizes = [2, 16], strides = [1, 1]} : vector<2x48xf32> to vector<2x16xf32>
    %478 = arith.mulf %467, %477 : vector<2x16xf32>
    %479 = arith.addf %476, %478 : vector<2x16xf32>
    %480 = math.tanh %479 : vector<2x16xf32>
    %cst_93 = arith.constant 1.000000e+00 : f32
    %481 = vector.broadcast %cst_93 : f32 to vector<2x16xf32>
    %482 = arith.subf %481, %475 : vector<2x16xf32>
    %483 = arith.mulf %482, %480 : vector<2x16xf32>
    %484 = arith.mulf %475, %417 : vector<2x16xf32>
    %485 = arith.addf %483, %484 : vector<2x16xf32>
    %c6_94 = arith.constant 6 : index
    %c0_95 = arith.constant 0 : index
    %c0_96 = arith.constant 0 : index
    %486 = vector.load %arg15[%c6_94, %c0_95, %c0_96] : memref<8x2x16xf32, #tpu.memory_space<vmem>>, vector<1x2x16xf32>
    %487 = vector.shape_cast %486 : vector<1x2x16xf32> to vector<2x16xf32>
    %488 = vector.shape_cast %459 : vector<2x16xf32> to vector<1x2x16xf32>
    tpu.vector_store %arg15[%c6_94, %c0_95, %c0_96], %488 {strides = array<i32>} : memref<8x2x16xf32, #tpu.memory_space<vmem>>, vector<1x2x16xf32>,
    %c1_97 = arith.constant 1 : index
    %c0_98 = arith.constant 0 : index
    %c0_99 = arith.constant 0 : index
    %489 = vector.load %arg16[%c1_97, %c0_98, %c0_99] : memref<8x2x16xf32, #tpu.memory_space<vmem>>, vector<1x2x16xf32>
    %490 = vector.shape_cast %489 : vector<1x2x16xf32> to vector<2x16xf32>
    %491 = vector.shape_cast %485 : vector<2x16xf32> to vector<1x2x16xf32>
    tpu.vector_store %arg16[%c1_97, %c0_98, %c0_99], %491 {strides = array<i32>} : memref<8x2x16xf32, #tpu.memory_space<vmem>>, vector<1x2x16xf32>,
    %492 = tpu.concatenate %459, %485 in 0 : vector<2x16xf32>, vector<2x16xf32> -> vector<4x16xf32>
    %cst_100 = arith.constant dense<0.000000e+00> : vector<4x96xf32>
    %493 = tpu.matmul %492, %11, %cst_100 {dimension_numbers = #tpu.dot_dimension_numbers<[1], [0], [0], [1], [0, 0, 1, 1], [], []>} : vector<4x16xf32>, vector<16x96xf32>, vector<4x96xf32> -> vector<4x96xf32>
    %494 = vector.broadcast %13 : vector<1x96xf32> to vector<4x96xf32>
    %495 = arith.addf %493, %494 : vector<4x96xf32>
    %496 = vector.extract_strided_slice %495 {offsets = [0, 0], sizes = [2, 48], strides = [1, 1]} : vector<4x96xf32> to vector<2x48xf32>
    %497 = vector.extract_strided_slice %495 {offsets = [2, 48], sizes = [2, 48], strides = [1, 1]} : vector<4x96xf32> to vector<2x48xf32>
    %498 = vector.extract_strided_slice %9 {offsets = [7, 0, 0], sizes = [1, 2, 48], strides = [1, 1, 1]} : vector<8x2x96xf32> to vector<1x2x48xf32>
    %499 = vector.shape_cast %498 : vector<1x2x48xf32> to vector<2x48xf32>
    %500 = vector.extract_strided_slice %9 {offsets = [0, 0, 48], sizes = [1, 2, 48], strides = [1, 1, 1]} : vector<8x2x96xf32> to vector<1x2x48xf32>
    %501 = vector.shape_cast %500 : vector<1x2x48xf32> to vector<2x48xf32>
    %502 = vector.extract_strided_slice %499 {offsets = [0, 0], sizes = [2, 16], strides = [1, 1]} : vector<2x48xf32> to vector<2x16xf32>
    %503 = vector.extract_strided_slice %496 {offsets = [0, 0], sizes = [2, 16], strides = [1, 1]} : vector<2x48xf32> to vector<2x16xf32>
    %504 = arith.addf %502, %503 : vector<2x16xf32>
    %505 = arith.negf %504 : vector<2x16xf32>
    %506 = math.exp %505 : vector<2x16xf32>
    %cst_101 = arith.constant 1.000000e+00 : f32
    %507 = vector.broadcast %cst_101 : f32 to vector<2x16xf32>
    %508 = arith.addf %507, %506 : vector<2x16xf32>
    %509 = arith.divf %507, %508 : vector<2x16xf32>
    %510 = vector.extract_strided_slice %499 {offsets = [0, 16], sizes = [2, 16], strides = [1, 1]} : vector<2x48xf32> to vector<2x16xf32>
    %511 = vector.extract_strided_slice %496 {offsets = [0, 16], sizes = [2, 16], strides = [1, 1]} : vector<2x48xf32> to vector<2x16xf32>
    %512 = arith.addf %510, %511 : vector<2x16xf32>
    %513 = arith.negf %512 : vector<2x16xf32>
    %514 = math.exp %513 : vector<2x16xf32>
    %cst_102 = arith.constant 1.000000e+00 : f32
    %515 = vector.broadcast %cst_102 : f32 to vector<2x16xf32>
    %516 = arith.addf %515, %514 : vector<2x16xf32>
    %517 = arith.divf %515, %516 : vector<2x16xf32>
    %518 = vector.extract_strided_slice %499 {offsets = [0, 32], sizes = [2, 16], strides = [1, 1]} : vector<2x48xf32> to vector<2x16xf32>
    %519 = vector.extract_strided_slice %496 {offsets = [0, 32], sizes = [2, 16], strides = [1, 1]} : vector<2x48xf32> to vector<2x16xf32>
    %520 = arith.mulf %509, %519 : vector<2x16xf32>
    %521 = arith.addf %518, %520 : vector<2x16xf32>
    %522 = math.tanh %521 : vector<2x16xf32>
    %cst_103 = arith.constant 1.000000e+00 : f32
    %523 = vector.broadcast %cst_103 : f32 to vector<2x16xf32>
    %524 = arith.subf %523, %517 : vector<2x16xf32>
    %525 = arith.mulf %524, %522 : vector<2x16xf32>
    %526 = arith.mulf %517, %459 : vector<2x16xf32>
    %527 = arith.addf %525, %526 : vector<2x16xf32>
    %528 = vector.extract_strided_slice %501 {offsets = [0, 0], sizes = [2, 16], strides = [1, 1]} : vector<2x48xf32> to vector<2x16xf32>
    %529 = vector.extract_strided_slice %497 {offsets = [0, 0], sizes = [2, 16], strides = [1, 1]} : vector<2x48xf32> to vector<2x16xf32>
    %530 = arith.addf %528, %529 : vector<2x16xf32>
    %531 = arith.negf %530 : vector<2x16xf32>
    %532 = math.exp %531 : vector<2x16xf32>
    %cst_104 = arith.constant 1.000000e+00 : f32
    %533 = vector.broadcast %cst_104 : f32 to vector<2x16xf32>
    %534 = arith.addf %533, %532 : vector<2x16xf32>
    %535 = arith.divf %533, %534 : vector<2x16xf32>
    %536 = vector.extract_strided_slice %501 {offsets = [0, 16], sizes = [2, 16], strides = [1, 1]} : vector<2x48xf32> to vector<2x16xf32>
    %537 = vector.extract_strided_slice %497 {offsets = [0, 16], sizes = [2, 16], strides = [1, 1]} : vector<2x48xf32> to vector<2x16xf32>
    %538 = arith.addf %536, %537 : vector<2x16xf32>
    %539 = arith.negf %538 : vector<2x16xf32>
    %540 = math.exp %539 : vector<2x16xf32>
    %cst_105 = arith.constant 1.000000e+00 : f32
    %541 = vector.broadcast %cst_105 : f32 to vector<2x16xf32>
    %542 = arith.addf %541, %540 : vector<2x16xf32>
    %543 = arith.divf %541, %542 : vector<2x16xf32>
    %544 = vector.extract_strided_slice %501 {offsets = [0, 32], sizes = [2, 16], strides = [1, 1]} : vector<2x48xf32> to vector<2x16xf32>
    %545 = vector.extract_strided_slice %497 {offsets = [0, 32], sizes = [2, 16], strides = [1, 1]} : vector<2x48xf32> to vector<2x16xf32>
    %546 = arith.mulf %535, %545 : vector<2x16xf32>
    %547 = arith.addf %544, %546 : vector<2x16xf32>
    %548 = math.tanh %547 : vector<2x16xf32>
    %cst_106 = arith.constant 1.000000e+00 : f32
    %549 = vector.broadcast %cst_106 : f32 to vector<2x16xf32>
    %550 = arith.subf %549, %543 : vector<2x16xf32>
    %551 = arith.mulf %550, %548 : vector<2x16xf32>
    %552 = arith.mulf %543, %485 : vector<2x16xf32>
    %553 = arith.addf %551, %552 : vector<2x16xf32>
    %c7_107 = arith.constant 7 : index
    %c0_108 = arith.constant 0 : index
    %c0_109 = arith.constant 0 : index
    %554 = vector.load %arg15[%c7_107, %c0_108, %c0_109] : memref<8x2x16xf32, #tpu.memory_space<vmem>>, vector<1x2x16xf32>
    %555 = vector.shape_cast %554 : vector<1x2x16xf32> to vector<2x16xf32>
    %556 = vector.shape_cast %527 : vector<2x16xf32> to vector<1x2x16xf32>
    tpu.vector_store %arg15[%c7_107, %c0_108, %c0_109], %556 {strides = array<i32>} : memref<8x2x16xf32, #tpu.memory_space<vmem>>, vector<1x2x16xf32>,
    %c0_110 = arith.constant 0 : index
    %c0_111 = arith.constant 0 : index
    %c0_112 = arith.constant 0 : index
    %557 = vector.load %arg16[%c0_110, %c0_111, %c0_112] : memref<8x2x16xf32, #tpu.memory_space<vmem>>, vector<1x2x16xf32>
    %558 = vector.shape_cast %557 : vector<1x2x16xf32> to vector<2x16xf32>
    %559 = vector.shape_cast %553 : vector<2x16xf32> to vector<1x2x16xf32>
    tpu.vector_store %arg16[%c0_110, %c0_111, %c0_112], %559 {strides = array<i32>} : memref<8x2x16xf32, #tpu.memory_space<vmem>>, vector<1x2x16xf32>,
    %c0_113 = arith.constant 0 : index
    %c0_114 = arith.constant 0 : index
    %c0_115 = arith.constant 0 : index
    %560 = vector.load %arg15[%c0_113, %c0_114, %c0_115] : memref<8x2x16xf32, #tpu.memory_space<vmem>>, vector<8x2x16xf32>
    %c0_116 = arith.constant 0 : index
    %c0_117 = arith.constant 0 : index
    %c0_118 = arith.constant 0 : index
    %561 = vector.load %arg16[%c0_116, %c0_117, %c0_118] : memref<8x2x16xf32, #tpu.memory_space<vmem>>, vector<8x2x16xf32>
    %562 = tpu.concatenate %560, %561 in 2 : vector<8x2x16xf32>, vector<8x2x16xf32> -> vector<8x2x32xf32>
    %563 = vector.shape_cast %562 : vector<8x2x32xf32> to vector<16x32xf32>
    %c0_119 = arith.constant 0 : index
    %c0_120 = arith.constant 0 : index
    %564 = vector.load %arg6[%c0_119, %c0_120] : memref<32x32xf32, #tpu.memory_space<vmem>>, vector<32x32xf32>
    %cst_121 = arith.constant dense<0.000000e+00> : vector<16x32xf32>
    %565 = tpu.matmul %563, %564, %cst_121 {dimension_numbers = #tpu.dot_dimension_numbers<[1], [0], [0], [1], [0, 0, 1, 1], [], []>} : vector<16x32xf32>, vector<32x32xf32>, vector<16x32xf32> -> vector<16x32xf32>
    %c0_122 = arith.constant 0 : index
    %c0_123 = arith.constant 0 : index
    %566 = vector.load %arg7[%c0_122, %c0_123] : memref<1x32xf32, #tpu.memory_space<vmem>>, vector<1x32xf32>
    %567 = vector.broadcast %566 : vector<1x32xf32> to vector<16x32xf32>
    %568 = arith.addf %565, %567 : vector<16x32xf32>
    %c0_124 = arith.constant 0 : index
    %c0_125 = arith.constant 0 : index
    %c0_126 = arith.constant 0 : index
    %c0_127 = arith.constant 0 : index
    %569 = vector.load %arg1[%c0_124, %c0_125, %c0_126, %c0_127] : memref<8x2x4x32xf32, #tpu.memory_space<vmem>>, vector<8x2x4x32xf32>
    %570 = vector.shape_cast %569 : vector<8x2x4x32xf32> to vector<16x4x32xf32>
    %571 = vector.shape_cast %568 : vector<16x32xf32> to vector<16x1x32xf32>
    %572 = vector.broadcast %571 : vector<16x1x32xf32> to vector<16x4x32xf32>
    %573 = arith.mulf %570, %572 : vector<16x4x32xf32>
    %cst_128 = arith.constant dense<0.000000e+00> : vector<16x4xf32>
    %574 = vector.multi_reduction <add>, %573, %cst_128 [2] : vector<16x4x32xf32> to vector<16x4xf32>
    %cst_129 = arith.constant dense<0xFF800000> : vector<16xf32>
    %575 = vector.multi_reduction <maximumf>, %574, %cst_129 [1] : vector<16x4xf32> to vector<16xf32>
    %576 = vector.shape_cast %575 : vector<16xf32> to vector<16x1xf32>
    %577 = vector.broadcast %576 : vector<16x1xf32> to vector<16x4xf32>
    %578 = arith.subf %574, %577 : vector<16x4xf32>
    %579 = math.exp %578 : vector<16x4xf32>
    %cst_130 = arith.constant dense<0.000000e+00> : vector<16xf32>
    %580 = vector.multi_reduction <add>, %579, %cst_130 [1] : vector<16x4xf32> to vector<16xf32>
    %581 = vector.shape_cast %580 : vector<16xf32> to vector<16x1xf32>
    %582 = vector.broadcast %581 : vector<16x1xf32> to vector<16x4xf32>
    %583 = arith.divf %579, %582 : vector<16x4xf32>
    %584 = vector.shape_cast %583 : vector<16x4xf32> to vector<16x4x1xf32>
    %585 = vector.broadcast %584 : vector<16x4x1xf32> to vector<16x4x32xf32>
    %586 = arith.mulf %585, %570 : vector<16x4x32xf32>
    %cst_131 = arith.constant dense<0.000000e+00> : vector<16x32xf32>
    %587 = vector.multi_reduction <add>, %586, %cst_131 [1] : vector<16x4x32xf32> to vector<16x32xf32>
    %588 = tpu.concatenate %563, %587 in 1 : vector<16x32xf32>, vector<16x32xf32> -> vector<16x64xf32>
    %c0_132 = arith.constant 0 : index
    %c0_133 = arith.constant 0 : index
    %589 = vector.load %arg10[%c0_132, %c0_133] : memref<1x8xf32, #tpu.memory_space<vmem>>, vector<1x8xf32>
    %c0_134 = arith.constant 0 : index
    %c0_135 = arith.constant 0 : index
    %590 = vector.load %arg8[%c0_134, %c0_135] : memref<128x8xf32, #tpu.memory_space<vmem>>, vector<64x8xf32>
    %cst_136 = arith.constant dense<0.000000e+00> : vector<16x8xf32>
    %591 = tpu.matmul %588, %590, %cst_136 {dimension_numbers = #tpu.dot_dimension_numbers<[1], [0], [0], [1], [0, 0, 1, 1], [], []>} : vector<16x64xf32>, vector<64x8xf32>, vector<16x8xf32> -> vector<16x8xf32>
    %592 = vector.shape_cast %591 : vector<16x8xf32> to vector<8x2x8xf32>
    %593 = vector.extract_strided_slice %592 {offsets = [0, 0, 0], sizes = [7, 2, 8], strides = [1, 1, 1]} : vector<8x2x8xf32> to vector<7x2x8xf32>
    %c64 = arith.constant 64 : index
    %c0_137 = arith.constant 0 : index
    %594 = vector.load %arg8[%c64, %c0_137] : memref<128x8xf32, #tpu.memory_space<vmem>>, vector<64x8xf32>
    %cst_138 = arith.constant dense<0.000000e+00> : vector<16x8xf32>
    %595 = tpu.matmul %588, %594, %cst_138 {dimension_numbers = #tpu.dot_dimension_numbers<[1], [0], [0], [1], [0, 0, 1, 1], [], []>} : vector<16x64xf32>, vector<64x8xf32>, vector<16x8xf32> -> vector<16x8xf32>
    %596 = vector.shape_cast %595 : vector<16x8xf32> to vector<8x2x8xf32>
    %597 = vector.extract_strided_slice %596 {offsets = [1, 0, 0], sizes = [7, 2, 8], strides = [1, 1, 1]} : vector<8x2x8xf32> to vector<7x2x8xf32>
    %598 = arith.addf %593, %597 : vector<7x2x8xf32>
    %599 = vector.shape_cast %589 : vector<1x8xf32> to vector<1x1x8xf32>
    %600 = vector.broadcast %599 : vector<1x1x8xf32> to vector<7x2x8xf32>
    %601 = arith.addf %598, %600 : vector<7x2x8xf32>
    %cst_139 = arith.constant 0.000000e+00 : f32
    %602 = vector.broadcast %cst_139 : f32 to vector<7x2x8xf32>
    %603 = arith.maximumf %601, %602 : vector<7x2x8xf32>
    %cst_140 = arith.constant dense<0xFF800000> : vector<2x8xf32>
    %604 = vector.multi_reduction <maximumf>, %603, %cst_140 [0] : vector<7x2x8xf32> to vector<2x8xf32>
    %c0_141 = arith.constant 0 : index
    %c0_142 = arith.constant 0 : index
    %605 = vector.load %arg11[%c0_141, %c0_142] : memref<1x8xf32, #tpu.memory_space<vmem>>, vector<1x8xf32>
    %c0_143 = arith.constant 0 : index
    %c0_144 = arith.constant 0 : index
    %606 = vector.load %arg9[%c0_143, %c0_144] : memref<192x8xf32, #tpu.memory_space<vmem>>, vector<64x8xf32>
    %cst_145 = arith.constant dense<0.000000e+00> : vector<16x8xf32>
    %607 = tpu.matmul %588, %606, %cst_145 {dimension_numbers = #tpu.dot_dimension_numbers<[1], [0], [0], [1], [0, 0, 1, 1], [], []>} : vector<16x64xf32>, vector<64x8xf32>, vector<16x8xf32> -> vector<16x8xf32>
    %608 = vector.shape_cast %607 : vector<16x8xf32> to vector<8x2x8xf32>
    %609 = vector.extract_strided_slice %608 {offsets = [0, 0, 0], sizes = [6, 2, 8], strides = [1, 1, 1]} : vector<8x2x8xf32> to vector<6x2x8xf32>
    %c64_146 = arith.constant 64 : index
    %c0_147 = arith.constant 0 : index
    %610 = vector.load %arg9[%c64_146, %c0_147] : memref<192x8xf32, #tpu.memory_space<vmem>>, vector<64x8xf32>
    %cst_148 = arith.constant dense<0.000000e+00> : vector<16x8xf32>
    %611 = tpu.matmul %588, %610, %cst_148 {dimension_numbers = #tpu.dot_dimension_numbers<[1], [0], [0], [1], [0, 0, 1, 1], [], []>} : vector<16x64xf32>, vector<64x8xf32>, vector<16x8xf32> -> vector<16x8xf32>
    %612 = vector.shape_cast %611 : vector<16x8xf32> to vector<8x2x8xf32>
    %613 = vector.extract_strided_slice %612 {offsets = [1, 0, 0], sizes = [6, 2, 8], strides = [1, 1, 1]} : vector<8x2x8xf32> to vector<6x2x8xf32>
    %614 = arith.addf %609, %613 : vector<6x2x8xf32>
    %c128 = arith.constant 128 : index
    %c0_149 = arith.constant 0 : index
    %615 = vector.load %arg9[%c128, %c0_149] : memref<192x8xf32, #tpu.memory_space<vmem>>, vector<64x8xf32>
    %cst_150 = arith.constant dense<0.000000e+00> : vector<16x8xf32>
    %616 = tpu.matmul %588, %615, %cst_150 {dimension_numbers = #tpu.dot_dimension_numbers<[1], [0], [0], [1], [0, 0, 1, 1], [], []>} : vector<16x64xf32>, vector<64x8xf32>, vector<16x8xf32> -> vector<16x8xf32>
    %617 = vector.shape_cast %616 : vector<16x8xf32> to vector<8x2x8xf32>
    %618 = vector.extract_strided_slice %617 {offsets = [2, 0, 0], sizes = [6, 2, 8], strides = [1, 1, 1]} : vector<8x2x8xf32> to vector<6x2x8xf32>
    %619 = arith.addf %614, %618 : vector<6x2x8xf32>
    %620 = vector.shape_cast %605 : vector<1x8xf32> to vector<1x1x8xf32>
    %621 = vector.broadcast %620 : vector<1x1x8xf32> to vector<6x2x8xf32>
    %622 = arith.addf %619, %621 : vector<6x2x8xf32>
    %cst_151 = arith.constant 0.000000e+00 : f32
    %623 = vector.broadcast %cst_151 : f32 to vector<6x2x8xf32>
    %624 = arith.maximumf %622, %623 : vector<6x2x8xf32>
    %cst_152 = arith.constant dense<0xFF800000> : vector<2x8xf32>
    %625 = vector.multi_reduction <maximumf>, %624, %cst_152 [0] : vector<6x2x8xf32> to vector<2x8xf32>
    %626 = tpu.concatenate %604, %625 in 1 : vector<2x8xf32>, vector<2x8xf32> -> vector<2x16xf32>
    %627 = math.tanh %626 : vector<2x16xf32>
    %c0_153 = arith.constant 0 : index
    %c0_154 = arith.constant 0 : index
    %628 = vector.load %arg12[%c0_153, %c0_154] : memref<16x3xf32, #tpu.memory_space<vmem>>, vector<16x3xf32>
    %cst_155 = arith.constant dense<0.000000e+00> : vector<2x3xf32>
    %629 = tpu.matmul %627, %628, %cst_155 {dimension_numbers = #tpu.dot_dimension_numbers<[1], [0], [0], [1], [0, 0, 1, 1], [], []>} : vector<2x16xf32>, vector<16x3xf32>, vector<2x3xf32> -> vector<2x3xf32>
    %c0_156 = arith.constant 0 : index
    %c0_157 = arith.constant 0 : index
    %630 = vector.load %arg13[%c0_156, %c0_157] : memref<1x3xf32, #tpu.memory_space<vmem>>, vector<1x3xf32>
    %631 = vector.broadcast %630 : vector<1x3xf32> to vector<2x3xf32>
    %632 = arith.addf %629, %631 : vector<2x3xf32>
    %cst_158 = arith.constant dense<0xFF800000> : vector<2xf32>
    %633 = vector.multi_reduction <maximumf>, %632, %cst_158 [1] : vector<2x3xf32> to vector<2xf32>
    %634 = vector.shape_cast %633 : vector<2xf32> to vector<2x1xf32>
    %635 = vector.broadcast %634 : vector<2x1xf32> to vector<2x3xf32>
    %636 = arith.subf %632, %635 : vector<2x3xf32>
    %637 = math.exp %636 : vector<2x3xf32>
    %cst_159 = arith.constant dense<0.000000e+00> : vector<2xf32>
    %638 = vector.multi_reduction <add>, %637, %cst_159 [1] : vector<2x3xf32> to vector<2xf32>
    %639 = vector.shape_cast %638 : vector<2xf32> to vector<2x1xf32>
    %640 = vector.broadcast %639 : vector<2x1xf32> to vector<2x3xf32>
    %641 = arith.divf %637, %640 : vector<2x3xf32>
    %c0_160 = arith.constant 0 : index
    %c0_161 = arith.constant 0 : index
    %642 = vector.load %arg14[%c0_160, %c0_161] : memref<2x3xf32, #tpu.memory_space<vmem>>, vector<2x3xf32>
    tpu.vector_store %arg14[%c0_160, %c0_161], %641 {strides = array<i32>} : memref<2x3xf32, #tpu.memory_space<vmem>>, vector<2x3xf32>,
    return
  }
}

</mosaic_0001>

<bundles_post_ra>
// kernel: tpu_custom_call.1
= control target key start
LH: loop header
LB: loop body
LE: loop exit
PB: predicated region body
PF: predicated region fallthrough
CT: control target
= control target key end

     0   :  { %v80_v3 = vlaneseq  ;;  %v5508_v4 = vmov 0.0|0.0   ;;  %vm4281_vm0 = vmmov 0   ;;  %v5507_v7 = vmov 0.0   ;;  %s5492_s0 = inlined_call_operand.vmem [shape: f32[8,2,32], index: 0, kind: input, shape index: {}]   ;;  %s5493_s1 = inlined_call_operand.vmem [shape: f32[8,2,4,32], index: 1, kind: input, shape index: {}]   ;;  %s5494_s2 = inlined_call_operand.vmem [shape: f32[1,32,96], index: 2, kind: input, shape index: {}]   ;;  %s5495_s3 = inlined_call_operand.vmem [shape: f32[1,16,96], index: 3, kind: input, shape index: {}]   ;;  %s5496_s4 = inlined_call_operand.vmem [shape: f32[1,1,96], index: 4, kind: input, shape index: {}]   ;;  %s5497_s5 = inlined_call_operand.vmem [shape: f32[1,1,96], index: 5, kind: input, shape index: {}]   ;;  %s5498_s6 = inlined_call_operand.vmem [shape: f32[32,32], index: 6, kind: input, shape index: {}]   ;;  %s5499_s7 = inlined_call_operand.vmem [shape: f32[1,32], index: 7, kind: input, shape index: {}]   ;;  %s5500_s8 = inlined_call_operand.vmem [shape: f32[128,8], index: 8, kind: input, shape index: {}]   ;;  %s5501_s9 = inlined_call_operand.vmem [shape: f32[192,8], index: 9, kind: input, shape index: {}]   ;;  %s5502_s10 = inlined_call_operand.vmem [shape: f32[1,8], index: 10, kind: input, shape index: {}]   ;;  %s5503_s11 = inlined_call_operand.vmem [shape: f32[1,8], index: 11, kind: input, shape index: {}]   ;;  %s5504_s12 = inlined_call_operand.vmem [shape: f32[16,3], index: 12, kind: input, shape index: {}]   ;;  %s5505_s13 = inlined_call_operand.vmem [shape: f32[1,3], index: 13, kind: input, shape index: {}]   ;;  %s5506_s14 = inlined_call_operand.hbm [shape: f32[2,3], index: 14, kind: output, shape index: {}]  }
   0x1   :  { %v233_v0 = vld [vmem:[%s5495_s3] sm:$0xff]  ;;  %v234_v1 = vld [vmem:[%s5495_s3 + $0x8] sm:$0xff]  ;;  %3959 = vmatprep.subr.bf16.mxu1 %v5508_v4  ;;  %3786 = vmatprep.mubr.msk.f32.mxu1 %vm4281_vm0, %v5507_v7  ;;  %v58_v8 = vld [vmem:[%s5494_s2 + $0x10] sm:$0xff]  ;;  %v4283_v15 = vmov 1983009808  }
   0x2   :  { %v56_v2 = vld [vmem:[%s5494_s2] sm:$0xff]  ;;  %v4379_v5 = vpack.c.bf16 %v234_v1, %v233_v0  ;;  %v57_v6 = vld [vmem:[%s5494_s2 + $0x8] sm:$0xff]  ;;  %v59_v9 = vld [vmem:[%s5494_s2 + $0x18] sm:$0xff]  ;;  %v78_v16 = vunpack.c.l.s4 %v4283_v15  ;;  %v4406_v18 = vshrl.u32 %v80_v3, 7 }
   0x3   :  { %v3951_v10 = vpack.c.bf16 %v57_v6, %v56_v2  ;;  %v3955_v11 = vpack.c.bf16 %v59_v9, %v58_v8  ;;  %v48_v12 = vld [vmem:[%s5492_s0] sm:$0x3]  ;;  %v49_v13 = vld [vmem:[%s5492_s0 + $0x2] sm:$0x3]  ;;  %v50_v14 = vld [vmem:[%s5492_s0 + $0x4] sm:$0x3] }
   0x4   :  { %3961 = vmatpush3.bf16.msra.mxu1 %v4379_v5  ;;  %v51_v17 = vld [vmem:[%s5492_s0 + $0x6] sm:$0x3]  ;;  %v52_v19 = vld [vmem:[%s5492_s0 + $0x8] sm:$0x3]  ;;  %v75_v20 = vcombine.low %v48_v12, %v49_v13  ;;  %v79_v22 = vunpack.c.0.s8 %v78_v16  ;;  %v53_v23 = vld [vmem:[%s5492_s0 + $0xa] sm:$0x3] }
   0x5   :  { %3952 = vmatprep.subr.bf16.mxu0 %v3951_v10  ;;  %v76_v21 = vcombine.low %v50_v14, %v51_v17  ;;  %v54_v24 = vld [vmem:[%s5492_s0 + $0xc] sm:$0x3]  ;;  %v55_v25 = vld [vmem:[%s5492_s0 + $0xe] sm:$0x3]  ;;  %3962 = vmatprep.subr.bf16.mxu1 %v5508_v4  ;;  %v92_v26 = vcombine.low %v52_v19, %v53_v23 }
   0x6   :  { %3954 = vmatpush3.bf16.msra.mxu0 %v3951_v10  ;;  %v93_v27 = vcombine.low %v54_v24, %v55_v25 }
   0x7   :  { %19 = vsyncpa [#allocation5], 0  ;;  %3787 = vmatmul.mubr.f32.vlgmr.msra.gmra.mrb[0].mxu1 %v5507_v7  ;;  %3956 = vmatprep.subr.bf16.mxu0 %v3955_v11  ;;  %v4423_v28 = vsub.s32 %v79_v22, %v4406_v18  ;;  %vm109_vm1 = vcmask 261120   ;;  %v4443_v35 = vld [vmem:[%s5497_s5] ss:$0 sm:$0xff]  ;;  %s4284_s23 = smov 96  }
   0x8   :  { %3964 = vmatpush3.bf16.msra.mxu1 %v4379_v5  ;;  %3793 = vmatprep.mubr.msk.f32.mxu1 %vm4281_vm0, %v5507_v7  ;;  %v3638_v43 = vld [vmem:[%s5496_s4] ss:$0 sm:$0xff]  ;;  %s4285_s4 = smov 32   ;;  %s4286_s5 = smov 112   ;;  %vm413_vm2 = vcmask 1041408   ;;  %vm242_vm3 = vcmask 130048  }
   0x9   :  { %5512 = vst [vmem:[#allocation7_spill] sm:$0xff] %v4423_v28  ;;  %v83_v29 = vrot.slane %v75_v20, %v4423_v28  ;;  %v90_v30 = vrot.slane %v76_v21, %v4423_v28  ;;  %v100_v31 = vrot.slane %v92_v26, %v4423_v28  ;;  %v107_v32 = vrot.slane %v93_v27, %v4423_v28  ;;  %s4287_s26 = smov 80   ;;  %s4288_s27 = smov 64  }
   0xa   :  { %3968 = vmatprep.subr.bf16.mxu1 %v5508_v4  ;;  %3958 = vmatpush3.bf16.msra.mxu0 %v3955_v11  ;;  %vm387_vm4 = vcmask 123904   ;;  %s4289_s28 = smov 16   ;;  %vm2013_vm5 = vcmask 257024   ;;  %vm2144_vm6 = vcmask 1041409   ;;  %vm2146_vm7 = vcmask 1042434   ;;  %s4292_s20 = smov 8  }
   0xb   :  { %v91_v33 = vcombine.low %v83_v29, %v90_v30  ;;  %v108_v34 = vcombine.low %v100_v31, %v107_v32  ;;  %3965 = vmatprep.subr.bf16.mxu0 %v5508_v4  ;;  %vm2148_vm8 = vcmask 1043459   ;;  %vm2150_vm9 = vcmask 1044484   ;;  %s4293_s3 = smov [#allocation4]  }
   0xc   :  { %vm2152_vm10 = vcmask 1045509   ;;  %vm2154_vm11 = vcmask 1046534   ;;  %vm2156_vm12 = vcmask 1047559   ;;  %vm2167_vm13 = vcmask 31744  }
   0xd   :  { %3779 = vmatprep.mubr.msk.f32.mxu0 %vm109_vm1, %v91_v33  ;;  %vm2825_vm14 = vcmask 523264   ;;  %vm3102_vm15 = vcmask 58368  }
   0xe   :  { %3780 = vmatmul.mubr.msk.f32.vlgmr.msra.gmra.mrb[0].mxu0 %vm109_vm1, %v108_v34 }
   0xf   :  { %3967 = vmatpush3.bf16.msra.mxu0 %v4379_v5  ;;  %3800 = vmatprep.mubr.msk.f32.mxu0 %vm4281_vm0, %v5507_v7 }
  0x10   :  { %3971 = vmatprep.subr.bf16.mxu0 %v5508_v4 }
  0xda   :  { %v312_v36 = vpop.f32.mrb[0].mxu1 }
  0xdb   :  { %v313_v37 = vadd.f32 %v4443_v35, %v312_v36  ;;  %v3788_v38 = vpop.f32.mrb[1].mxu1 }
  0xdd   :  { %v330_v39 = vrot.slane %v313_v37, %v4423_v28 }
  0xdf   :  { %331 = vrot.lane.b32.xlu1 %v330_v39, %s4284_s23  ;;  %v349_v40 = vcombine.high %v330_v39, %v330_v39 }
  0xe1   :  { %v3781_v41 = vpop.f32.mrb[0].mxu0  ;;  %358 = vrot.lane.b32.xlu0 %v349_v40, %s4284_s23 }
  0xe2   :  { %v180_v42 = vpop.f32.mrb[1].mxu0  ;;  %v4452_v44 = vadd.f32 %v3781_v41, %v3638_v43 }
  0xe3   :  { %v4456_v46 = vadd.f32 %v3638_v43, %v180_v42 }
  0xe4   :  { %v208_v45 = vcombine.high %v4452_v44, %v4452_v44 }
  0xe5   :  { %v4463_v48 = vrot.slane %v4456_v46, %v4423_v28 }
  0xe6   :  { %v4459_v47 = vrot.slane %v208_v45, %v4423_v28 }
  0xe7   :  { %v316_v50 = vadd.f32 %v313_v37, %v4463_v48  ;;  %v4500_v33 = vcombine.high %v4463_v48, %v4463_v48 }
  0xe8   :  { %v4467_v49 = vcombine.high %v4459_v47, %v4459_v47 }
  0xe9   :  { %v3642_v52 = vmul.f32 -1.442695, %v316_v50 }
  0xea   :  { %v351_v51 = vadd.f32 %v349_v40, %v4467_v49 }
  0xeb   :  { %4090 = vpow2.f32 %v3642_v52 }
  0xec   :  { %v3643_v53 = vmul.f32 -1.442695, %v351_v51 }
  0xee   :  { %4092 = vpow2.f32 %v3643_v53 }
  0xf5   :  { %v4091_v54 = vpop.eup %4090 }
  0xf6   :  { %v320_v56 = vadd.f32 1.0, %v4091_v54 }
  0xf8   :  { %v4093_v55 = vpop.eup %4092  ;;  %4094 = vrcp.f32 %v320_v56 }
  0xf9   :  { %v355_v57 = vadd.f32 1.0, %v4093_v55 }
  0xfb   :  { %4096 = vrcp.f32 %v355_v57 }
 0x102   :  { %v4095_v58 = vpop.eup %4094 }
 0x103   :  { %v341_v19 = vsub.f32 1.0, %v4095_v58  ;;  %v347_v21 = vmul.f32 0.0, %v4095_v58 }
 0x105   :  { %v4097_v61 = vpop.eup %4096 }
 0x106   :  { %v368_v10 = vsub.f32 1.0, %v4097_v61  ;;  %v374_v12 = vmul.f32 0.0, %v4097_v61 }
 0x151   :  { %v332_v59 = vpop.permute.xlu1 %331 }
 0x152   :  { %v334_v60 = vmul.f32 %v4095_v58, %v332_v59 }
 0x153   :  { %v359_v62 = vpop.permute.xlu0 %358 }
 0x154   :  { %v361_v63 = vmul.f32 %v4097_v61, %v359_v62  ;;  %336 = vrot.lane.b32.xlu1 %v334_v60, %s4285_s4 }
 0x156   :  { %363 = vrot.lane.b32.xlu0 %v361_v63, %s4285_s4 }
 0x1c6   :  { %v337_v0 = vpop.permute.xlu1 %336 }
 0x1c7   :  { %v339_v1 = vadd.f32 %v337_v0, %v4463_v48 }
 0x1c8   :  { %v364_v2 = vpop.permute.xlu0 %363 }
 0x1c9   :  { %4098 = vtanh.f32 %v339_v1  ;;  %v366_v6 = vadd.f32 %v364_v2, %v4467_v49 }
 0x1cb   :  { %4100 = vtanh.f32 %v366_v6 }
 0x1d3   :  { %v4099_v8 = vpop.eup %4098 }
 0x1d4   :  { %343 = vrot.lane.b32.xlu1 %v4099_v8, %s4286_s5 }
 0x1d5   :  { %v4101_v9 = vpop.eup %4100 }
 0x1d6   :  { %370 = vrot.lane.b32.xlu0 %v4101_v9, %s4286_s5 }
 0x246   :  { %v344_v17 = vpop.permute.xlu1 %343 }
 0x247   :  { %v346_v20 = vmul.f32 %v344_v17, %v341_v19 }
 0x248   :  { %v371_v11 = vpop.permute.xlu0 %370 }
 0x249   :  { %v373_v13 = vmul.f32 %v371_v11, %v368_v10  ;;  %v4483_v22 = vadd.f32 %v347_v21, %v346_v20  ;;  %v4533_v21 = vrot.slane %v4452_v44, %v4423_v28 }
 0x24b   :  { %v4477_v14 = vadd.f32 %v374_v12, %v373_v13 }
 0x24d   :  { %v402_v15 = vcombine.low %v4477_v14, %v4477_v14 }
 0x24f   :  { %v409_v16 = vrot.slane %v402_v15, %v4423_v28 }
 0x251   :  { %410 = vrot.lane.b32.xlu0 %v409_v16, %s4287_s26 }
 0x2c3   :  { %v411_v23 = vpop.permute.xlu0 %410 }
 0x2c4   :  { %v414_v24 = vsel %vm413_vm2, %v4483_v22, %v411_v23  ;;  %v191_v23 = vcombine.high %v4456_v46, %v4456_v46 }
 0x2c5   :  { %416 = vrot.lane.b32.xlu1 %v414_v24, %s4286_s5  ;;  %v4539_v24 = vcombine.high %v4533_v21, %v4533_v21 }
 0x337   :  { %v417_v25 = vpop.permute.xlu1 %416 }
 0x338   :  { %3794 = vmatmul.mubr.msk.f32.vlgmr.msra.gmra.mrb[2].mxu1 %vm242_vm3, %v417_v25 }
 0x339   :  { %3970 = vmatpush3.bf16.msra.mxu1 %v4379_v5  ;;  %3807 = vmatprep.mubr.msk.f32.mxu1 %vm4281_vm0, %v5507_v7 }
 0x33a   :  { %3974 = vmatprep.subr.bf16.mxu1 %v5508_v4 }
 0x40b   :  { %v486_v26 = vpop.f32.mrb[2].mxu1 }
 0x40c   :  { %v487_v27 = vadd.f32 %v4443_v35, %v486_v26  ;;  %v3795_v29 = vpop.f32.mrb[3].mxu1  ;;  %v4543_v26 = vrot.slane %v191_v23, %v4423_v28 }
 0x40e   :  { %v504_v30 = vrot.slane %v487_v27, %v4423_v28  ;;  %v490_v34 = vadd.f32 %v487_v27, %v4500_v33 }
 0x410   :  { %v523_v31 = vcombine.high %v504_v30, %v504_v30  ;;  %v3645_v37 = vmul.f32 -1.442695, %v490_v34 }
 0x412   :  { %532 = vrot.lane.b32.xlu0 %v523_v31, %s4284_s23  ;;  %v525_v32 = vadd.f32 %v523_v31, %v4459_v47 }
 0x414   :  { %v3646_v36 = vmul.f32 -1.442695, %v525_v32 }
 0x416   :  { %505 = vrot.lane.b32.xlu0 %v504_v30, %s4284_s23  ;;  %4102 = vpow2.f32 %v3646_v36 }
 0x417   :  { %4104 = vpow2.f32 %v3645_v37 }
 0x420   :  { %v4103_v38 = vpop.eup %4102 }
 0x421   :  { %v529_v39 = vadd.f32 1.0, %v4103_v38  ;;  %v4105_v40 = vpop.eup %4104 }
 0x422   :  { %v494_v41 = vadd.f32 1.0, %v4105_v40 }
 0x423   :  { %4106 = vrcp.f32 %v529_v39 }
 0x424   :  { %4108 = vrcp.f32 %v494_v41 }
 0x42d   :  { %v4107_v42 = vpop.eup %4106 }
 0x42e   :  { %v4109_v50 = vpop.eup %4108  ;;  %v542_v59 = vsub.f32 1.0, %v4107_v42  ;;  %v548_v61 = vmul.f32 %v4107_v42, %v4477_v14 }
 0x42f   :  { %v515_v6 = vsub.f32 1.0, %v4109_v50  ;;  %v521_v9 = vmul.f32 %v4109_v50, %v4483_v22 }
 0x484   :  { %v533_v43 = vpop.permute.xlu0 %532 }
 0x485   :  { %v535_v45 = vmul.f32 %v4107_v42, %v533_v43 }
 0x487   :  { %537 = vrot.lane.b32.xlu1 %v535_v45, %s4285_s4 }
 0x488   :  { %v506_v51 = vpop.permute.xlu0 %505 }
 0x489   :  { %v508_v52 = vmul.f32 %v4109_v50, %v506_v51 }
 0x48b   :  { %510 = vrot.lane.b32.xlu1 %v508_v52, %s4285_s4 }
 0x4f9   :  { %v538_v53 = vpop.permute.xlu1 %537 }
 0x4fa   :  { %v540_v54 = vadd.f32 %v538_v53, %v4459_v47 }
 0x4fc   :  { %4110 = vtanh.f32 %v540_v54 }
 0x4fd   :  { %v511_v55 = vpop.permute.xlu1 %510 }
 0x4fe   :  { %v513_v56 = vadd.f32 %v511_v55, %v4500_v33 }
 0x500   :  { %4112 = vtanh.f32 %v513_v56 }
 0x506   :  { %v4111_v57 = vpop.eup %4110 }
 0x507   :  { %544 = vrot.lane.b32.xlu0 %v4111_v57, %s4286_s5 }
 0x50a   :  { %v4113_v58 = vpop.eup %4112 }
 0x50b   :  { %517 = vrot.lane.b32.xlu1 %v4113_v58, %s4286_s5 }
 0x579   :  { %v545_v60 = vpop.permute.xlu0 %544 }
 0x57a   :  { %v547_v62 = vmul.f32 %v545_v60, %v542_v59 }
 0x57c   :  { %v4510_v63 = vadd.f32 %v548_v61, %v547_v62 }
 0x57d   :  { %v518_v2 = vpop.permute.xlu1 %517 }
 0x57e   :  { %v576_v0 = vcombine.low %v4510_v63, %v4510_v63  ;;  %v520_v8 = vmul.f32 %v518_v2, %v515_v6 }
 0x580   :  { %v583_v1 = vrot.slane %v576_v0, %v4423_v28  ;;  %v4517_v10 = vadd.f32 %v521_v9, %v520_v8 }
 0x582   :  { %584 = vrot.lane.b32.xlu0 %v583_v1, %s4287_s26 }
 0x5f4   :  { %v585_v11 = vpop.permute.xlu0 %584 }
 0x5f5   :  { %v587_v12 = vsel %vm413_vm2, %v4517_v10, %v585_v11 }
 0x5f6   :  { %589 = vrot.lane.b32.xlu1 %v587_v12, %s4286_s5 }
 0x668   :  { %v590_v13 = vpop.permute.xlu1 %589 }
 0x669   :  { %3801 = vmatmul.mubr.msk.f32.vlgmr.msra.gmra.mrb[2].mxu0 %vm242_vm3, %v590_v13 }
 0x66a   :  { %3973 = vmatpush3.bf16.msra.mxu0 %v4379_v5  ;;  %3814 = vmatprep.mubr.msk.f32.mxu0 %vm4281_vm0, %v5507_v7 }
 0x66b   :  { %3977 = vmatprep.subr.bf16.mxu0 %v5508_v4 }
 0x73c   :  { %v659_v15 = vpop.f32.mrb[2].mxu0 }
 0x73d   :  { %v660_v16 = vadd.f32 %v4443_v35, %v659_v15  ;;  %v3802_v17 = vpop.f32.mrb[3].mxu0 }
 0x73f   :  { %v677_v19 = vrot.slane %v660_v16, %v4423_v28  ;;  %v663_v27 = vadd.f32 %v660_v16, %v4543_v26  ;;  %v4577_v16 = vcombine.high %v4543_v26, %v4543_v26 }
 0x741   :  { %v696_v20 = vcombine.high %v677_v19, %v677_v19  ;;  %v3648_v30 = vmul.f32 -1.442695, %v663_v27 }
 0x743   :  { %705 = vrot.lane.b32.xlu0 %v696_v20, %s4284_s23  ;;  %v698_v25 = vadd.f32 %v696_v20, %v4539_v24 }
 0x745   :  { %v3649_v29 = vmul.f32 -1.442695, %v698_v25 }
 0x747   :  { %678 = vrot.lane.b32.xlu0 %v677_v19, %s4284_s23  ;;  %4114 = vpow2.f32 %v3649_v29 }
 0x748   :  { %4116 = vpow2.f32 %v3648_v30 }
 0x751   :  { %v4115_v44 = vpop.eup %4114 }
 0x752   :  { %v702_v31 = vadd.f32 1.0, %v4115_v44  ;;  %v4117_v32 = vpop.eup %4116 }
 0x753   :  { %v667_v34 = vadd.f32 1.0, %v4117_v32 }
 0x754   :  { %4118 = vrcp.f32 %v702_v31 }
 0x755   :  { %4120 = vrcp.f32 %v667_v34 }
 0x75e   :  { %v4119_v46 = vpop.eup %4118 }
 0x75f   :  { %v4121_v38 = vpop.eup %4120  ;;  %v715_v52 = vsub.f32 1.0, %v4119_v46  ;;  %v721_v54 = vmul.f32 %v4119_v46, %v4510_v63 }
 0x760   :  { %v688_v60 = vsub.f32 1.0, %v4121_v38  ;;  %v694_v62 = vmul.f32 %v4121_v38, %v4517_v10 }
 0x7b5   :  { %v706_v36 = vpop.permute.xlu0 %705 }
 0x7b6   :  { %v708_v37 = vmul.f32 %v4119_v46, %v706_v36 }
 0x7b8   :  { %710 = vrot.lane.b32.xlu1 %v708_v37, %s4285_s4 }
 0x7b9   :  { %v679_v39 = vpop.permute.xlu0 %678 }
 0x7ba   :  { %v681_v40 = vmul.f32 %v4121_v38, %v679_v39 }
 0x7bc   :  { %683 = vrot.lane.b32.xlu1 %v681_v40, %s4285_s4 }
 0x82a   :  { %v711_v41 = vpop.permute.xlu1 %710 }
 0x82b   :  { %v713_v42 = vadd.f32 %v711_v41, %v4539_v24 }
 0x82d   :  { %4122 = vtanh.f32 %v713_v42 }
 0x82e   :  { %v684_v43 = vpop.permute.xlu1 %683 }
 0x82f   :  { %v686_v45 = vadd.f32 %v684_v43, %v4543_v26 }
 0x831   :  { %4124 = vtanh.f32 %v686_v45 }
 0x837   :  { %v4123_v50 = vpop.eup %4122 }
 0x838   :  { %717 = vrot.lane.b32.xlu0 %v4123_v50, %s4286_s5 }
 0x83b   :  { %v4125_v51 = vpop.eup %4124 }
 0x83c   :  { %690 = vrot.lane.b32.xlu1 %v4125_v51, %s4286_s5 }
 0x8aa   :  { %v718_v53 = vpop.permute.xlu0 %717 }
 0x8ab   :  { %v720_v55 = vmul.f32 %v718_v53, %v715_v52 }
 0x8ad   :  { %v4553_v56 = vadd.f32 %v721_v54, %v720_v55 }
 0x8ae   :  { %v691_v59 = vpop.permute.xlu1 %690 }
 0x8af   :  { %v749_v57 = vcombine.low %v4553_v56, %v4553_v56  ;;  %v693_v61 = vmul.f32 %v691_v59, %v688_v60 }
 0x8b1   :  { %v756_v58 = vrot.slane %v749_v57, %v4423_v28  ;;  %v4560_v0 = vadd.f32 %v694_v62, %v693_v61 }
 0x8b3   :  { %757 = vrot.lane.b32.xlu0 %v756_v58, %s4287_s26 }
 0x925   :  { %v758_v1 = vpop.permute.xlu0 %757 }
 0x926   :  { %v760_v2 = vsel %vm413_vm2, %v4560_v0, %v758_v1 }
 0x927   :  { %762 = vrot.lane.b32.xlu1 %v760_v2, %s4286_s5 }
 0x999   :  { %v763_v6 = vpop.permute.xlu1 %762 }
 0x99a   :  { %3808 = vmatmul.mubr.msk.f32.vlgmr.msra.gmra.mrb[4].mxu1 %vm242_vm3, %v763_v6 }
 0x99b   :  { %3976 = vmatpush3.bf16.msra.mxu1 %v4379_v5  ;;  %3821 = vmatprep.mubr.msk.f32.mxu1 %vm4281_vm0, %v5507_v7 }
 0x99c   :  { %3980 = vmatprep.subr.bf16.mxu1 %v5508_v4 }
 0xa6d   :  { %v832_v8 = vpop.f32.mrb[4].mxu1 }
 0xa6e   :  { %v833_v9 = vadd.f32 %v4443_v35, %v832_v8  ;;  %v3809_v11 = vpop.f32.mrb[5].mxu1 }
 0xa70   :  { %v850_v12 = vrot.slane %v833_v9, %v4423_v28  ;;  %v836_v17 = vadd.f32 %v833_v9, %v4577_v16 }
 0xa72   :  { %v869_v13 = vcombine.high %v850_v12, %v850_v12  ;;  %v3651_v20 = vmul.f32 -1.442695, %v836_v17 }
 0xa74   :  { %878 = vrot.lane.b32.xlu0 %v869_v13, %s4284_s23  ;;  %v871_v15 = vadd.f32 %v869_v13, %v4533_v21 }
 0xa76   :  { %v3652_v19 = vmul.f32 -1.442695, %v871_v15 }
 0xa78   :  { %851 = vrot.lane.b32.xlu0 %v850_v12, %s4284_s23  ;;  %4126 = vpow2.f32 %v3652_v19 }
 0xa79   :  { %4128 = vpow2.f32 %v3651_v20 }
 0xa82   :  { %v4127_v23 = vpop.eup %4126 }
 0xa83   :  { %v875_v25 = vadd.f32 1.0, %v4127_v23  ;;  %v4129_v27 = vpop.eup %4128 }
 0xa84   :  { %v840_v29 = vadd.f32 1.0, %v4129_v27 }
 0xa85   :  { %4130 = vrcp.f32 %v875_v25 }
 0xa86   :  { %4132 = vrcp.f32 %v840_v29 }
 0xa8f   :  { %v4131_v30 = vpop.eup %4130 }
 0xa90   :  { %v4133_v32 = vpop.eup %4132  ;;  %v888_v42 = vsub.f32 1.0, %v4131_v30  ;;  %v894_v45 = vmul.f32 %v4131_v30, %v4553_v56 }
 0xa91   :  { %v861_v55 = vsub.f32 1.0, %v4133_v32  ;;  %v867_v58 = vmul.f32 %v4133_v32, %v4560_v0 }
 0xae6   :  { %v879_v44 = vpop.permute.xlu0 %878 }
 0xae7   :  { %v881_v31 = vmul.f32 %v4131_v30, %v879_v44 }
 0xae9   :  { %883 = vrot.lane.b32.xlu1 %v881_v31, %s4285_s4 }
 0xaea   :  { %v852_v34 = vpop.permute.xlu0 %851 }
 0xaeb   :  { %v854_v46 = vmul.f32 %v4133_v32, %v852_v34 }
 0xaed   :  { %856 = vrot.lane.b32.xlu1 %v854_v46, %s4285_s4 }
 0xb5b   :  { %v884_v36 = vpop.permute.xlu1 %883 }
 0xb5c   :  { %v886_v37 = vadd.f32 %v884_v36, %v4533_v21 }
 0xb5e   :  { %4134 = vtanh.f32 %v886_v37 }
 0xb5f   :  { %v857_v38 = vpop.permute.xlu1 %856 }
 0xb60   :  { %v859_v39 = vadd.f32 %v857_v38, %v4577_v16 }
 0xb62   :  { %4136 = vtanh.f32 %v859_v39 }
 0xb68   :  { %v4135_v40 = vpop.eup %4134 }
 0xb69   :  { %890 = vrot.lane.b32.xlu0 %v4135_v40, %s4286_s5 }
 0xb6c   :  { %v4137_v41 = vpop.eup %4136 }
 0xb6d   :  { %863 = vrot.lane.b32.xlu1 %v4137_v41, %s4286_s5 }
 0xbdb   :  { %v891_v43 = vpop.permute.xlu0 %890 }
 0xbdc   :  { %v893_v50 = vmul.f32 %v891_v43, %v888_v42 }
 0xbde   :  { %v4587_v51 = vadd.f32 %v894_v45, %v893_v50 }
 0xbdf   :  { %v864_v54 = vpop.permute.xlu1 %863 }
 0xbe0   :  { %v922_v52 = vcombine.low %v4587_v51, %v4587_v51  ;;  %v866_v57 = vmul.f32 %v864_v54, %v861_v55 }
 0xbe2   :  { %v929_v53 = vrot.slane %v922_v52, %v4423_v28  ;;  %v4594_v59 = vadd.f32 %v867_v58, %v866_v57 }
 0xbe4   :  { %930 = vrot.lane.b32.xlu0 %v929_v53, %s4287_s26 }
 0xc56   :  { %v931_v60 = vpop.permute.xlu0 %930 }
 0xc57   :  { %v933_v61 = vsel %vm413_vm2, %v4594_v59, %v931_v60 }
 0xc58   :  { %935 = vrot.lane.b32.xlu1 %v933_v61, %s4286_s5 }
 0xcca   :  { %v936_v62 = vpop.permute.xlu1 %935 }
 0xccb   :  { %3815 = vmatmul.mubr.msk.f32.vlgmr.msra.gmra.mrb[4].mxu0 %vm242_vm3, %v936_v62 }
 0xccc   :  { %3979 = vmatpush3.bf16.msra.mxu0 %v4379_v5  ;;  %3828 = vmatprep.mubr.msk.f32.mxu0 %vm4281_vm0, %v5507_v7 }
 0xd9e   :  { %v1005_v1 = vpop.f32.mrb[4].mxu0 }
 0xd9f   :  { %v1006_v2 = vadd.f32 %v4443_v35, %v1005_v1  ;;  %v3816_v6 = vpop.f32.mrb[5].mxu0 }
 0xda1   :  { %v1023_v8 = vrot.slane %v1006_v2, %v4423_v28  ;;  %v1009_v12 = vadd.f32 %v1006_v2, %v4533_v21 }
 0xda3   :  { %v1042_v9 = vcombine.high %v1023_v8, %v1023_v8  ;;  %v3654_v15 = vmul.f32 -1.442695, %v1009_v12 }
 0xda5   :  { %1051 = vrot.lane.b32.xlu0 %v1042_v9, %s4284_s23  ;;  %v1044_v11 = vadd.f32 %v1042_v9, %v4577_v16 }
 0xda7   :  { %v3655_v13 = vmul.f32 -1.442695, %v1044_v11 }
 0xda9   :  { %1024 = vrot.lane.b32.xlu0 %v1023_v8, %s4284_s23  ;;  %4138 = vpow2.f32 %v3655_v13 }
 0xdaa   :  { %4140 = vpow2.f32 %v3654_v15 }
 0xdb3   :  { %v4139_v17 = vpop.eup %4138 }
 0xdb4   :  { %v1048_v19 = vadd.f32 1.0, %v4139_v17  ;;  %v4141_v20 = vpop.eup %4140 }
 0xdb5   :  { %v1013_v23 = vadd.f32 1.0, %v4141_v20 }
 0xdb6   :  { %4142 = vrcp.f32 %v1048_v19 }
 0xdb7   :  { %4144 = vrcp.f32 %v1013_v23 }
 0xdc0   :  { %v4143_v25 = vpop.eup %4142 }
 0xdc1   :  { %v4145_v30 = vpop.eup %4144  ;;  %v1061_v39 = vsub.f32 1.0, %v4143_v25  ;;  %v1067_v41 = vmul.f32 %v4143_v25, %v4587_v51 }
 0xdc2   :  { %v1034_v50 = vsub.f32 1.0, %v4145_v30  ;;  %v1040_v53 = vmul.f32 %v4145_v30, %v4594_v59 }
 0xe17   :  { %v1052_v27 = vpop.permute.xlu0 %1051 }
 0xe18   :  { %v1054_v29 = vmul.f32 %v4143_v25, %v1052_v27 }
 0xe1a   :  { %1056 = vrot.lane.b32.xlu1 %v1054_v29, %s4285_s4 }
 0xe1b   :  { %v1025_v44 = vpop.permute.xlu0 %1024 }
 0xe1c   :  { %v1027_v31 = vmul.f32 %v4145_v30, %v1025_v44 }
 0xe1e   :  { %1029 = vrot.lane.b32.xlu1 %v1027_v31, %s4285_s4 }
 0xe8c   :  { %v1057_v32 = vpop.permute.xlu1 %1056 }
 0xe8d   :  { %v1059_v34 = vadd.f32 %v1057_v32, %v4577_v16 }
 0xe8f   :  { %4146 = vtanh.f32 %v1059_v34 }
 0xe90   :  { %v1030_v46 = vpop.permute.xlu1 %1029 }
 0xe91   :  { %v1032_v36 = vadd.f32 %v1030_v46, %v4533_v21 }
 0xe93   :  { %4148 = vtanh.f32 %v1032_v36 }
 0xe99   :  { %v4147_v37 = vpop.eup %4146 }
 0xe9a   :  { %1063 = vrot.lane.b32.xlu0 %v4147_v37, %s4286_s5 }
 0xe9d   :  { %v4149_v38 = vpop.eup %4148 }
 0xe9e   :  { %1036 = vrot.lane.b32.xlu1 %v4149_v38, %s4286_s5 }
 0xf0c   :  { %v1064_v40 = vpop.permute.xlu0 %1063 }
 0xf0d   :  { %v1066_v42 = vmul.f32 %v1064_v40, %v1061_v39 }
 0xf0f   :  { %v4616_v43 = vadd.f32 %v1067_v41, %v1066_v42 }
 0xf10   :  { %v1037_v21 = vpop.permute.xlu1 %1036 }
 0xf11   :  { %v1095_v16 = vcombine.low %v4616_v43, %v4616_v43  ;;  %v1039_v52 = vmul.f32 %v1037_v21, %v1034_v50 }
 0xf13   :  { %v1102_v45 = vrot.slane %v1095_v16, %v4423_v28  ;;  %v4623_v54 = vadd.f32 %v1040_v53, %v1039_v52 }
 0xf15   :  { %1103 = vrot.lane.b32.xlu0 %v1102_v45, %s4287_s26 }
 0xf87   :  { %v1104_v55 = vpop.permute.xlu0 %1103 }
 0xf88   :  { %v1106_v57 = vsel %vm413_vm2, %v4623_v54, %v1104_v55 }
 0xf89   :  { %1108 = vrot.lane.b32.xlu1 %v1106_v57, %s4286_s5 }
 0xffb   :  { %v1109_v58 = vpop.permute.xlu1 %1108 }
 0xffc   :  { %3822 = vmatmul.mubr.msk.f32.vlgmr.msra.gmra.mrb[6].mxu1 %vm242_vm3, %v1109_v58 }
 0xffd   :  { %3982 = vmatpush3.bf16.msra.mxu1 %v4379_v5  ;;  %3835 = vmatprep.mubr.msk.f32.mxu1 %vm4281_vm0, %v5507_v7 }
0x10cf   :  { %v1178_v60 = vpop.f32.mrb[6].mxu1 }
0x10d0   :  { %v1179_v61 = vadd.f32 %v4443_v35, %v1178_v60  ;;  %v3823_v62 = vpop.f32.mrb[7].mxu1 }
0x10d2   :  { %v1196_v1 = vrot.slane %v1179_v61, %v4423_v28  ;;  %v1182_v8 = vadd.f32 %v1179_v61, %v4539_v24 }
0x10d4   :  { %v1215_v2 = vcombine.high %v1196_v1, %v1196_v1  ;;  %v3657_v5 = vmul.f32 -1.442695, %v1182_v8 }
0x10d6   :  { %1224 = vrot.lane.b32.xlu0 %v1215_v2, %s4284_s23  ;;  %v1217_v6 = vadd.f32 %v1215_v2, %v4543_v26 }
0x10d8   :  { %v3658_v9 = vmul.f32 -1.442695, %v1217_v6 }
0x10da   :  { %1197 = vrot.lane.b32.xlu0 %v1196_v1, %s4284_s23  ;;  %4150 = vpow2.f32 %v3658_v9 }
0x10db   :  { %4152 = vpow2.f32 %v3657_v5 }
0x10e4   :  { %v4151_v11 = vpop.eup %4150 }
0x10e5   :  { %v1221_v12 = vadd.f32 1.0, %v4151_v11  ;;  %v4153_v13 = vpop.eup %4152 }
0x10e6   :  { %v1186_v15 = vadd.f32 1.0, %v4153_v13 }
0x10e7   :  { %4154 = vrcp.f32 %v1221_v12 }
0x10e8   :  { %4156 = vrcp.f32 %v1186_v15 }
0x10f1   :  { %v4155_v17 = vpop.eup %4154 }
0x10f2   :  { %v4157_v23 = vpop.eup %4156  ;;  %v1234_v46 = vsub.f32 1.0, %v4155_v17  ;;  %v1240_v37 = vmul.f32 %v4155_v17, %v4616_v43 }
0x10f3   :  { %v1207_v41 = vsub.f32 1.0, %v4157_v23  ;;  %v1213_v16 = vmul.f32 %v4157_v23, %v4623_v54 }
0x1148   :  { %v1225_v19 = vpop.permute.xlu0 %1224 }
0x1149   :  { %v1227_v20 = vmul.f32 %v4155_v17, %v1225_v19 }
0x114b   :  { %1229 = vrot.lane.b32.xlu1 %v1227_v20, %s4285_s4 }
0x114c   :  { %v1198_v25 = vpop.permute.xlu0 %1197 }
0x114d   :  { %v1200_v27 = vmul.f32 %v4157_v23, %v1198_v25 }
0x114f   :  { %1202 = vrot.lane.b32.xlu1 %v1200_v27, %s4285_s4 }
0x11bd   :  { %v1230_v29 = vpop.permute.xlu1 %1229 }
0x11be   :  { %v1232_v30 = vadd.f32 %v1230_v29, %v4543_v26 }
0x11c0   :  { %4158 = vtanh.f32 %v1232_v30 }
0x11c1   :  { %v1203_v44 = vpop.permute.xlu1 %1202 }
0x11c2   :  { %v1205_v31 = vadd.f32 %v1203_v44, %v4539_v24 }
0x11c4   :  { %4160 = vtanh.f32 %v1205_v31 }
0x11ca   :  { %v4159_v32 = vpop.eup %4158 }
0x11cb   :  { %1236 = vrot.lane.b32.xlu0 %v4159_v32, %s4286_s5 }
0x11ce   :  { %v4161_v34 = vpop.eup %4160 }
0x11cf   :  { %1209 = vrot.lane.b32.xlu1 %v4161_v34, %s4286_s5 }
0x123d   :  { %v1237_v36 = vpop.permute.xlu0 %1236 }
0x123e   :  { %v1239_v38 = vmul.f32 %v1237_v36, %v1234_v46 }
0x1240   :  { %v4645_v39 = vadd.f32 %v1240_v37, %v1239_v38 }
0x1241   :  { %v1210_v24 = vpop.permute.xlu1 %1209 }
0x1242   :  { %v1268_v26 = vcombine.low %v4645_v39, %v4645_v39  ;;  %v1212_v42 = vmul.f32 %v1210_v24, %v1207_v41 }
0x1244   :  { %v1275_v40 = vrot.slane %v1268_v26, %v4423_v28  ;;  %v4652_v45 = vadd.f32 %v1213_v16, %v1212_v42 }
0x1246   :  { %1276 = vrot.lane.b32.xlu0 %v1275_v40, %s4287_s26 }
0x12b8   :  { %v1277_v21 = vpop.permute.xlu0 %1276 }
0x12b9   :  { %v1279_v50 = vsel %vm413_vm2, %v4652_v45, %v1277_v21 }
0x12ba   :  { %1281 = vrot.lane.b32.xlu1 %v1279_v50, %s4286_s5 }
0x132c   :  { %v1282_v52 = vpop.permute.xlu1 %1281 }
0x132d   :  { %3829 = vmatmul.mubr.msk.f32.vlgmr.msra.gmra.mrb[6].mxu0 %vm242_vm3, %v1282_v52 }
0x1400   :  { %v1351_v53 = vpop.f32.mrb[6].mxu0 }
0x1401   :  { %v1352_v55 = vadd.f32 %v4443_v35, %v1351_v53  ;;  %v3830_v57 = vpop.f32.mrb[7].mxu0 }
0x1403   :  { %v1369_v58 = vrot.slane %v1352_v55, %v4423_v28  ;;  %v1355_v62 = vadd.f32 %v1352_v55, %v4459_v47 }
0x1405   :  { %v1388_v60 = vcombine.high %v1369_v58, %v1369_v58  ;;  %v3660_v2 = vmul.f32 -1.442695, %v1355_v62 }
0x1407   :  { %1397 = vrot.lane.b32.xlu0 %v1388_v60, %s4284_s23  ;;  %v1390_v61 = vadd.f32 %v1388_v60, %v4500_v33 }
0x1409   :  { %v3661_v1 = vmul.f32 -1.442695, %v1390_v61 }
0x140b   :  { %1370 = vrot.lane.b32.xlu0 %v1369_v58, %s4284_s23  ;;  %4162 = vpow2.f32 %v3661_v1 }
0x140c   :  { %4164 = vpow2.f32 %v3660_v2 }
0x1415   :  { %v4163_v6 = vpop.eup %4162 }
0x1416   :  { %v1394_v8 = vadd.f32 1.0, %v4163_v6  ;;  %v4165_v9 = vpop.eup %4164 }
0x1417   :  { %v1359_v5 = vadd.f32 1.0, %v4165_v9 }
0x1418   :  { %4166 = vrcp.f32 %v1394_v8 }
0x1419   :  { %4168 = vrcp.f32 %v1359_v5 }
0x1422   :  { %v4167_v11 = vpop.eup %4166 }
0x1423   :  { %v4169_v15 = vpop.eup %4168  ;;  %v1407_v44 = vsub.f32 1.0, %v4167_v11  ;;  %v1413_v32 = vmul.f32 %v4167_v11, %v4645_v39 }
0x1424   :  { %v1380_v37 = vsub.f32 1.0, %v4169_v15  ;;  %v1386_v26 = vmul.f32 %v4169_v15, %v4652_v45 }
0x1479   :  { %v1398_v12 = vpop.permute.xlu0 %1397 }
0x147a   :  { %v1400_v13 = vmul.f32 %v4167_v11, %v1398_v12 }
0x147c   :  { %1402 = vrot.lane.b32.xlu1 %v1400_v13, %s4285_s4 }
0x147d   :  { %v1371_v17 = vpop.permute.xlu0 %1370 }
0x147e   :  { %v1373_v19 = vmul.f32 %v4169_v15, %v1371_v17 }
0x1480   :  { %1375 = vrot.lane.b32.xlu1 %v1373_v19, %s4285_s4 }
0x14ee   :  { %v1403_v20 = vpop.permute.xlu1 %1402 }
0x14ef   :  { %v1405_v23 = vadd.f32 %v1403_v20, %v4500_v33 }
0x14f1   :  { %4170 = vtanh.f32 %v1405_v23  ;;  %v1262_v23 = vrot.slane %v4645_v39, %v4423_v28  ;;  %v396_v39 = vrot.slane %v4477_v14, %v4423_v28  ;;  %v1076_v14 = vrot.slane %v4623_v54, %v4423_v28 }
0x14f2   :  { %v1376_v25 = vpop.permute.xlu1 %1375 }
0x14f3   :  { %v1378_v27 = vadd.f32 %v1376_v25, %v4459_v47 }
0x14f5   :  { %4172 = vtanh.f32 %v1378_v27  ;;  %v730_v27 = vrot.slane %v4560_v0, %v4423_v28 }
0x14fb   :  { %v4171_v29 = vpop.eup %4170 }
0x14fc   :  { %1409 = vrot.lane.b32.xlu0 %v4171_v29, %s4286_s5 }
0x14ff   :  { %v4173_v30 = vpop.eup %4172 }
0x1500   :  { %1382 = vrot.lane.b32.xlu1 %v4173_v30, %s4286_s5 }
0x156e   :  { %v1410_v31 = vpop.permute.xlu0 %1409 }
0x156f   :  { %v1412_v34 = vmul.f32 %v1410_v31, %v1407_v44 }
0x1571   :  { %v4671_v46 = vadd.f32 %v1413_v32, %v1412_v34 }
0x1572   :  { %v1383_v47 = vpop.permute.xlu1 %1382 }
0x1573   :  { %v1441_v33 = vcombine.low %v4671_v46, %v4671_v46  ;;  %v1385_v38 = vmul.f32 %v1383_v47, %v1380_v37  ;;  %v1435_v25 = vrot.slane %v4671_v46, %v4423_v28 }
0x1575   :  { %v1448_v36 = vrot.slane %v1441_v33, %v4423_v28  ;;  %v4678_v40 = vadd.f32 %v1386_v26, %v1385_v38  ;;  %v557_v38 = vrot.slane %v4517_v10, %v4423_v28  ;;  %v1249_v10 = vrot.slane %v4652_v45, %v4423_v28 }
0x1577   :  { %1449 = vrot.lane.b32.xlu0 %v1448_v36, %s4287_s26 }
0x15e9   :  { %v1450_v24 = vpop.permute.xlu0 %1449 }
0x15ea   :  { %v1452_v41 = vsel %vm413_vm2, %v4678_v40, %v1450_v24 }
0x15eb   :  { %1454 = vrot.lane.b32.xlu1 %v1452_v41, %s4286_s5 }
0x165d   :  { %v1455_v42 = vpop.permute.xlu1 %1454 }
0x165e   :  { %3836 = vmatmul.mubr.msk.f32.vlgmr.msra.gmra.mrb[8].mxu1 %vm242_vm3, %v1455_v42 }
0x1731   :  { %v1524_v16 = vpop.f32.mrb[8].mxu1 }
0x1732   :  { %v1525_v21 = vadd.f32 %v4443_v35, %v1524_v16  ;;  %v3837_v50 = vpop.f32.mrb[9].mxu1 }
0x1734   :  { %v1542_v52 = vrot.slane %v1525_v21, %v4423_v28  ;;  %v1528_v55 = vadd.f32 %v1525_v21, %v4467_v49 }
0x1736   :  { %1543 = vrot.lane.b32.xlu1 %v1542_v52, %s4284_s23  ;;  %v1561_v53 = vcombine.high %v1542_v52, %v1542_v52  ;;  %v3663_v58 = vmul.f32 -1.442695, %v1528_v55 }
0x1738   :  { %1570 = vrot.lane.b32.xlu0 %v1561_v53, %s4284_s23  ;;  %v1563_v57 = vadd.f32 %v1561_v53, %v4463_v48  ;;  %4174 = vpow2.f32 %v3663_v58 }
0x173a   :  { %v3664_v60 = vmul.f32 -1.442695, %v1563_v57 }
0x173c   :  { %4176 = vpow2.f32 %v3664_v60 }
0x1742   :  { %v4175_v61 = vpop.eup %4174 }
0x1743   :  { %v1532_v1 = vadd.f32 1.0, %v4175_v61  ;;  %v1669_v61 = vld [vmem:[%s5498_s6] sm:$0xff] }
0x1745   :  { %4178 = vrcp.f32 %v1532_v1 }
0x1746   :  { %v4177_v62 = vpop.eup %4176 }
0x1747   :  { %v1567_v35 = vadd.f32 1.0, %v4177_v62  ;;  %v1670_v62 = vld [vmem:[%s5498_s6 + $0x8] sm:$0xff] }
0x1748   :  { %v3983_v1 = vpack.c.bf16 %v1670_v62, %v1669_v61 }
0x1749   :  { %4180 = vrcp.f32 %v1567_v35 }
0x174a   :  { %3984 = vmatprep.subr.bf16.mxu0 %v3983_v1 }
0x174b   :  { %3986 = vmatpush3.bf16.msra.mxu0 %v3983_v1 }
0x174f   :  { %v4690_v2 = vpop.eup %4178 }
0x1750   :  { %v1553_v26 = vsub.f32 1.0, %v4690_v2  ;;  %v1559_v42 = vmul.f32 %v4690_v2, %v4678_v40 }
0x1753   :  { %v4181_v9 = vpop.eup %4180 }
0x1754   :  { %v1580_v30 = vsub.f32 1.0, %v4181_v9  ;;  %v1586_v44 = vmul.f32 %v4181_v9, %v4671_v46  ;;  %v916_v46 = vrot.slane %v4587_v51, %v4423_v28  ;;  %v903_v51 = vrot.slane %v4594_v59, %v4423_v28 }
0x17a8   :  { %v1544_v6 = vpop.permute.xlu1 %1543 }
0x17a9   :  { %v1546_v8 = vmul.f32 %v4690_v2, %v1544_v6  ;;  %v1671_v2 = vld [vmem:[%s5498_s6 + $0x10] sm:$0xff]  ;;  %v1672_v6 = vld [vmem:[%s5498_s6 + $0x18] sm:$0xff] }
0x17aa   :  { %v1571_v5 = vpop.permute.xlu0 %1570 }
0x17ab   :  { %v1573_v11 = vmul.f32 %v4181_v9, %v1571_v5  ;;  %1548 = vrot.lane.b32.xlu1 %v1546_v8, %s4285_s4  ;;  %v3987_v8 = vpack.c.bf16 %v1672_v6, %v1671_v2 }
0x17ad   :  { %1575 = vrot.lane.b32.xlu0 %v1573_v11, %s4285_s4  ;;  %3988 = vmatprep.subr.bf16.mxu0 %v3987_v8 }
0x17ae   :  { %3990 = vmatpush3.bf16.msra.mxu0 %v3987_v8 }
0x181d   :  { %v1549_v12 = vpop.permute.xlu1 %1548 }
0x181e   :  { %v1551_v13 = vadd.f32 %v1549_v12, %v4467_v49  ;;  %v1089_v49 = vrot.slane %v4616_v43, %v4423_v28  ;;  %v743_v43 = vrot.slane %v4553_v56, %v4423_v28  ;;  %v1422_v56 = vrot.slane %v4678_v40, %v4423_v28 }
0x181f   :  { %v1576_v15 = vpop.permute.xlu0 %1575 }
0x1820   :  { %4182 = vtanh.f32 %v1551_v13  ;;  %v1578_v17 = vadd.f32 %v1576_v15, %v4463_v48  ;;  %v570_v48 = vrot.slane %v4510_v63, %v4423_v28  ;;  %v383_v63 = vrot.slane %v4483_v22, %v4423_v28 }
0x1822   :  { %4184 = vtanh.f32 %v1578_v17 }
0x182a   :  { %v4183_v19 = vpop.eup %4182 }
0x182b   :  { %1555 = vrot.lane.b32.xlu1 %v4183_v19, %s4286_s5 }
0x182c   :  { %v4185_v20 = vpop.eup %4184 }
0x182d   :  { %1582 = vrot.lane.b32.xlu0 %v4185_v20, %s4286_s5 }
0x182f   :  { %1263 = vrot.lane.b32.xlu1 %v1262_v23, %s4288_s27 }
0x1831   :  { %1090 = vrot.lane.b32.xlu0 %v1089_v49, %s4288_s27 }
0x1833   :  { %571 = vrot.lane.b32.xlu1 %v570_v48, %s4288_s27 }
0x1835   :  { %1436 = vrot.lane.b32.xlu0 %v1435_v25, %s4288_s27 }
0x1839   :  { %397 = vrot.lane.b32.xlu0 %v396_v39, %s4288_s27 }
0x183d   :  { %744 = vrot.lane.b32.xlu0 %v743_v43, %s4288_s27 }
0x1841   :  { %384 = vrot.lane.b32.xlu0 %v383_v63, %s4286_s5 }
0x1845   :  { %731 = vrot.lane.b32.xlu0 %v730_v27, %s4286_s5 }
0x1849   :  { %1077 = vrot.lane.b32.xlu0 %v1076_v14, %s4286_s5 }
0x184d   :  { %1423 = vrot.lane.b32.xlu0 %v1422_v56, %s4286_s5 }
0x189d   :  { %v1556_v29 = vpop.permute.xlu1 %1555 }
0x189e   :  { %v1558_v41 = vmul.f32 %v1556_v29, %v1553_v26 }
0x189f   :  { %v1583_v22 = vpop.permute.xlu0 %1582 }
0x18a0   :  { %v1585_v31 = vmul.f32 %v1583_v22, %v1580_v30  ;;  %v1560_v21 = vadd.f32 %v1559_v42, %v1558_v41 }
0x18a1   :  { %v1264_v0 = vpop.permute.xlu1 %1263 }
0x18a2   :  { %v1587_v32 = vadd.f32 %v1586_v44, %v1585_v31  ;;  %1267 = vst.msk [vmem:[#allocation3 + $0x4] sm:$0x3] %vm387_vm4, %v1264_v0  ;;  %v1595_v52 = vrot.slane %v1560_v21, %v4423_v28  ;;  %v4290_v21 = vmov 1966171168  }
0x18a3   :  { %v1091_v34 = vpop.permute.xlu0 %1090 }
0x18a4   :  { %1094 = vst.msk [vmem:[#allocation3 + $0x6] sm:$0x3] %vm387_vm4, %v1091_v34  ;;  %v1608_v54 = vrot.slane %v1587_v32, %v4423_v28 }
0x18a5   :  { %v572_v33 = vpop.permute.xlu1 %571 }
0x18a6   :  { %575 = vst.msk [vmem:[#allocation3 + $0xc] sm:$0x3] %vm387_vm4, %v572_v33  ;;  %1609 = vrot.lane.b32.xlu1 %v1608_v54, %s4288_s27 }
0x18a7   :  { %v1437_v36 = vpop.permute.xlu0 %1436 }
0x18a8   :  { %1440 = vst.msk [vmem:[#allocation3 + $0x2] sm:$0x3] %vm387_vm4, %v1437_v36 }
0x18a9   :  { %v1623_v47 = vld [vmem:[#allocation3 + $0x4] sm:$0x3] }
0x18aa   :  { %917 = vrot.lane.b32.xlu1 %v916_v46, %s4288_s27  ;;  %1641 = vrot.lane.b32.xlu0 %v1623_v47, %s4289_s28 }
0x18ab   :  { %v398_v37 = vpop.permute.xlu0 %397  ;;  %v1624_v55 = vld [vmem:[#allocation3 + $0x6] sm:$0x3] }
0x18ac   :  { %401 = vst.msk [vmem:[#allocation3 + $0xe] sm:$0x3] %vm387_vm4, %v398_v37 }
0x18ad   :  { %v1627_v15 = vld [vmem:[#allocation3 + $0xc] sm:$0x3] }
0x18ae   :  { %558 = vrot.lane.b32.xlu1 %v557_v38, %s4286_s5 }
0x18af   :  { %v745_v24 = vpop.permute.xlu0 %744  ;;  %v1622_v40 = vld [vmem:[#allocation3 + $0x2] sm:$0x3] }
0x18b0   :  { %748 = vst.msk [vmem:[#allocation3 + $0xa] sm:$0x3] %vm387_vm4, %v745_v24 }
0x18b2   :  { %904 = vrot.lane.b32.xlu1 %v903_v51, %s4286_s5 }
0x18b3   :  { %v385_v16 = vpop.permute.xlu0 %384  ;;  %v1628_v57 = vld [vmem:[#allocation3 + $0xe] sm:$0x3] }
0x18b4   :  { %388 = vst.msk [vmem:[#allocation2] sm:$0x3] %vm387_vm4, %v385_v16 }
0x18b6   :  { %1250 = vrot.lane.b32.xlu1 %v1249_v10, %s4286_s5  ;;  %v1821_v10 = vunpack.c.l.s4 %v4290_v21 }
0x18b7   :  { %v732_v50 = vpop.permute.xlu0 %731  ;;  %v1626_v45 = vld [vmem:[#allocation3 + $0xa] sm:$0x3] }
0x18b8   :  { %735 = vst.msk [vmem:[#allocation2 + $0x4] sm:$0x3] %vm387_vm4, %v732_v50  ;;  %v1822_v50 = vunpack.c.0.s8 %v1821_v10 }
0x18ba   :  { %1596 = vrot.lane.b32.xlu1 %v1595_v52, %s4286_s5  ;;  %v3665_v52 = vld [vmem:[%s5499_s7] ss:$0 sm:$0xff] }
0x18bb   :  { %v1078_v59 = vpop.permute.xlu0 %1077  ;;  %v1613_v56 = vld [vmem:[#allocation2] sm:$0x3] }
0x18bc   :  { %1081 = vst.msk [vmem:[#allocation2 + $0x8] sm:$0x3] %vm387_vm4, %v1078_v59  ;;  %v4809_v59 = vsub.s32 %v1822_v50, %v4406_v18 }
0x18be   :  { %1639 = vrot.lane.b32.xlu1 %v1622_v40, %s4289_s28 }
0x18bf   :  { %v1424_v53 = vpop.permute.xlu0 %1423  ;;  %v1615_v39 = vld [vmem:[#allocation2 + $0x4] sm:$0x3] }
0x18c0   :  { %1427 = vst.msk [vmem:[#allocation2 + $0xc] sm:$0x3] %vm387_vm4, %v1424_v53 }
0x18c2   :  { %1643 = vrot.lane.b32.xlu1 %v1624_v55, %s4289_s28 }
0x18c3   :  { %v1617_v14 = vld [vmem:[#allocation2 + $0x8] sm:$0x3] }
0x18c6   :  { %1647 = vrot.lane.b32.xlu1 %v1626_v45, %s4289_s28 }
0x18c7   :  { %v1619_v47 = vld [vmem:[#allocation2 + $0xc] sm:$0x3] }
0x18ca   :  { %1651 = vrot.lane.b32.xlu1 %v1628_v57, %s4289_s28 }
0x1918   :  { %v1610_v58 = vpop.permute.xlu1 %1609 }
0x1919   :  { %1612 = vst.msk [vmem:[#allocation3] sm:$0x3] %vm387_vm4, %v1610_v58 }
0x191c   :  { %v918_v60 = vpop.permute.xlu1 %917  ;;  %v1642_v20 = vpop.permute.xlu0 %1641 }
0x191d   :  { %921 = vst.msk [vmem:[#allocation3 + $0x8] sm:$0x3] %vm387_vm4, %v918_v60  ;;  %v1663_v43 = vsel %vm242_vm3, %v1615_v39, %v1642_v20  ;;  %v4813_v60 = vsub.s32 0, %v4406_v18 }
0x1920   :  { %v559_v35 = vpop.permute.xlu1 %558  ;;  %v1621_v12 = vld [vmem:[#allocation3] sm:$0x3] }
0x1921   :  { %562 = vst.msk [vmem:[#allocation2 + $0x2] sm:$0x3] %vm387_vm4, %v559_v35 }
0x1924   :  { %v905_v9 = vpop.permute.xlu1 %904  ;;  %v1625_v5 = vld [vmem:[#allocation3 + $0x8] sm:$0x3] }
0x1925   :  { %908 = vst.msk [vmem:[#allocation2 + $0x6] sm:$0x3] %vm387_vm4, %v905_v9  ;;  %1645 = vrot.lane.b32.xlu0 %v1625_v5, %s4289_s28  ;;  %v4823_v9 = vld [vmem:[%s5493_s1 + $0x20] sm:$0xf] }
0x1928   :  { %v1251_v11 = vpop.permute.xlu1 %1250  ;;  %v1614_v63 = vld [vmem:[#allocation2 + $0x2] sm:$0x3] }
0x1929   :  { %1254 = vst.msk [vmem:[#allocation2 + $0xa] sm:$0x3] %vm387_vm4, %v1251_v11  ;;  %1637 = vrot.lane.b32.xlu0 %v1621_v12, %s4289_s28 }
0x192c   :  { %v1597_v13 = vpop.permute.xlu1 %1596  ;;  %v1616_v23 = vld [vmem:[#allocation2 + $0x6] sm:$0x3] }
0x192d   :  { %1600 = vst.msk [vmem:[#allocation2 + $0xe] sm:$0x3] %vm387_vm4, %v1597_v13  ;;  %1649 = vrot.lane.b32.xlu0 %v1627_v15, %s4289_s28  ;;  %v4830_v13 = vld [vmem:[%s5493_s1] sm:$0xf] }
0x1930   :  { %v1640_v17 = vpop.permute.xlu1 %1639  ;;  %v1618_v31 = vld [vmem:[#allocation2 + $0xa] sm:$0x3] }
0x1931   :  { %v1662_v30 = vsel %vm242_vm3, %v1614_v63, %v1640_v17  ;;  %v4835_v17 = vld [vmem:[%s5493_s1 + $0x24] sm:$0xf] }
0x1934   :  { %v1644_v19 = vpop.permute.xlu1 %1643  ;;  %v1620_v33 = vld [vmem:[#allocation2 + $0xe] sm:$0x3] }
0x1935   :  { %v1664_v25 = vsel %vm242_vm3, %v1616_v23, %v1644_v19 }
0x1936   :  { %v1689_v27 = vcombine.low %v1663_v43, %v1664_v25  ;;  %v4846_v43 = vld [vmem:[%s5493_s1 + $0x28] sm:$0xf] }
0x1938   :  { %v1648_v49 = vpop.permute.xlu1 %1647  ;;  %v1703_v54 = vrot.slane %v1689_v27, %v4423_v28 }
0x1939   :  { %v1666_v34 = vsel %vm242_vm3, %v1618_v31, %v1648_v49 }
0x193c   :  { %v1652_v0 = vpop.permute.xlu1 %1651 }
0x193d   :  { %v1668_v38 = vsel %vm242_vm3, %v1620_v33, %v1652_v0 }
0x1997   :  { %v1646_v48 = vpop.permute.xlu0 %1645 }
0x1998   :  { %v1665_v22 = vsel %vm242_vm3, %v1617_v14, %v1646_v48 }
0x1999   :  { %v1705_v36 = vcombine.low %v1665_v22, %v1666_v34 }
0x199b   :  { %v1638_v29 = vpop.permute.xlu0 %1637  ;;  %v1713_v51 = vrot.slane %v1705_v36, %v4423_v28 }
0x199c   :  { %v1661_v44 = vsel %vm242_vm3, %v1613_v56, %v1638_v29 }
0x199d   :  { %v1688_v32 = vcombine.low %v1661_v44, %v1662_v30  ;;  %v4856_v30 = vld [vmem:[%s5493_s1 + $0x8] sm:$0xf] }
0x199f   :  { %v1696_v46 = vrot.slane %v1688_v32, %v4423_v28  ;;  %v1650_v37 = vpop.permute.xlu0 %1649  ;;  %v4864_v32 = vld [vmem:[%s5493_s1 + $0x30] sm:$0xf] }
0x19a0   :  { %v1667_v26 = vsel %vm242_vm3, %v1619_v47, %v1650_v37  ;;  %v4872_v47 = vld [vmem:[%s5493_s1 + $0x10] sm:$0xf] }
0x19a1   :  { %v4795_v24 = vcombine.low %v1696_v46, %v1703_v54  ;;  %v1706_v41 = vcombine.low %v1667_v26, %v1668_v38 }
0x19a3   :  { %v1720_v42 = vrot.slane %v1706_v41, %v4423_v28  ;;  %3846 = vmatprep.mubr.msk.f32.mxu0 %vm109_vm1, %v4795_v24 }
0x19a5   :  { %v4801_v16 = vcombine.low %v1713_v51, %v1720_v42  ;;  %v4880_v51 = vld [vmem:[%s5493_s1 + $0x4] sm:$0xf] }
0x19a7   :  { %5513 = vst [vmem:[#allocation8_spill] sm:$0xff] %v4801_v16  ;;  %3847 = vmatmul.mubr.msk.f32.vlgmr.msra.gmra.mrb[8].mxu0 %vm109_vm1, %v4801_v16 }
0x1a7a   :  { %v3848_v40 = vpop.f32.mrb[8].mxu0 }
0x1a7b   :  { %v1798_v53 = vadd.f32 %v3848_v40, %v3665_v52  ;;  %v1792_v55 = vpop.f32.mrb[9].mxu0 }
0x1a7c   :  { %v1793_v45 = vadd.f32 %v3665_v52, %v1792_v55  ;;  %v4889_v52 = vld [vmem:[%s5493_s1 + $0xc] sm:$0xf] }
0x1a7d   :  { %v1868_v57 = vcombine.high %v1798_v53, %v1798_v53  ;;  %v1875_v58 = vrot.slane %v1798_v53, %v4809_v59 }
0x1a7e   :  { %v1819_v61 = vcombine.high %v1793_v45, %v1793_v45  ;;  %v1826_v62 = vrot.slane %v1793_v45, %v4809_v59 }
0x1a7f   :  { %v1882_v1 = vrot.slane %v1868_v57, %v4809_v59  ;;  %v1883_v35 = vcombine.high %v1875_v58, %v1875_v58  ;;  %v1891_v2 = vrot.slane %v1875_v58, %v4809_v59  ;;  %v4898_v57 = vld [vmem:[%s5493_s1 + $0x2c] sm:$0xf] }
0x1a80   :  { %v1833_v6 = vrot.slane %v1819_v61, %v4809_v59  ;;  %v1842_v8 = vrot.slane %v1826_v62, %v4809_v59  ;;  %v1834_v5 = vcombine.high %v1826_v62, %v1826_v62 }
0x1a81   :  { %v1952_v11 = vrot.slane %v1891_v2, %v4813_v60  ;;  %v1905_v12 = vrot.slane %v1883_v35, %v4809_v59  ;;  %v1913_v15 = vcombine.high %v1891_v2, %v1891_v2  ;;  %v1898_v25 = vrot.slane %v1882_v1, %v4809_v59  ;;  %v4906_v35 = vld [vmem:[%s5493_s1 + $0x14] sm:$0xf] }
0x1a82   :  { %v1920_v19 = vrot.slane %v1842_v8, %v4813_v60  ;;  %v1864_v20 = vcombine.high %v1842_v8, %v1842_v8  ;;  %v1849_v63 = vrot.slane %v1833_v6, %v4809_v59  ;;  %v1856_v29 = vrot.slane %v1834_v5, %v4809_v59  ;;  %v4914_v5 = vld [vmem:[%s5493_s1 + $0x34] sm:$0xf] }
0x1a83   :  { %v2005_v23 = vmul.f32 %v1952_v11, %v4823_v9  ;;  %v1956_v49 = vrot.slane %v1905_v12, %v4813_v60  ;;  %v1960_v48 = vrot.slane %v1913_v15, %v4813_v60  ;;  %v1968_v31 = vrot.slane %v1898_v25, %v4813_v60 }
0x1a84   :  { %v1997_v39 = vmul.f32 %v1920_v19, %v4830_v13  ;;  %v1928_v56 = vrot.slane %v1864_v20, %v4813_v60  ;;  %v1835_v0 = vcombine.high %v1833_v6, %v1833_v6  ;;  %v1936_v33 = vrot.slane %v1849_v63, %v4813_v60  ;;  %v4922_v20 = vld [vmem:[%s5493_s1 + $0x18] sm:$0xf] }
0x1a85   :  { %v2038_v27 = vsel %vm2013_vm5, %v2005_v23, 0.0  ;;  %v2006_v14 = vmul.f32 %v1956_v49, %v4835_v17  ;;  %v2007_v44 = vmul.f32 %v1960_v48, %v4846_v43  ;;  %v1866_v36 = vcombine.high %v1856_v29, %v1856_v29 }
0x1a86   :  { %2039 = vadd.xlane.f32.xlu0 %v2038_v27  ;;  %v2014_v34 = vsel %vm2013_vm5, %v1997_v39, 0.0  ;;  %v1999_v54 = vmul.f32 %v1928_v56, %v4856_v30  ;;  %v1884_v46 = vcombine.high %v1882_v1, %v1882_v1  ;;  %v2009_v38 = vmul.f32 %v1968_v31, %v4864_v32  ;;  %v4938_v56 = vld [vmem:[%s5493_s1 + $0x1c] sm:$0xf] }
0x1a87   :  { %v2041_v22 = vsel %vm2013_vm5, %v2006_v14, 0.0  ;;  %v2044_v37 = vsel %vm2013_vm5, %v2007_v44, 0.0  ;;  %v1924_v26 = vrot.slane %v1856_v29, %v4813_v60  ;;  %v1915_v41 = vcombine.high %v1905_v12, %v1905_v12 }
0x1a88   :  { %2042 = vadd.xlane.f32.xlu1 %v2041_v22  ;;  %v2020_v42 = vsel %vm2013_vm5, %v1999_v54, 0.0  ;;  %v2001_v21 = vmul.f32 %v1936_v33, %v4872_v47  ;;  %v1932_v10 = vrot.slane %v1866_v36, %v4813_v60  ;;  %v1863_v50 = vrot.slane %v1835_v0, %v4809_v59 }
0x1a89   :  { %v2050_v40 = vsel %vm2013_vm5, %v2009_v38, 0.0  ;;  %v1998_v53 = vmul.f32 %v1924_v26, %v4880_v51  ;;  %v1964_v55 = vrot.slane %v1915_v41, %v4813_v60  ;;  %v1912_v45 = vrot.slane %v1884_v46, %v4809_v59 }
0x1a8a   :  { %2015 = vadd.xlane.f32.xlu0 %v2014_v34  ;;  %v2026_v58 = vsel %vm2013_vm5, %v2001_v21, 0.0  ;;  %v2000_v61 = vmul.f32 %v1932_v10, %v4889_v52  ;;  %v1940_v62 = vrot.slane %v1863_v50, %v4813_v60  ;;  %v1865_v1 = vcombine.high %v1849_v63, %v1849_v63  ;;  %v4948_v34 = vld [vmem:[%s5493_s1 + $0x3c] sm:$0xf] }
0x1a8b   :  { %v2017_v59 = vsel %vm2013_vm5, %v1998_v53, 0.0  ;;  %v2008_v2 = vmul.f32 %v1964_v55, %v4898_v57  ;;  %v1972_v6 = vrot.slane %v1912_v45, %v4813_v60  ;;  %v1914_v8 = vcombine.high %v1898_v25, %v1898_v25  ;;  %v4930_v25 = vld [vmem:[%s5493_s1 + $0x38] sm:$0xf] }
0x1a8c   :  { %2045 = vadd.xlane.f32.xlu1 %v2044_v37  ;;  %v2023_v11 = vsel %vm2013_vm5, %v2000_v61, 0.0  ;;  %v2002_v12 = vmul.f32 %v1940_v62, %v4906_v35  ;;  %v1944_v15 = vrot.slane %v1865_v1, %v4813_v60  ;;  %v1867_v19 = vcombine.high %v1863_v50, %v1863_v50 }
0x1a8d   :  { %v2047_v23 = vsel %vm2013_vm5, %v2008_v2, 0.0  ;;  %v2010_v49 = vmul.f32 %v1972_v6, %v4914_v5  ;;  %v1976_v48 = vrot.slane %v1914_v8, %v4813_v60  ;;  %v1916_v14 = vcombine.high %v1912_v45, %v1912_v45 }
0x1a8e   :  { %2021 = vadd.xlane.f32.xlu0 %v2020_v42  ;;  %v2029_v39 = vsel %vm2013_vm5, %v2002_v12, 0.0  ;;  %v2003_v63 = vmul.f32 %v1944_v15, %v4922_v20  ;;  %v1948_v27 = vrot.slane %v1867_v19, %v4813_v60  ;;  %v2079_v21 = vand.u32 127, %v80_v3 }
0x1a8f   :  { %v2053_v29 = vsel %vm2013_vm5, %v2010_v49, 0.0  ;;  %v2011_v22 = vmul.f32 %v1976_v48, %v4930_v25  ;;  %v1980_v0 = vrot.slane %v1916_v14, %v4813_v60 }
0x1a90   :  { %2051 = vadd.xlane.f32.xlu1 %v2050_v40  ;;  %v2032_v44 = vsel %vm2013_vm5, %v2003_v63, 0.0  ;;  %v2004_v31 = vmul.f32 %v1948_v27, %v4938_v56  ;;  %v4970_v40 = vsub.s32 %v2079_v21, %v4406_v18 }
0x1a91   :  { %v2056_v54 = vsel %vm2013_vm5, %v2011_v22, 0.0  ;;  %v2012_v36 = vmul.f32 %v1980_v0, %v4948_v34 }
0x1a92   :  { %2027 = vadd.xlane.f32.xlu0 %v2026_v58  ;;  %v2035_v33 = vsel %vm2013_vm5, %v2004_v31, 0.0 }
0x1a93   :  { %v2059_v46 = vsel %vm2013_vm5, %v2012_v36, 0.0 }
0x1a94   :  { %2018 = vadd.xlane.f32.xlu1 %v2017_v59 }
0x1a96   :  { %2024 = vadd.xlane.f32.xlu0 %v2023_v11 }
0x1a98   :  { %2048 = vadd.xlane.f32.xlu1 %v2047_v23 }
0x1a9a   :  { %2030 = vadd.xlane.f32.xlu0 %v2029_v39 }
0x1a9c   :  { %2054 = vadd.xlane.f32.xlu1 %v2053_v29 }
0x1a9e   :  { %2033 = vadd.xlane.f32.xlu0 %v2032_v44 }
0x1aa0   :  { %2057 = vadd.xlane.f32.xlu1 %v2056_v54 }
0x1aa2   :  { %2036 = vadd.xlane.f32.xlu0 %v2035_v33 }
0x1aa6   :  { %2060 = vadd.xlane.f32.xlu0 %v2059_v46 }
0x1b13   :  { %v4954_v37 = vpop.xlane.xlu0 %2039 }
0x1b14   :  { %v2115_v15 = vrot.slane %v4954_v37, %v4970_v40 }
0x1b15   :  { %v4956_v38 = vpop.xlane.xlu1 %2042 }
0x1b16   :  { %v2119_v8 = vrot.slane %v4956_v38, %v4970_v40 }
0x1b17   :  { %v4958_v26 = vpop.xlane.xlu0 %2015 }
0x1b18   :  { %v2083_v58 = vrot.slane %v4958_v26, %v4970_v40  ;;  %v2158_v63 = vsel %vm2144_vm6, %v2119_v8, %v2115_v15  ;;  %v4291_v15 = vmov 0  }
0x1b19   :  { %v4960_v41 = vpop.xlane.xlu1 %2045  ;;  %4089 = vset.pattern.permute.xlu0 %v4291_v15  ;;  %4088 = vset.pattern.permute.xlu1 %v4291_v15 }
0x1b1a   :  { %v2123_v11 = vrot.slane %v4960_v41, %v4970_v40 }
0x1b1b   :  { %v4962_v42 = vpop.xlane.xlu0 %2021 }
0x1b1c   :  { %v2091_v62 = vrot.slane %v4962_v42, %v4970_v40  ;;  %v2159_v14 = vsel %vm2146_vm7, %v2123_v11, %v2158_v63 }
0x1b1d   :  { %v4965_v10 = vpop.xlane.xlu1 %2051 }
0x1b1e   :  { %v2131_v33 = vrot.slane %v4965_v10, %v4970_v40 }
0x1b1f   :  { %v4967_v50 = vpop.xlane.xlu0 %2027 }
0x1b20   :  { %v2099_v48 = vrot.slane %v4967_v50, %v4970_v40 }
0x1b21   :  { %v4972_v53 = vpop.xlane.xlu1 %2018 }
0x1b22   :  { %v2087_v55 = vrot.slane %v4972_v53, %v4970_v40 }
0x1b23   :  { %v4976_v45 = vpop.xlane.xlu0 %2024 }
0x1b24   :  { %v2145_v3 = vsel %vm2144_vm6, %v2087_v55, %v2083_v58  ;;  %v2095_v59 = vrot.slane %v4976_v45, %v4970_v40 }
0x1b25   :  { %v4980_v61 = vpop.xlane.xlu1 %2048  ;;  %v2147_v2 = vsel %vm2146_vm7, %v2091_v62, %v2145_v3 }
0x1b26   :  { %v2149_v19 = vsel %vm2148_vm8, %v2095_v59, %v2147_v2  ;;  %v2127_v23 = vrot.slane %v4980_v61, %v4970_v40 }
0x1b27   :  { %v4985_v1 = vpop.xlane.xlu0 %2030  ;;  %v2151_v29 = vsel %vm2150_vm9, %v2099_v48, %v2149_v19  ;;  %v5039_v19 = vsub.s32 1, %v4406_v18  ;;  %v5046_v48 = vsub.s32 4, %v4406_v18 }
0x1b28   :  { %v2103_v49 = vrot.slane %v4985_v1, %v4970_v40  ;;  %v2160_v44 = vsel %vm2148_vm8, %v2127_v23, %v2159_v14 }
0x1b29   :  { %v4990_v6 = vpop.xlane.xlu1 %2054  ;;  %v2161_v55 = vsel %vm2150_vm9, %v2131_v33, %v2160_v44 }
0x1b2a   :  { %v2153_v31 = vsel %vm2152_vm10, %v2103_v49, %v2151_v29  ;;  %v2135_v0 = vrot.slane %v4990_v6, %v4970_v40  ;;  %v5055_v29 = vsub.s32 2, %v4406_v18 }
0x1b2b   :  { %v4996_v12 = vpop.xlane.xlu0 %2033 }
0x1b2c   :  { %v2107_v39 = vrot.slane %v4996_v12, %v4970_v40  ;;  %v2162_v62 = vsel %vm2152_vm10, %v2135_v0, %v2161_v55 }
0x1b2d   :  { %v5010_v27 = vpop.xlane.xlu1 %2057 }
0x1b2e   :  { %v2139_v36 = vrot.slane %v5010_v27, %v4970_v40  ;;  %v2155_v46 = vsel %vm2154_vm11, %v2107_v39, %v2153_v31 }
0x1b2f   :  { %v5014_v22 = vpop.xlane.xlu0 %2036 }
0x1b30   :  { %v2111_v54 = vrot.slane %v5014_v22, %v4970_v40  ;;  %v2163_v2 = vsel %vm2154_vm11, %v2139_v36, %v2162_v62  ;;  %v5065_v36 = vsub.s32 3, %v4406_v18 }
0x1b32   :  { %v2157_v21 = vsel %vm2156_vm12, %v2111_v54, %v2155_v46 }
0x1b33   :  { %v5029_v58 = vpop.xlane.xlu0 %2060  ;;  %v2168_v3 = vsel %vm2167_vm13, %v2157_v21, -inf  ;;  %v5068_v21 = vsub.s32 5, %v4406_v18 }
0x1b34   :  { %v2143_v59 = vrot.slane %v5029_v58, %v4970_v40  ;;  %2169 = vmax.xlane.f32.xlu1 %v2168_v3 }
0x1b36   :  { %v2164_v8 = vsel %vm2156_vm12, %v2143_v59, %v2163_v2  ;;  %v5077_v59 = vsub.s32 6, %v4406_v18 }
0x1b37   :  { %v2171_v11 = vsel %vm2167_vm13, %v2164_v8, -inf }
0x1b38   :  { %2172 = vmax.xlane.f32.xlu0 %v2171_v11 }
0x1bc1   :  { %v5050_v63 = vpop.xlane.xlu1 %2169 }
0x1bc2   :  { %v2183_v31 = vrot.slane %v5050_v63, %v5039_v19  ;;  %v2179_v2 = vrot.slane %v5050_v63, %v4813_v60 }
0x1bc4   :  { %v2257_v55 = vsub.f32 %v4972_v53, %v2183_v31 }
0x1bc5   :  { %v5041_v23 = vpop.xlane.xlu0 %2172 }
0x1bc6   :  { %v2211_v49 = vrot.slane %v5041_v23, %v4813_v60  ;;  %v2215_v39 = vrot.slane %v5041_v23, %v5039_v19  ;;  %v2227_v14 = vrot.slane %v5041_v23, %v5046_v48  ;;  %v2219_v54 = vrot.slane %v5041_v23, %v5055_v29 }
0x1bc7   :  { %v2274_v8 = vmul.f32 1.442695, %v2257_v55  ;;  %v2235_v11 = vrot.slane %v5041_v23, %v5077_v59 }
0x1bc8   :  { %v2264_v44 = vsub.f32 %v4954_v37, %v2211_v49  ;;  %v2265_v0 = vsub.f32 %v4956_v38, %v2215_v39  ;;  %v2268_v33 = vsub.f32 %v4965_v10, %v2227_v14  ;;  %v2223_v37 = vrot.slane %v5041_v23, %v5065_v36 }
0x1bc9   :  { %v2231_v38 = vrot.slane %v5041_v23, %v5068_v21  ;;  %v2266_v62 = vsub.f32 %v4960_v41, %v2219_v54  ;;  %v2256_v41 = vsub.f32 %v4958_v26, %v2179_v2  ;;  %v2187_v14 = vrot.slane %v5050_v63, %v5055_v29 }
0x1bca   :  { %v2288_v46 = vmul.f32 1.442695, %v2264_v44  ;;  %v2290_v3 = vmul.f32 1.442695, %v2265_v0  ;;  %v2296_v10 = vmul.f32 1.442695, %v2268_v33  ;;  %v2267_v53 = vsub.f32 %v4980_v61, %v2223_v37 }
0x1bcb   :  { %v2269_v15 = vsub.f32 %v4990_v6, %v2231_v38  ;;  %v2292_v49 = vmul.f32 1.442695, %v2266_v62  ;;  %v2270_v44 = vsub.f32 %v5010_v27, %v2235_v11  ;;  %v2272_v0 = vmul.f32 1.442695, %v2256_v41 }
0x1bcc   :  { %4186 = vpow2.f32 %v2288_v46  ;;  %v2294_v39 = vmul.f32 1.442695, %v2267_v53  ;;  %v2191_v6 = vrot.slane %v5050_v63, %v5065_v36  ;;  %v2258_v26 = vsub.f32 %v4962_v42, %v2187_v14 }
0x1bcd   :  { %4188 = vpow2.f32 %v2290_v3  ;;  %v2298_v31 = vmul.f32 1.442695, %v2269_v15  ;;  %v2300_v54 = vmul.f32 1.442695, %v2270_v44  ;;  %v2195_v27 = vrot.slane %v5050_v63, %v5046_v48 }
0x1bce   :  { %4190 = vpow2.f32 %v2296_v10  ;;  %v2259_v55 = vsub.f32 %v4976_v45, %v2191_v6  ;;  %v2276_v37 = vmul.f32 1.442695, %v2258_v26  ;;  %v2199_v38 = vrot.slane %v5050_v63, %v5068_v21 }
0x1bcf   :  { %4192 = vpow2.f32 %v2274_v8  ;;  %v2260_v62 = vsub.f32 %v4967_v50, %v2195_v27  ;;  %v5118_v8 = vsub.s32 7, %v4406_v18  ;;  %v2203_v53 = vrot.slane %v5050_v63, %v5077_v59 }
0x1bd0   :  { %4194 = vpow2.f32 %v2292_v49  ;;  %v2278_v10 = vmul.f32 1.442695, %v2259_v55  ;;  %v2261_v11 = vsub.f32 %v4985_v1, %v2199_v38 }
0x1bd1   :  { %4196 = vpow2.f32 %v2294_v39  ;;  %v2280_v50 = vmul.f32 1.442695, %v2260_v62  ;;  %v2207_v18 = vrot.slane %v5050_v63, %v5118_v8  ;;  %v2262_v41 = vsub.f32 %v4996_v12, %v2203_v53 }
0x1bd2   :  { %4198 = vpow2.f32 %v2298_v31  ;;  %v2282_v39 = vmul.f32 1.442695, %v2261_v11  ;;  %v2239_v31 = vrot.slane %v5041_v23, %v5118_v8 }
0x1bd3   :  { %4200 = vpow2.f32 %v2272_v0  ;;  %v2263_v1 = vsub.f32 %v5014_v22, %v2207_v18  ;;  %v2284_v44 = vmul.f32 1.442695, %v2262_v41 }
0x1bd4   :  { %4202 = vpow2.f32 %v2300_v54  ;;  %v2271_v12 = vsub.f32 %v5029_v58, %v2239_v31 }
0x1bd5   :  { %4204 = vpow2.f32 %v2276_v37  ;;  %v2286_v63 = vmul.f32 1.442695, %v2263_v1 }
0x1bd6   :  { %v5089_v61 = vpop.eup %4186  ;;  %4206 = vpow2.f32 %v2278_v10  ;;  %v2302_v26 = vmul.f32 1.442695, %v2271_v12 }
0x1bd7   :  { %2345 = vperm.xlu1 %4088, %v5089_v61   ;;  %v5095_v33 = vpop.eup %4188  ;;  %4208 = vpow2.f32 %v2280_v50 }
0x1bd8   :  { %v5097_v46 = vpop.eup %4190  ;;  %4210 = vpow2.f32 %v2282_v39 }
0x1bd9   :  { %2357 = vperm.xlu0 %4089, %v5097_v46   ;;  %v5104_v3 = vpop.eup %4192  ;;  %4212 = vpow2.f32 %v2284_v44 }
0x1bda   :  { %v5106_v42 = vpop.eup %4194  ;;  %4214 = vpow2.f32 %v2286_v63 }
0x1bdb   :  { %2348 = vperm.xlu1 %4088, %v5095_v33   ;;  %v5113_v2 = vpop.eup %4196  ;;  %4216 = vpow2.f32 %v2302_v26 }
0x1bdc   :  { %v5115_v45 = vpop.eup %4198 }
0x1bdd   :  { %2324 = vperm.xlu0 %4089, %v5104_v3   ;;  %v5125_v15 = vpop.eup %4200 }
0x1bde   :  { %v5127_v49 = vpop.eup %4202 }
0x1bdf   :  { %2351 = vperm.xlu1 %4088, %v5106_v42   ;;  %v5134_v14 = vpop.eup %4204 }
0x1be0   :  { %v5140_v0 = vpop.eup %4206 }
0x1be1   :  { %2360 = vperm.xlu0 %4089, %v5115_v45   ;;  %v5144_v6 = vpop.eup %4208 }
0x1be2   :  { %v5147_v22 = vpop.eup %4210 }
0x1be3   :  { %2354 = vperm.xlu1 %4088, %v5113_v2   ;;  %v5150_v23 = vpop.eup %4212 }
0x1be4   :  { %v5153_v54 = vpop.eup %4214 }
0x1be5   :  { %2363 = vperm.xlu0 %4089, %v5127_v49   ;;  %v5156_v58 = vpop.eup %4216 }
0x1be7   :  { %2321 = vperm.xlu1 %4088, %v5125_v15  }
0x1beb   :  { %2327 = vperm.xlu1 %4088, %v5134_v14  }
0x1bef   :  { %2330 = vperm.xlu1 %4088, %v5140_v0  }
0x1bf3   :  { %2333 = vperm.xlu1 %4088, %v5144_v6  }
0x1bf7   :  { %2336 = vperm.xlu1 %4088, %v5147_v22  }
0x1bfb   :  { %2339 = vperm.xlu1 %4088, %v5150_v23  }
0x1bff   :  { %2342 = vperm.xlu1 %4088, %v5153_v54  }
0x1c03   :  { %2366 = vperm.xlu1 %4088, %v5156_v58  }
0x1c56   :  { %v2346_v27 = vpop.permute.xlu1 %2345 }
0x1c57   :  { %v2403_v44 = vrot.slane %v2346_v27, %v4970_v40 }
0x1c58   :  { %v2358_v53 = vpop.permute.xlu0 %2357 }
0x1c5a   :  { %v2349_v55 = vpop.permute.xlu1 %2348 }
0x1c5b   :  { %v2407_v41 = vrot.slane %v2349_v55, %v4970_v40 }
0x1c5c   :  { %v2325_v18 = vpop.permute.xlu0 %2324 }
0x1c5d   :  { %v2375_v26 = vrot.slane %v2325_v18, %v4970_v40  ;;  %v2439_v7 = vsel %vm2144_vm6, %v2407_v41, %v2403_v44 }
0x1c5e   :  { %v2352_v37 = vpop.permute.xlu1 %2351 }
0x1c5f   :  { %v2411_v39 = vrot.slane %v2352_v37, %v4970_v40 }
0x1c60   :  { %v2361_v4 = vpop.permute.xlu0 %2360 }
0x1c61   :  { %v2440_v55 = vsel %vm2146_vm7, %v2411_v39, %v2439_v7  ;;  %v2423_v39 = vrot.slane %v2361_v4, %v4970_v40 }
0x1c62   :  { %v2355_v38 = vpop.permute.xlu1 %2354 }
0x1c63   :  { %v2415_v31 = vrot.slane %v2355_v38, %v4970_v40 }
0x1c65   :  { %v2441_v27 = vsel %vm2148_vm8, %v2415_v31, %v2440_v55  ;;  %v2364_v31 = vpop.permute.xlu0 %2363 }
0x1c66   :  { %v2322_v62 = vpop.permute.xlu1 %2321 }
0x1c67   :  { %v2371_v63 = vrot.slane %v2322_v62, %v4970_v40 }
0x1c69   :  { %v2432_v38 = vsel %vm2144_vm6, %v2375_v26, %v2371_v63 }
0x1c6a   :  { %v2328_v10 = vpop.permute.xlu1 %2327 }
0x1c6b   :  { %v2379_v12 = vrot.slane %v2328_v10, %v4970_v40  ;;  %v2419_v10 = vrot.slane %v2358_v53, %v4970_v40 }
0x1c6d   :  { %v2433_v18 = vsel %vm2146_vm7, %v2379_v12, %v2432_v38 }
0x1c6e   :  { %v2331_v11 = vpop.permute.xlu1 %2330 }
0x1c6f   :  { %v2383_v28 = vrot.slane %v2331_v11, %v4970_v40  ;;  %v2442_v11 = vsel %vm2150_vm9, %v2419_v10, %v2441_v27 }
0x1c71   :  { %v2434_v44 = vsel %vm2148_vm8, %v2383_v28, %v2433_v18  ;;  %v2427_v28 = vrot.slane %v2364_v31, %v4970_v40 }
0x1c72   :  { %v2334_v50 = vpop.permute.xlu1 %2333 }
0x1c73   :  { %v2387_v37 = vrot.slane %v2334_v50, %v4970_v40 }
0x1c75   :  { %v2435_v7 = vsel %vm2150_vm9, %v2387_v37, %v2434_v44 }
0x1c76   :  { %v2337_v1 = vpop.permute.xlu1 %2336 }
0x1c77   :  { %v2391_v62 = vrot.slane %v2337_v1, %v4970_v40 }
0x1c79   :  { %v2436_v63 = vsel %vm2152_vm10, %v2391_v62, %v2435_v7 }
0x1c7a   :  { %v2340_v16 = vpop.permute.xlu1 %2339 }
0x1c7b   :  { %v2395_v41 = vrot.slane %v2340_v16, %v4970_v40  ;;  %v2443_v16 = vsel %vm2152_vm10, %v2423_v39, %v2442_v11 }
0x1c7c   :  { %v2444_v4 = vsel %vm2154_vm11, %v2427_v28, %v2443_v16 }
0x1c7d   :  { %v2437_v53 = vsel %vm2154_vm11, %v2395_v41, %v2436_v63 }
0x1c7e   :  { %v2343_v50 = vpop.permute.xlu1 %2342 }
0x1c7f   :  { %v2399_v1 = vrot.slane %v2343_v50, %v4970_v40 }
0x1c81   :  { %v2438_v12 = vsel %vm2156_vm12, %v2399_v1, %v2437_v53 }
0x1c82   :  { %v2367_v26 = vpop.permute.xlu1 %2366  ;;  %v2448_v55 = vsel %vm2167_vm13, %v2438_v12, 0.0 }
0x1c83   :  { %v2431_v37 = vrot.slane %v2367_v26, %v4970_v40  ;;  %2449 = vadd.xlane.f32.xlu0 %v2448_v55 }
0x1c85   :  { %v2445_v27 = vsel %vm2156_vm12, %v2431_v37, %v2444_v4 }
0x1c86   :  { %v2451_v38 = vsel %vm2167_vm13, %v2445_v27, 0.0 }
0x1c87   :  { %2452 = vadd.xlane.f32.xlu1 %v2451_v38 }
0x1d10   :  { %v2450_v62 = vpop.xlane.xlu0 %2449 }
0x1d11   :  { %v2463_v11 = vrot.slane %v2450_v62, %v5039_v19  ;;  %v2471_v7 = vrot.slane %v2450_v62, %v5065_v36  ;;  %v2475_v39 = vrot.slane %v2450_v62, %v5046_v48  ;;  %v2459_v63 = vrot.slane %v2450_v62, %v4813_v60 }
0x1d12   :  { %v2479_v53 = vrot.slane %v2450_v62, %v5068_v21  ;;  %v2467_v28 = vrot.slane %v2450_v62, %v5055_v29  ;;  %v2487_v4 = vrot.slane %v2450_v62, %v5118_v8 }
0x1d14   :  { %v2453_v10 = vpop.xlane.xlu1 %2452 }
0x1d15   :  { %v2495_v18 = vrot.slane %v2453_v10, %v5039_v19  ;;  %v2491_v41 = vrot.slane %v2453_v10, %v4813_v60  ;;  %v2499_v44 = vrot.slane %v2453_v10, %v5055_v29  ;;  %v2503_v40 = vrot.slane %v2453_v10, %v5065_v36 }
0x1d16   :  { %v2507_v50 = vrot.slane %v2453_v10, %v5046_v48  ;;  %v2483_v60 = vrot.slane %v2450_v62, %v5077_v59 }
0x1d17   :  { %4218 = vrcp.f32 %v2495_v18  ;;  %v2519_v18 = vrot.slane %v2453_v10, %v5118_v8 }
0x1d18   :  { %4220 = vrcp.f32 %v2491_v41 }
0x1d19   :  { %4222 = vrcp.f32 %v2499_v44 }
0x1d1a   :  { %4224 = vrcp.f32 %v2463_v11 }
0x1d1b   :  { %4226 = vrcp.f32 %v2503_v40 }
0x1d1c   :  { %4228 = vrcp.f32 %v2471_v7 }
0x1d1d   :  { %4230 = vrcp.f32 %v2507_v50 }
0x1d1e   :  { %4232 = vrcp.f32 %v2475_v39  ;;  %v2820_v39 = vld [vmem:[%s5500_s8 + $0x18] sm:$0xff] }
0x1d1f   :  { %4234 = vrcp.f32 %v2459_v63 }
0x1d20   :  { %4236 = vrcp.f32 %v2479_v53  ;;  %v2821_v53 = vld [vmem:[%s5500_s8 + $0x20] sm:$0xff] }
0x1d21   :  { %v4219_v31 = vpop.eup %4218  ;;  %4238 = vrcp.f32 %v2467_v28  ;;  %v2954_v28 = vld [vmem:[%s5500_s8 + $0x68] sm:$0xff] }
0x1d22   :  { %v4221_v1 = vpop.eup %4220  ;;  %v2555_v19 = vmul.f32 %v4219_v31, %v5095_v33  ;;  %4240 = vrcp.f32 %v2483_v60 }
0x1d23   :  { %v4223_v12 = vpop.eup %4222  ;;  %v2553_v16 = vmul.f32 %v4221_v1, %v5089_v61  ;;  %v2511_v61 = vrot.slane %v2453_v10, %v5068_v21  ;;  %v2951_v1 = vld [vmem:[%s5500_s8 + $0x50] sm:$0xff] }
0x1d24   :  { %v4225_v36 = vpop.eup %4224  ;;  %2615 = vperm.xlu0 %4089, %v2555_v19   ;;  %v2557_v48 = vmul.f32 %v4223_v12, %v5106_v42  ;;  %v2952_v19 = vld [vmem:[%s5500_s8 + $0x58] sm:$0xff] }
0x1d25   :  { %2610 = vperm.xlu1 %4088, %v2553_v16   ;;  %v4227_v26 = vpop.eup %4226  ;;  %v2539_v33 = vmul.f32 %v4225_v36, %v5104_v3  ;;  %4242 = vrcp.f32 %v2511_v61  ;;  %v2515_v3 = vrot.slane %v2453_v10, %v5077_v59  ;;  %v4011_v12 = vpack.c.bf16 %v2952_v19, %v2951_v1  ;;  %v2822_v16 = vld [vmem:[%s5500_s8 + $0x28] sm:$0xff]  ;;  %v2953_v36 = vld [vmem:[%s5500_s8 + $0x60] sm:$0xff] }
0x1d26   :  { %v4229_v55 = vpop.eup %4228  ;;  %v2559_v37 = vmul.f32 %v4227_v26, %v5113_v2  ;;  %4244 = vrcp.f32 %v2487_v4  ;;  %v4015_v60 = vpack.c.bf16 %v2954_v28, %v2953_v36 }
0x1d27   :  { %v4231_v29 = vpop.eup %4230  ;;  %v2543_v42 = vmul.f32 %v4229_v55, %v5140_v0  ;;  %4246 = vrcp.f32 %v2515_v3 }
0x1d28   :  { %2620 = vperm.xlu0 %4089, %v2557_v48   ;;  %v4233_v27 = vpop.eup %4232  ;;  %v2561_v38 = vmul.f32 %v4231_v29, %v5097_v46  ;;  %4248 = vrcp.f32 %v2519_v18  ;;  %v3999_v48 = vpack.c.bf16 %v2822_v16, %v2821_v53 }
0x1d29   :  { %2575 = vperm.xlu1 %4088, %v2539_v33   ;;  %v4235_v21 = vpop.eup %4234  ;;  %v2545_v2 = vmul.f32 %v4233_v27, %v5144_v6 }
0x1d2a   :  { %v4237_v41 = vpop.eup %4236  ;;  %v2537_v0 = vmul.f32 %v4235_v21, %v5125_v15 }
0x1d2b   :  { %v4239_v62 = vpop.eup %4238  ;;  %v2547_v44 = vmul.f32 %v4237_v41, %v5147_v22 }
0x1d2c   :  { %2625 = vperm.xlu0 %4089, %v2559_v37   ;;  %v4241_v11 = vpop.eup %4240  ;;  %v2541_v59 = vmul.f32 %v4239_v62, %v5134_v14  ;;  %v2817_v14 = vld [vmem:[%s5500_s8] sm:$0xff] }
0x1d2d   :  { %2585 = vperm.xlu1 %4088, %v2543_v42   ;;  %v2549_v8 = vmul.f32 %v4241_v11, %v5150_v23  ;;  %v2949_v23 = vld [vmem:[%s5500_s8 + $0x40] sm:$0xff] }
0x1d2f   :  { %v4243_v46 = vpop.eup %4242 }
0x1d30   :  { %2630 = vperm.xlu0 %4089, %v2561_v38   ;;  %v4245_v10 = vpop.eup %4244  ;;  %v2563_v6 = vmul.f32 %v4243_v46, %v5115_v45  ;;  %v2818_v45 = vld [vmem:[%s5500_s8 + $0x8] sm:$0xff] }
0x1d31   :  { %2590 = vperm.xlu1 %4088, %v2545_v2   ;;  %v4247_v40 = vpop.eup %4246  ;;  %v2551_v15 = vmul.f32 %v4245_v10, %v5153_v54  ;;  %v3991_v54 = vpack.c.bf16 %v2818_v45, %v2817_v14 }
0x1d32   :  { %v4249_v7 = vpop.eup %4248  ;;  %v2565_v22 = vmul.f32 %v4247_v40, %v5127_v49  ;;  %v2950_v49 = vld [vmem:[%s5500_s8 + $0x48] sm:$0xff] }
0x1d33   :  { %v2567_v50 = vmul.f32 %v4249_v7, %v5156_v58  ;;  %v2819_v58 = vld [vmem:[%s5500_s8 + $0x10] sm:$0xff]  ;;  %v4007_v31 = vpack.c.bf16 %v2950_v49, %v2949_v23  ;;  %3992 = vmatprep.subr.bf16.mxu1 %v3991_v54 }
0x1d34   :  { %2570 = vperm.xlu0 %4089, %v2537_v0   ;;  %v3995_v63 = vpack.c.bf16 %v2820_v39, %v2819_v58  ;;  %3994 = vmatpush3.bf16.msra.mxu1 %v3991_v54 }
0x1d35   :  { %2595 = vperm.xlu1 %4088, %v2547_v44   ;;  %4008 = vmatprep.subr.bf16.mxu0 %v4007_v31 }
0x1d36   :  { %4010 = vmatpush3.bf16.msra.mxu0 %v4007_v31  ;;  %3996 = vmatprep.subr.bf16.mxu1 %v3995_v63 }
0x1d37   :  { %4012 = vmatprep.subr.bf16.mxu0 %v4011_v12 }
0x1d38   :  { %2580 = vperm.xlu0 %4089, %v2541_v59   ;;  %3998 = vmatpush3.bf16.msra.mxu1 %v3995_v63 }
0x1d39   :  { %2600 = vperm.xlu1 %4088, %v2549_v8   ;;  %4000 = vmatprep.subr.bf16.mxu1 %v3999_v48 }
0x1d3a   :  { %4014 = vmatpush3.bf16.msra.mxu0 %v4011_v12 }
0x1d3b   :  { %4016 = vmatprep.subr.bf16.mxu0 %v4015_v60 }
0x1d3c   :  { %2635 = vperm.xlu0 %4089, %v2563_v6   ;;  %4002 = vmatpush3.bf16.msra.mxu1 %v3999_v48 }
0x1d3d   :  { %2605 = vperm.xlu1 %4088, %v2551_v15  }
0x1d3e   :  { %4018 = vmatpush3.bf16.msra.mxu0 %v4015_v60 }
0x1d40   :  { %2640 = vperm.xlu0 %4089, %v2565_v22  }
0x1d41   :  { %2645 = vperm.xlu1 %4088, %v2567_v50  }
0x1da3   :  { %v2616_v26 = vpop.permute.xlu0 %2615 }
0x1da4   :  { %v2657_v33 = vmul.f32 %v2616_v26, %v4835_v17  ;;  %v2611_v55 = vpop.permute.xlu1 %2610 }
0x1da5   :  { %v2656_v61 = vmul.f32 %v2611_v55, %v4823_v9 }
0x1da6   :  { %v2727_v37 = vsel %vm2013_vm5, %v2657_v33, 0.0 }
0x1da7   :  { %v2728_v4 = vrot.slane %v2727_v37, 4  ;;  %v2720_v29 = vsel %vm2013_vm5, %v2656_v61, 0.0  ;;  %v2621_v42 = vpop.permute.xlu0 %2620 }
0x1da8   :  { %v2721_v27 = vrot.slane %v2720_v29, 4  ;;  %v2658_v3 = vmul.f32 %v2621_v42, %v4846_v43  ;;  %v2576_v38 = vpop.permute.xlu1 %2575 }
0x1da9   :  { %v2729_v18 = vadd.f32 %v2728_v4, %v2727_v37  ;;  %v2649_v21 = vmul.f32 %v2576_v38, %v4880_v51 }
0x1daa   :  { %v2722_v2 = vadd.f32 %v2721_v27, %v2720_v29  ;;  %v2734_v41 = vsel %vm2013_vm5, %v2658_v3, 0.0 }
0x1dab   :  { %v2730_v17 = vrot.slane %v2729_v18, 2  ;;  %v2735_v0 = vrot.slane %v2734_v41, 4  ;;  %v2671_v9 = vsel %vm2013_vm5, %v2649_v21, 0.0  ;;  %v2626_v62 = vpop.permute.xlu0 %2625 }
0x1dac   :  { %v2723_v44 = vrot.slane %v2722_v2, 2  ;;  %v2672_v11 = vrot.slane %v2671_v9, 4  ;;  %v2659_v59 = vmul.f32 %v2626_v62, %v4898_v57  ;;  %v2586_v46 = vpop.permute.xlu1 %2585 }
0x1dad   :  { %v2731_v8 = vadd.f32 %v2730_v17, %v2729_v18  ;;  %v2736_v10 = vadd.f32 %v2735_v0, %v2734_v41  ;;  %v2651_v43 = vmul.f32 %v2586_v46, %v4889_v52 }
0x1dae   :  { %v2724_v6 = vadd.f32 %v2723_v44, %v2722_v2  ;;  %v2673_v40 = vadd.f32 %v2672_v11, %v2671_v9  ;;  %v2741_v51 = vsel %vm2013_vm5, %v2659_v59, 0.0 }
0x1daf   :  { %v2737_v15 = vrot.slane %v2736_v10, 2  ;;  %v2742_v7 = vrot.slane %v2741_v51, 4  ;;  %v2685_v22 = vsel %vm2013_vm5, %v2651_v43, 0.0  ;;  %v2631_v50 = vpop.permute.xlu0 %2630  ;;  %v2732_v14 = vrot.slane %v2731_v8, 1 }
0x1db0   :  { %v2674_v45 = vrot.slane %v2673_v40, 2  ;;  %v2686_v23 = vrot.slane %v2685_v22, 4  ;;  %v2660_v54 = vmul.f32 %v2631_v50, %v4864_v32  ;;  %v2591_v57 = vpop.permute.xlu1 %2590  ;;  %v2725_v49 = vrot.slane %v2724_v6, 1 }
0x1db1   :  { %v2743_v58 = vadd.f32 %v2742_v7, %v2741_v51  ;;  %v2652_v39 = vmul.f32 %v2591_v57, %v4872_v47  ;;  %v2738_v52 = vadd.f32 %v2737_v15, %v2736_v10  ;;  %v2733_v36 = vadd.f32 %v2732_v14, %v2731_v8 }
0x1db2   :  { %v2687_v31 = vadd.f32 %v2686_v23, %v2685_v22  ;;  %v2748_v63 = vsel %vm2013_vm5, %v2660_v54, 0.0  ;;  %v2675_v1 = vadd.f32 %v2674_v45, %v2673_v40  ;;  %v2726_v32 = vadd.f32 %v2725_v49, %v2724_v6 }
0x1db3   :  { %v2744_v19 = vrot.slane %v2743_v58, 2  ;;  %v2749_v53 = vrot.slane %v2748_v63, 4  ;;  %v2692_v12 = vsel %vm2013_vm5, %v2652_v39, 0.0  ;;  %v2571_v16 = vpop.permute.xlu0 %2570  ;;  %v2739_v47 = vrot.slane %v2738_v52, 1 }
0x1db4   :  { %v2688_v28 = vrot.slane %v2687_v31, 2  ;;  %v2693_v48 = vrot.slane %v2692_v12, 4  ;;  %v2596_v60 = vpop.permute.xlu1 %2595  ;;  %v2648_v55 = vmul.f32 %v2571_v16, %v4830_v13  ;;  %v2676_v29 = vrot.slane %v2675_v1, 1 }
0x1db5   :  { %v2745_v26 = vadd.f32 %v2744_v19, %v2743_v58  ;;  %v2750_v33 = vadd.f32 %v2749_v53, %v2748_v63  ;;  %v2653_v4 = vmul.f32 %v2596_v60, %v4906_v35  ;;  %v5280_v17 = vsel %vm2144_vm6, %v2733_v36, %v2726_v32  ;;  %v2823_v32 = vld [vmem:[%s5500_s8 + $0x30] sm:$0xff] }
0x1db6   :  { %v2689_v61 = vadd.f32 %v2688_v28, %v2687_v31  ;;  %v2694_v37 = vadd.f32 %v2693_v48, %v2692_v12  ;;  %v2664_v27 = vsel %vm2013_vm5, %v2648_v55, 0.0  ;;  %v5283_v62 = vadd.f32 %v2739_v47, %v2738_v52 }
0x1db7   :  { %v2751_v42 = vrot.slane %v2750_v33, 2  ;;  %v2581_v3 = vpop.permute.xlu0 %2580  ;;  %v2746_v38 = vrot.slane %v2745_v26, 1  ;;  %v2665_v21 = vrot.slane %v2664_v27, 4  ;;  %v2699_v2 = vsel %vm2013_vm5, %v2653_v4, 0.0 }
0x1db8   :  { %v2695_v18 = vrot.slane %v2694_v37, 2  ;;  %v2601_v41 = vpop.permute.xlu1 %2600  ;;  %v2700_v0 = vrot.slane %v2699_v2, 4  ;;  %v2650_v9 = vmul.f32 %v2581_v3, %v4856_v30  ;;  %v2690_v35 = vrot.slane %v2689_v61, 1 }
0x1db9   :  { %v2752_v13 = vadd.f32 %v2751_v42, %v2750_v33  ;;  %v2666_v44 = vadd.f32 %v2665_v21, %v2664_v27  ;;  %v2654_v11 = vmul.f32 %v2601_v41, %v4922_v20  ;;  %v2677_v59 = vadd.f32 %v2676_v29, %v2675_v1  ;;  %v2956_v42 = vld [vmem:[%s5500_s8 + $0x78] sm:$0xff] }
0x1dba   :  { %v2696_v46 = vadd.f32 %v2695_v18, %v2694_v37  ;;  %v2701_v8 = vadd.f32 %v2700_v0, %v2699_v2  ;;  %v2678_v10 = vsel %vm2013_vm5, %v2650_v9, 0.0  ;;  %v5287_v6 = vadd.f32 %v2746_v38, %v2745_v26  ;;  %v2824_v26 = vld [vmem:[%s5500_s8 + $0x38] sm:$0xff]  ;;  %v3117_v0 = vld [vmem:[%s5501_s9] sm:$0xff]  ;;  %v3118_v9 = vld [vmem:[%s5501_s9 + $0x8] sm:$0xff] }
0x1dbb   :  { %v2636_v43 = vpop.permute.xlu0 %2635  ;;  %v2667_v40 = vrot.slane %v2666_v44, 2  ;;  %v2679_v51 = vrot.slane %v2678_v10, 4  ;;  %v2706_v15 = vsel %vm2013_vm5, %v2654_v11, 0.0  ;;  %v2753_v30 = vrot.slane %v2752_v13, 1 }
0x1dbc   :  { %v2606_v7 = vpop.permute.xlu1 %2605  ;;  %v2702_v22 = vrot.slane %v2701_v8, 2  ;;  %v2707_v50 = vrot.slane %v2706_v15, 4  ;;  %v2661_v14 = vmul.f32 %v2636_v43, %v4914_v5  ;;  %v2691_v45 = vadd.f32 %v2690_v35, %v2689_v61  ;;  %v3233_v35 = vld [vmem:[%s5501_s9 + $0x40] sm:$0xff] }
0x1dbd   :  { %v2668_v20 = vadd.f32 %v2667_v40, %v2666_v44  ;;  %v2680_v23 = vadd.f32 %v2679_v51, %v2678_v10  ;;  %v2655_v54 = vmul.f32 %v2606_v7, %v4938_v56  ;;  %v2697_v57 = vrot.slane %v2696_v46, 1  ;;  %v3234_v10 = vld [vmem:[%s5501_s9 + $0x48] sm:$0xff] }
0x1dbe   :  { %v2703_v49 = vadd.f32 %v2702_v22, %v2701_v8  ;;  %v2708_v58 = vadd.f32 %v2707_v50, %v2706_v15  ;;  %v2755_v39 = vsel %vm2013_vm5, %v2661_v14, 0.0  ;;  %v5294_v12 = vadd.f32 %v2753_v30, %v2752_v13 }
0x1dbf   :  { %v2641_v52 = vpop.permute.xlu0 %2640  ;;  %v2669_v31 = vrot.slane %v2668_v20, 1  ;;  %v2681_v63 = vrot.slane %v2680_v23, 2  ;;  %v2756_v1 = vrot.slane %v2755_v39, 4  ;;  %v2713_v19 = vsel %vm2013_vm5, %v2655_v54, 0.0 }
0x1dc0   :  { %v2646_v53 = vpop.permute.xlu1 %2645  ;;  %v2709_v5 = vrot.slane %v2708_v58, 2  ;;  %v2714_v16 = vrot.slane %v2713_v19, 4  ;;  %v2662_v36 = vmul.f32 %v2641_v52, %v4930_v25  ;;  %v2704_v28 = vrot.slane %v2703_v49, 1 }
0x1dc1   :  { %v2682_v56 = vadd.f32 %v2681_v63, %v2680_v23  ;;  %v2757_v48 = vadd.f32 %v2756_v1, %v2755_v39  ;;  %v2663_v60 = vmul.f32 %v2646_v53, %v4948_v34  ;;  %v2670_v33 = vadd.f32 %v2669_v31, %v2668_v20  ;;  %v2955_v34 = vld [vmem:[%s5500_s8 + $0x70] sm:$0xff]  ;;  %s3630_s8 = sshll.u32 %s4293_s3, 4  ;;  %s3631_s8 = int_to_ptr.vmem [resolvable:$true] %s3630_s8 }
0x1dc2   :  { %v2710_v55 = vadd.f32 %v2709_v5, %v2708_v58  ;;  %v2715_v47 = vadd.f32 %v2714_v16, %v2713_v19  ;;  %v2762_v61 = vsel %vm2013_vm5, %v2662_v36, 0.0  ;;  %v2698_v37 = vadd.f32 %v2697_v57, %v2696_v46  ;;  %p4261_p1 = scmp.lt.s32.totalorder %s3631_s8, %s3631_s8 }
0x1dc3   :  { %v2683_v25 = vrot.slane %v2682_v56, 1  ;;  %v2758_v4 = vrot.slane %v2757_v48, 2  ;;  %v2763_v29 = vrot.slane %v2762_v61, 4  ;;  %v2769_v38 = vsel %vm2013_vm5, %v2663_v60, 0.0  ;;  %v3121_v60 = vld [vmem:[%s5501_s9 + $0x20] sm:$0xff] }
0x1dc4   :  { %v2711_v27 = vrot.slane %v2710_v55, 1  ;;  %v2716_v3 = vrot.slane %v2715_v47, 2  ;;  %v4003_v18 = vpack.c.bf16 %v2824_v26, %v2823_v32  ;;  %v2770_v13 = vrot.slane %v2769_v38, 4  ;;  %v5514_v32 = vld [vmem:[#allocation8_spill] sm:$0xff] }
0x1dc5   :  { %v2684_v21 = vadd.f32 %v2683_v25, %v2682_v56  ;;  %v2759_v2 = vadd.f32 %v2758_v4, %v2757_v48  ;;  %v2764_v41 = vadd.f32 %v2763_v29, %v2762_v61  ;;  %v2794_v44 = vsel %vm2144_vm6, %v2677_v59, %v2670_v33  ;;  %v3235_v56 = vld [vmem:[%s5501_s9 + $0x50] sm:$0xff]  ;;  %v3237_v61 = vld [vmem:[%s5501_s9 + $0x60] sm:$0xff] }
0x1dc6   :  { %v2705_v11 = vadd.f32 %v2704_v28, %v2703_v49  ;;  %v2717_v46 = vadd.f32 %v2716_v3, %v2715_v47  ;;  %4004 = vmatprep.subr.bf16.mxu1 %v4003_v18  ;;  %v4019_v8 = vpack.c.bf16 %v2956_v42, %v2955_v34  ;;  %v2771_v15 = vadd.f32 %v2770_v13, %v2769_v38  ;;  %v3120_v28 = vld [vmem:[%s5501_s9 + $0x18] sm:$0xff]  ;;  %v3122_v47 = vld [vmem:[%s5501_s9 + $0x28] sm:$0xff]  ;;  %v3123_v29 = vld [vmem:[%s5501_s9 + $0x30] sm:$0xff] }
0x1dc7   :  { %v2795_v43 = vsel %vm2146_vm7, %v2684_v21, %v2794_v44  ;;  %v2760_v40 = vrot.slane %v2759_v2, 1  ;;  %v2765_v51 = vrot.slane %v2764_v41, 2  ;;  %4006 = vmatpush3.bf16.msra.mxu1 %v4003_v18  ;;  %v4023_v22 = vpack.c.bf16 %v3118_v9, %v3117_v0  ;;  %v3124_v34 = vld [vmem:[%s5501_s9 + $0x38] sm:$0xff]  ;;  %v3239_v42 = vld [vmem:[%s5501_s9 + $0x70] sm:$0xff]  ;;  %v3363_v18 = vld [vmem:[%s5501_s9 + $0x80] sm:$0xff] }
0x1dc8   :  { %v2718_v7 = vrot.slane %v2717_v46, 1  ;;  %v2796_v30 = vsel %vm2148_vm8, %v2691_v45, %v2795_v43  ;;  %4020 = vmatprep.subr.bf16.mxu0 %v4019_v8  ;;  %v4039_v59 = vpack.c.bf16 %v3234_v10, %v3233_v35  ;;  %v2712_v50 = vadd.f32 %v2711_v27, %v2710_v55  ;;  %v3240_v27 = vld [vmem:[%s5501_s9 + $0x78] sm:$0xff]  ;;  %v3364_v21 = vld [vmem:[%s5501_s9 + $0x88] sm:$0xff]  ;;  %v3367_v35 = vld [vmem:[%s5501_s9 + $0xa0] sm:$0xff] }
0x1dc9   :  { %v2766_v14 = vadd.f32 %v2765_v51, %v2764_v41  ;;  %v2772_v20 = vrot.slane %v2771_v15, 2  ;;  %v2797_v23 = vsel %vm2150_vm9, %v2698_v37, %v2796_v30  ;;  %4022 = vmatpush3.bf16.msra.mxu0 %v4019_v8  ;;  %v2761_v54 = vadd.f32 %v2760_v40, %v2759_v2  ;;  %4024 = vmatprep.subr.bf16.mxu1 %v4023_v22  ;;  %v3238_v37 = vld [vmem:[%s5501_s9 + $0x68] sm:$0xff]  ;;  %v3365_v41 = vld [vmem:[%s5501_s9 + $0x90] sm:$0xff]  ;;  %v3366_v13 = vld [vmem:[%s5501_s9 + $0x98] sm:$0xff] }
0x1dca   :  { %v2719_v57 = vadd.f32 %v2718_v7, %v2717_v46  ;;  %v2798_v49 = vsel %vm2152_vm10, %v2705_v11, %v2797_v23  ;;  %4040 = vmatprep.subr.bf16.mxu0 %v4039_v59  ;;  %v2802_v58 = vsel %vm2146_vm7, %v5283_v62, %v5280_v17  ;;  %v4031_v25 = vpack.c.bf16 %v3122_v47, %v3121_v60  ;;  %v3368_v44 = vld [vmem:[%s5501_s9 + $0xa8] sm:$0xff]  ;;  %v3369_v8 = vld [vmem:[%s5501_s9 + $0xb0] sm:$0xff]  ;;  %v3370_v10 = vld [vmem:[%s5501_s9 + $0xb8] sm:$0xff] }
0x1dcb   :  { %v2767_v45 = vrot.slane %v2766_v14, 1  ;;  %v2773_v39 = vadd.f32 %v2772_v20, %v2771_v15  ;;  %v2799_v52 = vsel %vm2154_vm11, %v2712_v50, %v2798_v49  ;;  %v2803_v31 = vsel %vm2148_vm8, %v5287_v6, %v2802_v58  ;;  %v5517_v7 = vld [vmem:[#allocation7_spill] sm:$0xff] }
0x1dcc   :  { %v2800_v63 = vsel %vm2156_vm12, %v2719_v57, %v2799_v52  ;;  %v2804_v53 = vsel %vm2150_vm9, %v5294_v12, %v2803_v31  ;;  %v3119_v12 = vld [vmem:[%s5501_s9 + $0x10] sm:$0xff]  ;;  %v4047_v4 = vpack.c.bf16 %v3238_v37, %v3237_v61  ;;  %v4035_v3 = vpack.c.bf16 %v3124_v34, %v3123_v29 }
0x1dcd   :  { %v2768_v1 = vadd.f32 %v2767_v45, %v2766_v14  ;;  %v2774_v19 = vrot.slane %v2773_v39, 1  ;;  %2808 = vrot.lane.b32.xlu0 %v2800_v63, %s4285_s4  ;;  %v2805_v5 = vsel %vm2152_vm10, %v2761_v54, %v2804_v53  ;;  %v4027_v33 = vpack.c.bf16 %v3120_v28, %v3119_v12 }
0x1dce   :  { %v4051_v38 = vpack.c.bf16 %v3240_v27, %v3239_v42  ;;  %v4055_v2 = vpack.c.bf16 %v3364_v21, %v3363_v18  ;;  %v4059_v0 = vpack.c.bf16 %v3366_v13, %v3365_v41  ;;  %v5515_v9 = vmov 0.0|0.0  }
0x1dcf   :  { %v2775_v16 = vadd.f32 %v2774_v19, %v2773_v39  ;;  %v2806_v17 = vsel %vm2154_vm11, %v2768_v1, %v2805_v5  ;;  %v4063_v11 = vpack.c.bf16 %v3368_v44, %v3367_v35  ;;  %v5516_v46 = vmov 0.0   ;;  %v3672_v39 = vld [vmem:[%s5502_s10] ss:$0 sm:$0xff] }
0x1dd0   :  { %v4067_v43 = vpack.c.bf16 %v3370_v10, %v3369_v8 }
0x1dd1   :  { %v2807_v62 = vsel %vm2156_vm12, %v2775_v16, %v2806_v17 }
0x1dd2   :  { %2810 = vrot.lane.b32.xlu1 %v2807_v62, %s4285_s4 }
0x1e3f   :  { %v2809_v6 = vpop.permute.xlu0 %2808 }
0x1e40   :  { %v2814_v36 = vsel %vm109_vm1, %v4795_v24, %v2809_v6  ;;  %v3236_v24 = vld [vmem:[%s5501_s9 + $0x58] sm:$0xff] }
0x1e41   :  { %3865 = vmatprep.mubr.msk.f32.mxu1 %vm2825_vm14, %v2814_v36  ;;  %3884 = vmatprep.mubr.msk.f32.mxu0 %vm2825_vm14, %v2814_v36  ;;  %v4043_v55 = vpack.c.bf16 %v3236_v24, %v3235_v56 }
0x1e44   :  { %v2811_v48 = vpop.permute.xlu1 %2810 }
0x1e45   :  { %v2815_v26 = vsel %vm109_vm1, %v5514_v32, %v2811_v48  ;;  %vm3611_vm1 = vcmask 17408  }
0x1e46   :  { %3866 = vmatmul.mubr.msk.f32.vlgmr.msra.gmra.mrb[10].mxu1 %vm2825_vm14, %v2815_v26  ;;  %3885 = vmatmul.mubr.msk.f32.vlgmr.msra.gmra.mrb[10].mxu0 %vm2825_vm14, %v2815_v26 }
0x1e47   :  { %4026 = vmatpush3.bf16.msra.mxu1 %v4023_v22  ;;  %4042 = vmatpush3.bf16.msra.mxu0 %v4039_v59 }
0x1e48   :  { %3903 = vmatprep.mubr.msk.f32.mxu1 %vm2825_vm14, %v2814_v36  ;;  %3922 = vmatprep.mubr.msk.f32.mxu0 %vm2825_vm14, %v2814_v36 }
0x1e49   :  { %4028 = vmatprep.subr.bf16.mxu1 %v4027_v33  ;;  %4044 = vmatprep.subr.bf16.mxu0 %v4043_v55 }
0x1e4b   :  { %4030 = vmatpush3.bf16.msra.mxu1 %v4027_v33  ;;  %4046 = vmatpush3.bf16.msra.mxu0 %v4043_v55 }
0x1e4c   :  { %4032 = vmatprep.subr.bf16.mxu1 %v4031_v25  ;;  %4048 = vmatprep.subr.bf16.mxu0 %v4047_v4 }
0x1e4f   :  { %4034 = vmatpush3.bf16.msra.mxu1 %v4031_v25  ;;  %4050 = vmatpush3.bf16.msra.mxu0 %v4047_v4 }
0x1e50   :  { %4036 = vmatprep.subr.bf16.mxu1 %v4035_v3  ;;  %4052 = vmatprep.subr.bf16.mxu0 %v4051_v38 }
0x1e53   :  { %4038 = vmatpush3.bf16.msra.mxu1 %v4035_v3  ;;  %4054 = vmatpush3.bf16.msra.mxu0 %v4051_v38 }
0x1e54   :  { %4056 = vmatprep.subr.bf16.mxu1 %v4055_v2  ;;  %4071 = vmatprep.subr.bf16.mxu0 %v5515_v9 }
0x1e56   :  { %3904 = vmatmul.mubr.msk.f32.vlgmr.msra.gmra.mrb[12].mxu1 %vm2825_vm14, %v2815_v26  ;;  %3923 = vmatmul.mubr.msk.f32.vlgmr.msra.gmra.mrb[12].mxu0 %vm2825_vm14, %v2815_v26 }
0x1e57   :  { %4058 = vmatpush3.bf16.msra.mxu1 %v4055_v2  ;;  %3941 = vmatprep.mubr.msk.f32.mxu1 %vm2825_vm14, %v2814_v36 }
0x1e58   :  { %4060 = vmatprep.subr.bf16.mxu1 %v4059_v0  ;;  %3948 = vmatprep.mubr.msk.f32.mxu0 %vm4281_vm0, %v5516_v46  ;;  %vm3526_vm0 = vcmask 64512  }
0x1e5b   :  { %4062 = vmatpush3.bf16.msra.mxu1 %v4059_v0 }
0x1e5c   :  { %4064 = vmatprep.subr.bf16.mxu1 %v4063_v11 }
0x1e5f   :  { %4066 = vmatpush3.bf16.msra.mxu1 %v4063_v11 }
0x1e60   :  { %4068 = vmatprep.subr.bf16.mxu1 %v4067_v43 }
0x1e63   :  { %4070 = vmatpush3.bf16.msra.mxu1 %v4067_v43 }
0x1e66   :  { %3942 = vmatmul.mubr.msk.f32.vlgmr.msra.gmra.mrb[14].mxu1 %vm2825_vm14, %v2815_v26 }
0x1f19   :  { %v3867_v40 = vpop.f32.mrb[10].mxu1  ;;  %v3886_v51 = vpop.f32.mrb[10].mxu0 }
0x1f1a   :  { %v2926_v15 = vcombine.high %v3867_v40, %v3867_v40  ;;  %v2933_v30 = vrot.slane %v3867_v40, %v5517_v7  ;;  %v3051_v22 = vcombine.high %v3886_v51, %v3886_v51  ;;  %v3058_v59 = vrot.slane %v3886_v51, %v5517_v7  ;;  %v2898_v50 = vpop.f32.mrb[11].mxu1  ;;  %v3023_v14 = vpop.f32.mrb[11].mxu0 }
0x1f1b   :  { %v2909_v20 = vcombine.high %v2898_v50, %v2898_v50  ;;  %v2916_v23 = vrot.slane %v2898_v50, %v5517_v7  ;;  %v3034_v54 = vcombine.high %v3023_v14, %v3023_v14  ;;  %v3041_v57 = vrot.slane %v3023_v14, %v5517_v7 }
0x1f1c   :  { %v2941_v49 = vcombine.high %v2933_v30, %v2933_v30  ;;  %v3065_v58 = vrot.slane %v3051_v22, %v5517_v7  ;;  %v3066_v45 = vcombine.high %v3058_v59, %v3058_v59  ;;  %v2940_v19 = vrot.slane %v2926_v15, %v5517_v7 }
0x1f1d   :  { %v2923_v52 = vrot.slane %v2909_v20, %v5517_v7  ;;  %v2924_v31 = vcombine.high %v2916_v23, %v2916_v23  ;;  %v3048_v63 = vrot.slane %v3034_v54, %v5517_v7  ;;  %v3049_v1 = vcombine.high %v3041_v57, %v3041_v57 }
0x1f1e   :  { %v3067_v53 = vcombine.high %v3065_v58, %v3065_v58  ;;  %v3079_v5 = vadd.f32 %v3066_v45, %v2933_v30  ;;  %v3080_v16 = vadd.f32 %v3065_v58, %v2941_v49 }
0x1f1f   :  { %v2925_v17 = vcombine.high %v2923_v52, %v2923_v52  ;;  %v3050_v62 = vcombine.high %v3048_v63, %v3048_v63  ;;  %v3075_v6 = vadd.f32 %v3049_v1, %v2916_v23  ;;  %v3076_v36 = vadd.f32 %v3048_v63, %v2924_v31 }
0x1f20   :  { %v3081_v12 = vadd.f32 %v3067_v53, %v2940_v19  ;;  %v3092_v28 = vadd.f32 %v3672_v39, %v3079_v5  ;;  %v3093_v56 = vadd.f32 %v3672_v39, %v3080_v16 }
0x1f21   :  { %v3078_v24 = vadd.f32 %v3058_v59, %v2925_v17  ;;  %v3077_v48 = vadd.f32 %v3050_v62, %v2923_v52  ;;  %v3088_v60 = vadd.f32 %v3672_v39, %v3075_v6  ;;  %v3089_v32 = vadd.f32 %v3672_v39, %v3076_v36  ;;  %v3679_v62 = vld [vmem:[%s5503_s11] ss:$0 sm:$0xff] }
0x1f22   :  { %v3094_v26 = vadd.f32 %v3672_v39, %v3081_v12  ;;  %v3099_v33 = vmax.f32 %v3092_v28, 0.0  ;;  %v3100_v55 = vmax.f32 %v3093_v56, 0.0 }
0x1f23   :  { %v3091_v47 = vadd.f32 %v3672_v39, %v3078_v24  ;;  %v3090_v61 = vadd.f32 %v3672_v39, %v3077_v48  ;;  %v3095_v37 = vmax.f32 %v3088_v60, 0.0  ;;  %v3096_v25 = vmax.f32 %v3089_v32, 0.0 }
0x1f24   :  { %v3101_v4 = vmax.f32 %v3094_v26, 0.0  ;;  %v3107_v29 = vsel %vm3102_vm15, %v3099_v33, -inf  ;;  %v3109_v34 = vsel %vm3102_vm15, %v3100_v55, -inf }
0x1f25   :  { %v3098_v42 = vmax.f32 %v3091_v47, 0.0  ;;  %v3097_v27 = vmax.f32 %v3090_v61, 0.0  ;;  %v3103_v3 = vsel %vm3102_vm15, %v3095_v37, -inf  ;;  %v3104_v38 = vsel %vm3102_vm15, %v3096_v25, -inf }
0x1f26   :  { %v3108_v18 = vmax.f32 %v3103_v3, %v3107_v29  ;;  %v3111_v21 = vsel %vm3102_vm15, %v3101_v4, -inf  ;;  %v3110_v2 = vmax.f32 %v3104_v38, %v3109_v34 }
0x1f27   :  { %v3105_v41 = vsel %vm3102_vm15, %v3097_v27, -inf  ;;  %v3106_v13 = vsel %vm3102_vm15, %v3098_v42, -inf }
0x1f28   :  { %v3112_v0 = vmax.f32 %v3105_v41, %v3111_v21  ;;  %v5438_v9 = vmax.f32 %v3108_v18, %v3110_v2  ;;  %v3529_v41 = vld [vmem:[%s5504_s12] sm:$0xff] }
0x1f29   :  { %v3905_v35 = vpop.f32.mrb[12].mxu1  ;;  %v3924_v44 = vpop.f32.mrb[12].mxu0 }
0x1f2a   :  { %v3225_v11 = vrot.slane %v3905_v35, %v5517_v7  ;;  %v3335_v46 = vcombine.high %v3924_v44, %v3924_v44  ;;  %v3342_v8 = vrot.slane %v3924_v44, %v5517_v7  ;;  %v3191_v10 = vpop.f32.mrb[13].mxu1  ;;  %v3307_v43 = vpop.f32.mrb[13].mxu0  ;;  %v5442_v40 = vmax.f32 %v3112_v0, %v3106_v13  ;;  %v3530_v13 = vld [vmem:[%s5504_s12 + $0x8] sm:$0xff] }
0x1f2b   :  { %v3202_v51 = vcombine.high %v3191_v10, %v3191_v10  ;;  %v3209_v15 = vrot.slane %v3191_v10, %v5517_v7  ;;  %v3318_v30 = vcombine.high %v3307_v43, %v3307_v43  ;;  %v3325_v22 = vrot.slane %v3307_v43, %v5517_v7 }
0x1f2c   :  { %v3226_v59 = vcombine.high %v3225_v11, %v3225_v11  ;;  %v3349_v50 = vrot.slane %v3335_v46, %v5517_v7  ;;  %v3350_v14 = vcombine.high %v3342_v8, %v3342_v8  ;;  %v3115_v20 = vmax.f32 %v5438_v9, %v5442_v40 }
0x1f2d   :  { %v3216_v23 = vrot.slane %v3202_v51, %v5517_v7  ;;  %v3217_v54 = vcombine.high %v3209_v15, %v3209_v15  ;;  %v3332_v57 = vrot.slane %v3318_v30, %v5517_v7  ;;  %v3333_v49 = vcombine.high %v3325_v22, %v3325_v22 }
0x1f2e   :  { %v3361_v58 = vadd.f32 %v3350_v14, %v3225_v11  ;;  %v3362_v45 = vadd.f32 %v3349_v50, %v3226_v59  ;;  %v4072_v11 = vpack.c.bf16 %v3530_v13, %v3529_v41  ;;  %v3680_v14 = vld [vmem:[%s5505_s13] ss:$0 sm:$0xff]  ;;  %s4256_s13 = scalar_lea.vmem %s3631_s8, 32 }
0x1f2f   :  { %v3218_v39 = vcombine.high %v3216_v23, %v3216_v23  ;;  %v3334_v52 = vcombine.high %v3332_v57, %v3332_v57  ;;  %v3357_v31 = vadd.f32 %v3333_v49, %v3209_v15  ;;  %v3358_v63 = vadd.f32 %v3332_v57, %v3217_v54  ;;  %p4257_p0 = scmp.ne.s32.totalorder %s3631_s8, %s4256_s13  ;;  %p4262_p2 = scmp.lt.s32.totalorder %s4256_s13, %s4256_s13 }
0x1f30   :  { %4073 = vmatpush3.bf16.msra.mxu0 %v4072_v11 }
0x1f31   :  { %v3359_v1 = vadd.f32 %v3334_v52, %v3216_v23  ;;  %v3360_v19 = vadd.f32 %v3342_v8, %v3218_v39  ;;  %p4263_p3 = por %p4262_p2, %p4261_p1 }
0x1f33   :  { %p4264_p4 = pnand %p4263_p3, %p4257_p0 }
0x1f39   :  { %v3943_v53 = vpop.f32.mrb[14].mxu1 }
0x1f3a   :  { %v3457_v5 = vcombine.high %v3943_v53, %v3943_v53  ;;  %v3464_v16 = vrot.slane %v3943_v53, %v5517_v7  ;;  %v3437_v17 = vpop.f32.mrb[15].mxu1 }
0x1f3b   :  { %v3448_v6 = vcombine.high %v3437_v17, %v3437_v17 }
0x1f3c   :  { %v3471_v36 = vrot.slane %v3457_v5, %v5517_v7  ;;  %v3472_v12 = vcombine.high %v3464_v16, %v3464_v16  ;;  %v3482_v28 = vadd.f32 %v3464_v16, %v3359_v1 }
0x1f3d   :  { %v3455_v56 = vrot.slane %v3448_v6, %v5517_v7 }
0x1f3e   :  { %v3473_v24 = vcombine.high %v3471_v36, %v3471_v36  ;;  %v3483_v48 = vadd.f32 %v3472_v12, %v3360_v19  ;;  %v3484_v60 = vadd.f32 %v3471_v36, %v3361_v58  ;;  %v3494_v32 = vadd.f32 %v3679_v62, %v3482_v28 }
0x1f3f   :  { %v3456_v26 = vcombine.high %v3455_v56, %v3455_v56  ;;  %v3480_v33 = vadd.f32 %v3455_v56, %v3357_v31 }
0x1f40   :  { %v3485_v55 = vadd.f32 %v3473_v24, %v3362_v45  ;;  %v3495_v47 = vadd.f32 %v3679_v62, %v3483_v48  ;;  %v3496_v61 = vadd.f32 %v3679_v62, %v3484_v60  ;;  %v3500_v37 = vmax.f32 %v3494_v32, 0.0 }
0x1f41   :  { %v3481_v25 = vadd.f32 %v3456_v26, %v3358_v63  ;;  %v3492_v4 = vadd.f32 %v3679_v62, %v3480_v33 }
0x1f42   :  { %v3497_v29 = vadd.f32 %v3679_v62, %v3485_v55  ;;  %v3501_v34 = vmax.f32 %v3495_v47, 0.0  ;;  %v3502_v42 = vmax.f32 %v3496_v61, 0.0  ;;  %v3506_v18 = vsel %vm3102_vm15, %v3500_v37, -inf }
0x1f43   :  { %v3493_v27 = vadd.f32 %v3679_v62, %v3481_v25  ;;  %v3498_v3 = vmax.f32 %v3492_v4, 0.0 }
0x1f44   :  { %v3503_v38 = vmax.f32 %v3497_v29, 0.0  ;;  %v3507_v21 = vsel %vm3102_vm15, %v3501_v34, -inf  ;;  %v3508_v2 = vsel %vm3102_vm15, %v3502_v42, -inf }
0x1f45   :  { %v3513_v0 = vmax.f32 %v3506_v18, %v3507_v21  ;;  %v3499_v35 = vmax.f32 %v3493_v27, 0.0  ;;  %v3504_v44 = vsel %vm3102_vm15, %v3498_v3, -inf }
0x1f46   :  { %v3509_v46 = vmax.f32 %v3504_v44, %v3508_v2  ;;  %v3510_v8 = vsel %vm3102_vm15, %v3503_v38, -inf }
0x1f47   :  { %v3505_v10 = vsel %vm3102_vm15, %v3499_v35, -inf }
0x1f48   :  { %v3511_v43 = vmax.f32 %v3505_v10, %v3510_v8 }
0x1f4a   :  { %v3512_v51 = vmax.f32 %v3509_v46, %v3511_v43 }
0x1f4c   :  { %v3514_v15 = vmax.f32 %v3512_v51, %v3513_v0 }
0x1f4e   :  { %v3522_v30 = vrot.slane %v3514_v15, %v5517_v7 }
0x1f50   :  { %3523 = vrot.lane.b32.xlu0 %v3522_v30, %s4292_s20 }
0x1fc2   :  { %v3524_v22 = vpop.permute.xlu0 %3523 }
0x1fc3   :  { %v3527_v59 = vsel %vm3526_vm0, %v3115_v20, %v3524_v22 }
0x1fc4   :  { %4250 = vtanh.f32 %v3527_v59 }
0x1fce   :  { %v4251_v50 = vpop.eup %4250 }
0x1fcf   :  { %3949 = vmatmul.mubr.msk.f32.vlgmr.msra.gmra.mrb[14].mxu0 %vm242_vm3, %v4251_v50 }
0x20a2   :  { %v3607_v23 = vpop.f32.mrb[14].mxu0 }
0x20a3   :  { %v3608_v54 = vadd.f32 %v3680_v14, %v3607_v23  ;;  %v3950_v7 = vpop.f32.mrb[15].mxu0 }
0x20a5   :  { %v3612_v57 = vsel %vm3611_vm1, %v3608_v54, -inf }
0x20a6   :  { %3613 = vmax.xlane.f32.xlu1 %v3612_v57 }
0x2133   :  { %v3614_v49 = vpop.xlane.xlu1 %3613 }
0x2134   :  { %v3615_v58 = vsub.f32 %v3608_v54, %v3614_v49 }
0x2136   :  { %v3616_v45 = vmul.f32 1.442695, %v3615_v58 }
0x2138   :  { %4252 = vpow2.f32 %v3616_v45 }
0x2142   :  { %v4253_v9 = vpop.eup %4252 }
0x2143   :  { %v3618_v40 = vsel %vm3611_vm1, %v4253_v9, 0.0 }
0x2144   :  { %3619 = vadd.xlane.f32.xlu0 %v3618_v40 }
0x21d1   :  { %v3620_v20 = vpop.xlane.xlu0 %3619 }
0x21d2   :  { %4254 = vrcp.f32 %v3620_v20 }
0x21dc   :  { %v4255_v39 = vpop.eup %4254 }
0x21dd   :  { %v3622_v52 = vmul.f32 %v4255_v39, %v4253_v9 }
0x21df   :  { %3623 = vst.msk [vmem:[#allocation4] sm:$0x3] %vm3611_vm1, %v3622_v52 }
0x21e0   :  { %4267 = shalt.err (!%p4264_p4)
}
0x21e1   :  { %s4268_s22 = scalar_lea.hbm %s5506_s14, 32 }
0x21e2   :  { %p4269_p5 = scmp.ne.s32.totalorder %s5506_s14, %s4268_s22  ;;  %p4272_p6 = scmp.lt.u32.totalorder %s4268_s22, %s5506_s14 }
0x21e4   :  { %p4274_p7 = pnand %p4272_p6, %p4269_p5 }
0x21e6   :  { %4277 = shalt.err (!%p4274_p7)
}
0x21e7   :  { %3633 = dma.vmem_to_hbm [thread:$0]  %s3631_s8, 32, %s5506_s14, [#allocation5]  }
0x21e8   :  { %4278 = dma.done.wait [#allocation5], 32  }
0x21e9   :  { %4279 = vsyncadd [#allocation5], 4294967264 }
0x21ea   :  { %3637 = vsyncpa [#allocation5], 1 }

</bundles_post_ra>
